<compile_context>
chip_gen: v5e
topology: v5e:2x2
jax: 0.10.0
libtpu: 0.0.40
codegen_flags: <defaults>
</compile_context>

<pallas_src>
import jax
import jax.numpy as jnp
from jax import lax
from jax.experimental import pallas as pl
from jax.experimental.pallas import tpu as pltpu

_MARGIN = 16  # bf16 sublane tile (16) -> interior window [MARGIN : MARGIN+W] is aligned


def _conv_bn_relu_pool_kernel(x_ref, w_ref, shift_ref, o_ref, xpad_ref):
    # x_ref:     (NB, H, W, Cin)  bf16   un-padded NHWC chunk of NB images
    # w_ref:     (9*Cin, Cout_p)  bf16   im2col weights, BN scale pre-folded
    # shift_ref: (1, Cout_p)      f32    folded BN shift (+ conv bias * scale)
    # o_ref:     (NB, H//2, W//2, Cout_p) bf16
    # xpad_ref:  (NB, H+2, W+2*_MARGIN, Cin) bf16 VMEM scratch (zero halo)
    NB, H, W, Cin = x_ref.shape
    Cp = w_ref.shape[1]
    Ho, Wo = H // 2, W // 2
    L, R = _MARGIN, _MARGIN + W            # interior column window [L, R)
    dt = xpad_ref.dtype

    # ---- border-only zeroing (review #3) ------------------------------------
    # The interior is fully overwritten below every step; only the single halo
    # column on each side of the window and the top/bottom halo rows are ever
    # read by the 3x3 taps, so zero exactly those.  Executed every step (each
    # v7x core has its own scratch under "parallel" semantics).
    zc = jnp.zeros((NB, H + 2, 1, Cin), dt)
    xpad_ref[:, :, L - 1:L, :] = zc          # halo column left of the window
    xpad_ref[:, :, R:R + 1, :] = zc          # halo column right of the window
    zr = jnp.zeros((NB, 1, W, Cin), dt)
    xpad_ref[:, 0:1, L:R, :] = zr            # top halo row
    xpad_ref[:, H + 1:H + 2, L:R, :] = zr    # bottom halo row

    # ---- drop the images into the aligned interior window (bf16) ------------
    xpad_ref[:, 1:H + 1, L:R, :] = x_ref[...]

    # ---- im2col: 9 shifted taps -> one (NB*H*W, 9*Cin) bf16 LHS, single dot --
    # Tap order (kh, kw) with cin innermost matches the (9*Cin, Cout_p) weight
    # layout built in the wrapper.  kw=1 taps are sublane-aligned; kw=0/2 are the
    # +-1 shifts kept as slices (see TODO on review #5).
    taps = [
        xpad_ref[:, kh:kh + H, L - 1 + kw:R - 1 + kw, :]
        for kh in range(3) for kw in range(3)
    ]
    patches = jnp.concatenate(taps, axis=-1).reshape(NB * H * W, 9 * Cin)

    acc = jnp.dot(patches, w_ref[...],
                  preferred_element_type=jnp.float32)       # (NB*H*W, Cp) f32

    # ---- BatchNorm shift (scale folded into weights) + ReLU ------------------
    y = jnp.maximum(acc + shift_ref[0], 0.0)

    # ---- MaxPool2d(2) --------------------------------------------------------
    y = jnp.max(y.reshape(NB * Ho, 2, W, Cp), axis=1)   # H-pool: free leading split
    y = jnp.max(y.reshape(NB * Ho, Wo, 2, Cp), axis=2)  # W-pool: one sublane relayout

    o_ref[...] = y.reshape(NB, Ho, Wo, Cp).astype(o_ref.dtype)


def conv2d_block(x_nchw, weight, bias, gamma, beta, running_mean, running_var,
                 eps=1e-5):
    """Forward of Conv_2d (eval mode). x_nchw: (N, Cin, H, W) float32 -> NCHW f32."""
    N, Cin, H, W = x_nchw.shape
    Cout = weight.shape[0]
    assert H % 2 == 0 and W % 2 == 0
    Cout_p = ((Cout + 127) // 128) * 128          # lane-dense output channels

    # Batch chunking: fold NB images into the matmul M dim per grid step (#1),
    # keep >= 2 parallel chunks when N >= 2 so both v7x TCs get work (#2).
    num_chunks = 2 if N >= 2 else 1
    NB = -(-N // num_chunks)
    N_pad = NB * num_chunks

    # NCHW -> NHWC (channels on the lane axis), cast to bf16 (#4).  The halo is
    # built in-kernel, so no spatial padding of the activation in HBM.
    x_nhwc = jnp.transpose(x_nchw, (0, 2, 3, 1)).astype(jnp.bfloat16)
    if N_pad != N:
        x_nhwc = jnp.pad(x_nhwc, ((0, N_pad - N), (0, 0), (0, 0), (0, 0)))

    # Fold BN (inference) into the conv: scale into the weights, shift separate.
    scale = gamma / jnp.sqrt(running_var + eps)                      # (Cout,)
    shift = beta - running_mean * scale + bias * scale               # (Cout,)

    # PyTorch weight (Cout, Cin, kh, kw) -> im2col matrix (9*Cin, Cout_p), bf16.
    # K ordering = (kh, kw, cin), matching the tap concat order in the kernel.
    w_kkio = jnp.transpose(weight, (2, 3, 1, 0)) * scale[None, None, None, :]
    w_mat = w_kkio.reshape(9 * Cin, Cout)
    w_mat = jnp.pad(w_mat, ((0, 0), (0, Cout_p - Cout))).astype(jnp.bfloat16)
    shift_p = jnp.pad(shift, (0, Cout_p - Cout)).reshape(1, Cout_p)
    shift_p = shift_p.astype(jnp.float32)

    Ho, Wo = H // 2, W // 2
    Wp = W + 2 * _MARGIN

    out_nhwc = pl.pallas_call(
        _conv_bn_relu_pool_kernel,
        out_shape=jax.ShapeDtypeStruct((N_pad, Ho, Wo, Cout_p), jnp.bfloat16),
        grid_spec=pltpu.PrefetchScalarGridSpec(
            num_scalar_prefetch=0,
            grid=(num_chunks,),
            in_specs=[
                pl.BlockSpec((NB, H, W, Cin), lambda c: (c, 0, 0, 0)),
                pl.BlockSpec((9 * Cin, Cout_p), lambda c: (0, 0)),
                pl.BlockSpec((1, Cout_p), lambda c: (0, 0)),
            ],
            out_specs=pl.BlockSpec((NB, Ho, Wo, Cout_p), lambda c: (c, 0, 0, 0)),
            scratch_shapes=[
                pltpu.VMEM((NB, H + 2, Wp, Cin), jnp.bfloat16),
            ],
        ),
        compiler_params=pltpu.CompilerParams(
            dimension_semantics=("parallel",),      # batch chunks across TCs
            vmem_limit_bytes=32 * 1024 * 1024,      # footprint is tiny at these shapes
        ),
    )(x_nhwc, w_mat, shift_p)

    # Drop batch padding + Cout lane padding; NHWC bf16 -> NCHW f32 to match the
    # PyTorch module's interface (a fused consumer could skip this, review #8).
    out = out_nhwc[:N, :, :, :Cout]
    return jnp.transpose(out, (0, 3, 1, 2)).astype(jnp.float32)


def _reference(x_nchw, weight, bias, gamma, beta, running_mean, running_var,
               eps=1e-5):
    """Pure-JAX f32 reference (conv -> BN(eval) -> ReLU -> maxpool2)."""
    y = lax.conv_general_dilated(
        x_nchw, weight, window_strides=(1, 1), padding=((1, 1), (1, 1)),
        dimension_numbers=("NCHW", "OIHW", "NCHW"))
    y = y + bias[None, :, None, None]
    scale = gamma / jnp.sqrt(running_var + eps)
    y = y * scale[None, :, None, None] + (beta - running_mean * scale)[None, :, None, None]
    y = jnp.maximum(y, 0.0)
    y = lax.reduce_window(y, -jnp.inf, lax.max,
                          window_dimensions=(1, 1, 2, 2),
                          window_strides=(1, 1, 2, 2),
                          padding="VALID")
    return y


if __name__ == "__main__":
    key = jax.random.PRNGKey(0)
    k_x, k_w, k_b, k_g, k_be = jax.random.split(key, 5)

    N, Cin, H, W = 2, 4, 16, 16
    Cout = 8

    x = jax.random.normal(k_x, (N, Cin, H, W), dtype=jnp.float32)
    weight = jax.random.normal(k_w, (Cout, Cin, 3, 3), dtype=jnp.float32) * 0.1
    bias = jax.random.normal(k_b, (Cout,), dtype=jnp.float32) * 0.1
    gamma = 1.0 + 0.1 * jax.random.normal(k_g, (Cout,), dtype=jnp.float32)
    beta = 0.1 * jax.random.normal(k_be, (Cout,), dtype=jnp.float32)
    running_mean = jnp.zeros((Cout,), jnp.float32)
    running_var = jnp.ones((Cout,), jnp.float32)

    out = conv2d_block(x, weight, bias, gamma, beta, running_mean, running_var)
    out = jax.block_until_ready(out)

    ref = _reference(x, weight, bias, gamma, beta, running_mean, running_var)
    ref = jax.block_until_ready(ref)

    assert out.shape == (N, Cout, H // 2, W // 2), out.shape
    # bf16 MXU operands + bf16 kernel output (f32 accumulation) -> loose tolerance.
    if not jnp.allclose(out, ref, atol=3e-2, rtol=3e-2):
        err = float(jnp.max(jnp.abs(out - ref)))
        raise AssertionError(f"Pallas kernel output mismatch vs reference (max abs err {err})")

    print("KERNEL_OK")
</pallas_src>

<mosaic_0001>
module attributes {stable_mosaic.version = 11 : i64} {
  func.func @_conv_bn_relu_pool_kernel(%arg0: i32, %arg1: memref<1x16x16x4xbf16, #tpu.memory_space<vmem>>, %arg2: memref<36x128xbf16, #tpu.memory_space<vmem>>, %arg3: memref<1x128xf32, #tpu.memory_space<vmem>>, %arg4: memref<1x8x8x128xbf16, #tpu.memory_space<vmem>>, %arg5: memref<1x18x48x4xbf16, #tpu.memory_space<vmem>>) attributes {dimension_semantics = [#tpu.dimension_semantics<parallel>], iteration_bounds = array<i64: 2>, scalar_prefetch = 0 : i64, scratch_operands = 1 : i64, tpu.core_type = #tpu.core_type<tc>, window_params = [{transform_indices = @transform_0, window_bounds = array<i64: 1, 16, 16, 4>}, {pipeline_mode = #tpu.pipeline_mode<synchronous>, transform_indices = @transform_1, window_bounds = array<i64: 36, 128>}, {pipeline_mode = #tpu.pipeline_mode<synchronous>, transform_indices = @transform_2, window_bounds = array<i64: 1, 128>}, {transform_indices = @transform_3, window_bounds = array<i64: 1, 8, 8, 128>}]} {
    %cst = arith.constant 0.000000e+00 : bf16
    %0 = vector.broadcast %cst : bf16 to vector<1x18x1x4xbf16>
    %c0 = arith.constant 0 : index
    %c0_0 = arith.constant 0 : index
    %c15 = arith.constant 15 : index
    %c0_1 = arith.constant 0 : index
    %1 = vector.load %arg5[%c0, %c0_0, %c15, %c0_1] : memref<1x18x48x4xbf16, #tpu.memory_space<vmem>>, vector<1x18x1x4xbf16>
    tpu.vector_store %arg5[%c0, %c0_0, %c15, %c0_1], %0 {strides = array<i32>} : memref<1x18x48x4xbf16, #tpu.memory_space<vmem>>, vector<1x18x1x4xbf16>,
    %c0_2 = arith.constant 0 : index
    %c0_3 = arith.constant 0 : index
    %c32 = arith.constant 32 : index
    %c0_4 = arith.constant 0 : index
    %2 = vector.load %arg5[%c0_2, %c0_3, %c32, %c0_4] : memref<1x18x48x4xbf16, #tpu.memory_space<vmem>>, vector<1x18x1x4xbf16>
    tpu.vector_store %arg5[%c0_2, %c0_3, %c32, %c0_4], %0 {strides = array<i32>} : memref<1x18x48x4xbf16, #tpu.memory_space<vmem>>, vector<1x18x1x4xbf16>,
    %cst_5 = arith.constant 0.000000e+00 : bf16
    %3 = vector.broadcast %cst_5 : bf16 to vector<1x1x16x4xbf16>
    %c0_6 = arith.constant 0 : index
    %c0_7 = arith.constant 0 : index
    %c16 = arith.constant 16 : index
    %c0_8 = arith.constant 0 : index
    %4 = vector.load %arg5[%c0_6, %c0_7, %c16, %c0_8] : memref<1x18x48x4xbf16, #tpu.memory_space<vmem>>, vector<1x1x16x4xbf16>
    tpu.vector_store %arg5[%c0_6, %c0_7, %c16, %c0_8], %3 {strides = array<i32>} : memref<1x18x48x4xbf16, #tpu.memory_space<vmem>>, vector<1x1x16x4xbf16>,
    %c0_9 = arith.constant 0 : index
    %c17 = arith.constant 17 : index
    %c16_10 = arith.constant 16 : index
    %c0_11 = arith.constant 0 : index
    %5 = vector.load %arg5[%c0_9, %c17, %c16_10, %c0_11] : memref<1x18x48x4xbf16, #tpu.memory_space<vmem>>, vector<1x1x16x4xbf16>
    tpu.vector_store %arg5[%c0_9, %c17, %c16_10, %c0_11], %3 {strides = array<i32>} : memref<1x18x48x4xbf16, #tpu.memory_space<vmem>>, vector<1x1x16x4xbf16>,
    %c0_12 = arith.constant 0 : index
    %c0_13 = arith.constant 0 : index
    %c0_14 = arith.constant 0 : index
    %c0_15 = arith.constant 0 : index
    %6 = vector.load %arg1[%c0_12, %c0_13, %c0_14, %c0_15] : memref<1x16x16x4xbf16, #tpu.memory_space<vmem>>, vector<1x16x16x4xbf16>
    %c0_16 = arith.constant 0 : index
    %c1 = arith.constant 1 : index
    %c16_17 = arith.constant 16 : index
    %c0_18 = arith.constant 0 : index
    %7 = vector.load %arg5[%c0_16, %c1, %c16_17, %c0_18] : memref<1x18x48x4xbf16, #tpu.memory_space<vmem>>, vector<1x16x16x4xbf16>
    tpu.vector_store %arg5[%c0_16, %c1, %c16_17, %c0_18], %6 {strides = array<i32>} : memref<1x18x48x4xbf16, #tpu.memory_space<vmem>>, vector<1x16x16x4xbf16>,
    %c0_19 = arith.constant 0 : index
    %c0_20 = arith.constant 0 : index
    %c15_21 = arith.constant 15 : index
    %c0_22 = arith.constant 0 : index
    %8 = vector.load %arg5[%c0_19, %c0_20, %c15_21, %c0_22] : memref<1x18x48x4xbf16, #tpu.memory_space<vmem>>, vector<1x16x16x4xbf16>
    %c0_23 = arith.constant 0 : index
    %c0_24 = arith.constant 0 : index
    %c16_25 = arith.constant 16 : index
    %c0_26 = arith.constant 0 : index
    %9 = vector.load %arg5[%c0_23, %c0_24, %c16_25, %c0_26] : memref<1x18x48x4xbf16, #tpu.memory_space<vmem>>, vector<1x16x16x4xbf16>
    %c0_27 = arith.constant 0 : index
    %c0_28 = arith.constant 0 : index
    %c17_29 = arith.constant 17 : index
    %c0_30 = arith.constant 0 : index
    %10 = vector.load %arg5[%c0_27, %c0_28, %c17_29, %c0_30] : memref<1x18x48x4xbf16, #tpu.memory_space<vmem>>, vector<1x16x16x4xbf16>
    %c0_31 = arith.constant 0 : index
    %c1_32 = arith.constant 1 : index
    %c15_33 = arith.constant 15 : index
    %c0_34 = arith.constant 0 : index
    %11 = vector.load %arg5[%c0_31, %c1_32, %c15_33, %c0_34] : memref<1x18x48x4xbf16, #tpu.memory_space<vmem>>, vector<1x16x16x4xbf16>
    %c0_35 = arith.constant 0 : index
    %c1_36 = arith.constant 1 : index
    %c16_37 = arith.constant 16 : index
    %c0_38 = arith.constant 0 : index
    %12 = vector.load %arg5[%c0_35, %c1_36, %c16_37, %c0_38] : memref<1x18x48x4xbf16, #tpu.memory_space<vmem>>, vector<1x16x16x4xbf16>
    %c0_39 = arith.constant 0 : index
    %c1_40 = arith.constant 1 : index
    %c17_41 = arith.constant 17 : index
    %c0_42 = arith.constant 0 : index
    %13 = vector.load %arg5[%c0_39, %c1_40, %c17_41, %c0_42] : memref<1x18x48x4xbf16, #tpu.memory_space<vmem>>, vector<1x16x16x4xbf16>
    %c0_43 = arith.constant 0 : index
    %c2 = arith.constant 2 : index
    %c15_44 = arith.constant 15 : index
    %c0_45 = arith.constant 0 : index
    %14 = vector.load %arg5[%c0_43, %c2, %c15_44, %c0_45] : memref<1x18x48x4xbf16, #tpu.memory_space<vmem>>, vector<1x16x16x4xbf16>
    %c0_46 = arith.constant 0 : index
    %c2_47 = arith.constant 2 : index
    %c16_48 = arith.constant 16 : index
    %c0_49 = arith.constant 0 : index
    %15 = vector.load %arg5[%c0_46, %c2_47, %c16_48, %c0_49] : memref<1x18x48x4xbf16, #tpu.memory_space<vmem>>, vector<1x16x16x4xbf16>
    %c0_50 = arith.constant 0 : index
    %c2_51 = arith.constant 2 : index
    %c17_52 = arith.constant 17 : index
    %c0_53 = arith.constant 0 : index
    %16 = vector.load %arg5[%c0_50, %c2_51, %c17_52, %c0_53] : memref<1x18x48x4xbf16, #tpu.memory_space<vmem>>, vector<1x16x16x4xbf16>
    %17 = tpu.concatenate %8, %9, %10, %11, %12, %13, %14, %15, %16 in 3 : vector<1x16x16x4xbf16>, vector<1x16x16x4xbf16>, vector<1x16x16x4xbf16>, vector<1x16x16x4xbf16>, vector<1x16x16x4xbf16>, vector<1x16x16x4xbf16>, vector<1x16x16x4xbf16>, vector<1x16x16x4xbf16>, vector<1x16x16x4xbf16> -> vector<1x16x16x36xbf16>
    %18 = vector.shape_cast %17 : vector<1x16x16x36xbf16> to vector<256x36xbf16>
    %c0_54 = arith.constant 0 : index
    %c0_55 = arith.constant 0 : index
    %19 = vector.load %arg2[%c0_54, %c0_55] : memref<36x128xbf16, #tpu.memory_space<vmem>>, vector<36x128xbf16>
    %cst_56 = arith.constant dense<0.000000e+00> : vector<256x128xf32>
    %20 = tpu.matmul %18, %19, %cst_56 {dimension_numbers = #tpu.dot_dimension_numbers<[1], [0], [0], [1], [0, 0, 1, 1], [], []>} : vector<256x36xbf16>, vector<36x128xbf16>, vector<256x128xf32> -> vector<256x128xf32>
    %c0_57 = arith.constant 0 : index
    %c0_58 = arith.constant 0 : index
    %21 = vector.load %arg3[%c0_57, %c0_58] : memref<1x128xf32, #tpu.memory_space<vmem>>, vector<1x128xf32>
    %22 = vector.shape_cast %21 : vector<1x128xf32> to vector<128xf32>
    %23 = vector.shape_cast %22 : vector<128xf32> to vector<1x128xf32>
    %24 = vector.broadcast %23 : vector<1x128xf32> to vector<256x128xf32>
    %25 = arith.addf %20, %24 : vector<256x128xf32>
    %cst_59 = arith.constant 0.000000e+00 : f32
    %26 = vector.broadcast %cst_59 : f32 to vector<256x128xf32>
    %27 = arith.maximumf %25, %26 : vector<256x128xf32>
    %28 = vector.shape_cast %27 : vector<256x128xf32> to vector<8x2x16x128xf32>
    %cst_60 = arith.constant dense<0xFF800000> : vector<8x16x128xf32>
    %29 = vector.multi_reduction <maximumf>, %28, %cst_60 [1] : vector<8x2x16x128xf32> to vector<8x16x128xf32>
    %30 = vector.shape_cast %29 : vector<8x16x128xf32> to vector<8x8x2x128xf32>
    %cst_61 = arith.constant dense<0xFF800000> : vector<8x8x128xf32>
    %31 = vector.multi_reduction <maximumf>, %30, %cst_61 [2] : vector<8x8x2x128xf32> to vector<8x8x128xf32>
    %32 = vector.shape_cast %31 : vector<8x8x128xf32> to vector<1x8x8x128xf32>
    %33 = arith.truncf %32 : vector<1x8x8x128xf32> to vector<1x8x8x128xbf16>
    %c0_62 = arith.constant 0 : index
    %c0_63 = arith.constant 0 : index
    %c0_64 = arith.constant 0 : index
    %c0_65 = arith.constant 0 : index
    %34 = vector.load %arg4[%c0_62, %c0_63, %c0_64, %c0_65] : memref<1x8x8x128xbf16, #tpu.memory_space<vmem>>, vector<1x8x8x128xbf16>
    tpu.vector_store %arg4[%c0_62, %c0_63, %c0_64, %c0_65], %33 {strides = array<i32>} : memref<1x8x8x128xbf16, #tpu.memory_space<vmem>>, vector<1x8x8x128xbf16>,
    return
  }
  func.func @transform_0(%arg0: i32) -> (i32, i32, i32, i32) {
    %c0_i32 = arith.constant 0 : i32
    %c0_i32_0 = arith.constant 0 : i32
    %c0_i32_1 = arith.constant 0 : i32
    %c0_i32_2 = arith.constant 0 : i32
    return %arg0, %c0_i32, %c0_i32_0, %c0_i32_1 : i32, i32, i32, i32
  }
  func.func @transform_1(%arg0: i32) -> (i32, i32) {
    %c0_i32 = arith.constant 0 : i32
    %c0_i32_0 = arith.constant 0 : i32
    %c0_i32_1 = arith.constant 0 : i32
    return %c0_i32, %c0_i32_0 : i32, i32
  }
  func.func @transform_2(%arg0: i32) -> (i32, i32) {
    %c0_i32 = arith.constant 0 : i32
    %c0_i32_0 = arith.constant 0 : i32
    %c0_i32_1 = arith.constant 0 : i32
    return %c0_i32, %c0_i32_0 : i32, i32
  }
  func.func @transform_3(%arg0: i32) -> (i32, i32, i32, i32) {
    %c0_i32 = arith.constant 0 : i32
    %c0_i32_0 = arith.constant 0 : i32
    %c0_i32_1 = arith.constant 0 : i32
    %c0_i32_2 = arith.constant 0 : i32
    return %arg0, %c0_i32, %c0_i32_0, %c0_i32_1 : i32, i32, i32, i32
  }
}

</mosaic_0001>

<bundles_post_ra>
// kernel: tpu_custom_call.1
= control target key start
LH: loop header
LB: loop body
LE: loop exit
PB: predicated region body
PF: predicated region fallthrough
CT: control target
= control target key end

     0   :  { %8 = vsyncpa [#allocation4], 0  ;;  %s6497_s0 = inlined_call_operand.vmem [shape: bf16[2,16,16,4], index: 0, kind: input, shape index: {}]   ;;  %s6498_s1 = inlined_call_operand.vmem [shape: bf16[36,128], index: 1, kind: input, shape index: {}]   ;;  %s6499_s2 = inlined_call_operand.vmem [shape: f32[1,128], index: 2, kind: input, shape index: {}]   ;;  %s6500_s3 = inlined_call_operand.hbm [shape: bf16[2,8,8,128], index: 3, kind: output, shape index: {}]  }
   0x1   :  { %10 = vsyncpa [#allocation4 + $0x1], 0  ;;  %s4637_s12 = smov 0   ;;  %s4639_s13 = smov 0  }
   0x2   :  { %s4641_s14 = smov 0   ;;  %s4643_s15 = smov 0  }
   0x3 LB: > { %s4658_s16 = sadd.s32 4294967295, %s4605_s15   ;;  %s3945_s17 = sadd.s32 4294967294, %s4605_s15   ;;  %s4605_s15 = sphi %s4643_s15, %s6611_s15   ;;  %s4601_s14 = sphi %s4641_s14, %s6610_s14   ;;  %s4597_s13 = sphi %s4639_s13, %s6609_s13   ;;  %s4593_s12 = sphi %s4637_s12, %s6608_s12  }
   0x4   : > { %s4662_s18 = sadd.s32 1, %s4605_s15   ;;  %s91_s19 = sadd.s32 1, %s4601_s14 }
   0x5   : > { %s88_s20 = ssub.s32 %s4605_s15, %s4662_s18  ;;  %p101_p0 = scmp.ne.s32.totalorder %s4601_s14, %s4597_s13 }
   0x6   : > { %p89_p1 = scmp.eq.s32.totalorder %s88_s20, 0  ;;  %p102_p2 = scmp.eq.s32.totalorder %s4658_s16, 1 }
   0x7   : > { %p107_p3 = scmp.ne.s32.totalorder %s4597_s13, %s4593_s12  ;;  %p108_p4 = scmp.eq.s32.totalorder %s3945_s17, 1 }
   0x8   : > { %s4673_s21 = scalar_select %p89_p1, %s4601_s14, %s91_s19  }
   0x9   : > { %p4675_p5 = por %p102_p2, %p101_p0  ;;  %p4679_p6 = por %p108_p4, %p107_p3 }
   0xa   : > { %p3948_p7 = scmp.ge.s32.totalorder %s4605_s15, 1  ;;  %p140_p8 = scmp.lt.s32.totalorder %s4605_s15, 3 }
   0xc   : > { %p141_p9 = pnand %p3948_p7, %p140_p8 }
   0xe   : > { %144 = sbr.rel (%p141_p9) target bundleno = 925 (0x39d), region = 32 }
  0x13   : > { %vm284_vm0 = vcmask 27648   ;;  %p164_p10 = scmp.lt.s32.totalorder %s4658_s16, 1  ;;  %v4607_v0 = vmov 0   ;;  %s4608_s29 = smov 4   ;;  %vm227_vm1 = vcmask 24576   ;;  %vm900_vm4 = vcmask 1042432  }
  0x14   : > { %285 = vst.msk [vmem:[#allocation2 + $0x8] sm:$0xf] %vm284_vm0, %v4607_v0  ;;  %vm228_vm2 = vsmask.f32 256  ;;  %s4609_s30 = smov 8   ;;  %vm170_vm5 = vcmask 27651  }
  0x15   : > { %286 = vst.msk [vmem:[#allocation2 + $0xc] sm:$0xf] %vm284_vm0, %v4607_v0  ;;  %s165_s24 = scalar_select %p164_p10, %s4658_s16, 1  ;;  %vm4816_vm3 = vmand %vm227_vm1, %vm228_vm2  ;;  %vm171_vm6 = vsmask.f32 7950  ;;  %vm2069_vm8 = vcmask 31744  }
  0x16   : > { %288 = vst.msk [vmem:[#allocation2 + $0x1a0] sm:$0xf] %vm284_vm0, %v4607_v0  ;;  %vm4882_vm7 = vmand %vm170_vm5, %vm171_vm6  ;;  %s4610_s4 = smov 12   ;;  %s4611_s5 = smov 16   ;;  %vm2150_vm9 = vcmask 64512   ;;  %vm2215_vm10 = vcmask 97280  }
  0x17   : > { %289 = vst.msk [vmem:[#allocation2 + $0x1a4] sm:$0xf] %vm284_vm0, %v4607_v0  ;;  %s3981_s25 = sshll.u32 %s165_s24, 7  ;;  %s4612_s6 = smov 20   ;;  %vm2280_vm11 = vcmask 130048   ;;  %vm2329_vm12 = vcmask 162816  }
  0x18   : > { %s4694_s28 = scalar_lea.vmem %s6497_s0, %s3981_s25  ;;  %s4613_s7 = smov 24   ;;  %vm2887_vm13 = vcmask 1041408   ;;  %vm2394_vm14 = vcmask 195584   ;;  %vm2459_vm15 = vcmask 228352   ;;  %vm2573_vm1 = vsmask.f32 4352 }
  0x19   : > { %v296_v1 = vld [vmem:[%s4694_s28 + $0x18] sm:$0xf]  ;;  %v297_v2 = vld [vmem:[%s4694_s28 + $0x1c] sm:$0xf]  ;;  %v292_v3 = vld [vmem:[%s4694_s28 + $0x8] sm:$0xf] }
  0x1a   : > { %329 = vst.msk [vmem:[#allocation2 + $0x68] sm:$0xf] %vm284_vm0, %v296_v1  ;;  %v293_v4 = vld [vmem:[%s4694_s28 + $0xc] sm:$0xf]  ;;  %v290_v5 = vld [vmem:[%s4694_s28] sm:$0xf] }
  0x1b   : > { %330 = vst.msk [vmem:[#allocation2 + $0x6c] sm:$0xf] %vm284_vm0, %v297_v2  ;;  %v291_v7 = vld [vmem:[%s4694_s28 + $0x4] sm:$0xf]  ;;  %v298_v10 = vld [vmem:[%s4694_s28 + $0x20] sm:$0xf] }
  0x1c   : > { %v4703_v6 = vld [vmem:[#allocation2 + $0x8] sm:$0xff]   ;;  %325 = vst.msk [vmem:[#allocation2 + $0x38] sm:$0xf] %vm284_vm0, %v292_v3  ;;  %v299_v11 = vld [vmem:[%s4694_s28 + $0x24] sm:$0xf]  ;;  %s4614_s8 = smov 28  }
  0x1d   : > { %v693_v8 = vshrl.u32 %v4703_v6, 16  ;;  %v696_v9 = vshll.u32 %v4703_v6, 16  ;;  %326 = vst.msk [vmem:[#allocation2 + $0x3c] sm:$0xf] %vm284_vm0, %v293_v4  ;;  %v294_v14 = vld [vmem:[%s4694_s28 + $0x10] sm:$0xf] }
  0x1e   : > { %323 = vst.msk [vmem:[#allocation2 + $0x20] sm:$0xf] %vm284_vm0, %v290_v5  ;;  %v295_v15 = vld [vmem:[%s4694_s28 + $0x14] sm:$0xf]  ;;  %v300_v16 = vld [vmem:[%s4694_s28 + $0x28] sm:$0xf] }
  0x1f   : > { %v695_v12 = vrot.slane %v693_v8, 4  ;;  %v698_v13 = vrot.slane %v696_v9, 5  ;;  %324 = vst.msk [vmem:[#allocation2 + $0x24] sm:$0xf] %vm284_vm0, %v291_v7  ;;  %v301_v18 = vld [vmem:[%s4694_s28 + $0x2c] sm:$0xf] }
  0x20   : > { %331 = vst.msk [vmem:[#allocation2 + $0x80] sm:$0xf] %vm284_vm0, %v298_v10  ;;  %v304_v19 = vld [vmem:[%s4694_s28 + $0x38] sm:$0xf]  ;;  %v305_v21 = vld [vmem:[%s4694_s28 + $0x3c] sm:$0xf] }
  0x21   : > { %v699_v17 = vor.u32 %v698_v13, %v695_v12  ;;  %332 = vst.msk [vmem:[#allocation2 + $0x84] sm:$0xf] %vm284_vm0, %v299_v11  ;;  %v302_v24 = vld [vmem:[%s4694_s28 + $0x30] sm:$0xf]  ;;  %v303_v26 = vld [vmem:[%s4694_s28 + $0x34] sm:$0xf] }
  0x22   : > { %v4721_v20 = vld [vmem:[#allocation2 + $0x68] sm:$0xff]   ;;  %327 = vst.msk [vmem:[#allocation2 + $0x50] sm:$0xf] %vm284_vm0, %v294_v14  ;;  %v306_v31 = vld [vmem:[%s4694_s28 + $0x40] sm:$0xf]  ;;  %s4615_s9 = smov 32  }
  0x23   : > { %820 = vrot.lane.b32.xlu0 %v699_v17, %s4608_s29  ;;  %v725_v22 = vshrl.u32 %v4721_v20, 16  ;;  %v728_v23 = vshll.u32 %v4721_v20, 16  ;;  %328 = vst.msk [vmem:[#allocation2 + $0x54] sm:$0xf] %vm284_vm0, %v295_v15  ;;  %v307_v33 = vld [vmem:[%s4694_s28 + $0x44] sm:$0xf] }
  0x24   : > { %v4730_v25 = vld [vmem:[#allocation2 + $0x38] sm:$0xff]   ;;  %333 = vst.msk [vmem:[#allocation2 + $0x98] sm:$0xf] %vm284_vm0, %v300_v16  ;;  %v310_v38 = vld [vmem:[%s4694_s28 + $0x50] sm:$0xf]  ;;  %vm2838_vm2 = vcmask 293888  }
  0x25   : > { %v727_v27 = vrot.slane %v725_v22, 4  ;;  %v730_v28 = vrot.slane %v728_v23, 5  ;;  %v709_v29 = vshrl.u32 %v4730_v25, 16  ;;  %v712_v30 = vshll.u32 %v4730_v25, 16  ;;  %334 = vst.msk [vmem:[#allocation2 + $0x9c] sm:$0xf] %vm284_vm0, %v301_v18 }
  0x26   : > { %v4738_v32 = vld [vmem:[#allocation2 + $0x20] sm:$0xff]   ;;  %337 = vst.msk [vmem:[#allocation2 + $0xc8] sm:$0xf] %vm284_vm0, %v304_v19  ;;  %v311_v41 = vld [vmem:[%s4694_s28 + $0x54] sm:$0xf]  ;;  %vm3784_vm5 = vcmask 1043459  }
  0x27   : > { %v731_v34 = vor.u32 %v730_v28, %v727_v27  ;;  %v711_v35 = vrot.slane %v709_v29, 4  ;;  %v714_v36 = vrot.slane %v712_v30, 5  ;;  %v701_v37 = vshrl.u32 %v4738_v32, 16  ;;  %338 = vst.msk [vmem:[#allocation2 + $0xcc] sm:$0xf] %vm284_vm0, %v305_v21  ;;  %s161_s27 = sand.u32 1, %s4597_s13  }
  0x28   : > { %v704_v39 = vshll.u32 %v4738_v32, 16  ;;  %v4746_v40 = vld [vmem:[#allocation2 + $0x80] sm:$0xff]   ;;  %335 = vst.msk [vmem:[#allocation2 + $0xb0] sm:$0xf] %vm284_vm0, %v302_v24  ;;  %v308_v46 = vld [vmem:[%s4694_s28 + $0x48] sm:$0xf] }
  0x29   : > { %828 = vrot.lane.b32.xlu2 %v731_v34, %s4608_s29  ;;  %v715_v42 = vor.u32 %v714_v36, %v711_v35  ;;  %v703_v43 = vrot.slane %v701_v37, 4  ;;  %v733_v44 = vshrl.u32 %v4746_v40, 16  ;;  %v736_v45 = vshll.u32 %v4746_v40, 16  ;;  %336 = vst.msk [vmem:[#allocation2 + $0xb4] sm:$0xf] %vm284_vm0, %v303_v26  ;;  %s3868_s11 = scalar_lea.sflag [#allocation4], %s161_s27 }
  0x2a   : > { %v706_v47 = vrot.slane %v704_v39, 5  ;;  %v4755_v48 = vld [vmem:[#allocation2 + $0x50] sm:$0xff]   ;;  %339 = vst.msk [vmem:[#allocation2 + $0xe0] sm:$0xf] %vm284_vm0, %v306_v31  ;;  %v309_v49 = vld [vmem:[%s4694_s28 + $0x4c] sm:$0xf] }
  0x2b   : > { %824 = vrot.lane.b32.xlu1 %v715_v42, %s4608_s29  ;;  %v735_v50 = vrot.slane %v733_v44, 4  ;;  %v738_v51 = vrot.slane %v736_v45, 5  ;;  %v717_v52 = vshrl.u32 %v4755_v48, 16  ;;  %v720_v53 = vshll.u32 %v4755_v48, 16  ;;  %340 = vst.msk [vmem:[#allocation2 + $0xe4] sm:$0xf] %vm284_vm0, %v307_v33 }
  0x2c   : > { %v707_v54 = vor.u32 %v706_v47, %v703_v43  ;;  %v4763_v55 = vld [vmem:[#allocation2 + $0x98] sm:$0xff]   ;;  %343 = vst.msk [vmem:[#allocation2 + $0x110] sm:$0xf] %vm284_vm0, %v310_v38  ;;  %v316_v7 = vld [vmem:[%s4694_s28 + $0x68] sm:$0xf]  ;;  %vm3786_vm6 = vcmask 1044484  }
  0x2d   : > { %v312_v56 = vld [vmem:[%s4694_s28 + $0x58] sm:$0xf]  ;;  %v739_v57 = vor.u32 %v738_v51, %v735_v50  ;;  %v719_v58 = vrot.slane %v717_v52, 4  ;;  %v722_v59 = vrot.slane %v720_v53, 5  ;;  %v741_v60 = vshrl.u32 %v4763_v55, 16  ;;  %s4563_s25 = scalar_lea.hbm %s6500_s3, 64 }
  0x2e   : > { %344 = vst.msk [vmem:[#allocation2 + $0x114] sm:$0xf] %vm284_vm0, %v311_v41  ;;  %822 = vrot.lane.b32.xlu0 %v707_v54, %s4608_s29  ;;  %v744_v61 = vshll.u32 %v4763_v55, 16  ;;  %v4771_v62 = vld [vmem:[#allocation2 + $0xc8] sm:$0xff]   ;;  %v313_v63 = vld [vmem:[%s4694_s28 + $0x5c] sm:$0xf] }
  0x2f   : > { %341 = vst.msk [vmem:[#allocation2 + $0xf8] sm:$0xf] %vm284_vm0, %v308_v46  ;;  %v723_v0 = vor.u32 %v722_v59, %v719_v58  ;;  %v743_v1 = vrot.slane %v741_v60, 4  ;;  %v757_v2 = vshrl.u32 %v4771_v62, 16  ;;  %v760_v3 = vshll.u32 %v4771_v62, 16 }
  0x30   : > { %342 = vst.msk [vmem:[#allocation2 + $0xfc] sm:$0xf] %vm284_vm0, %v309_v49  ;;  %v746_v4 = vrot.slane %v744_v61, 5  ;;  %v4778_v5 = vld [vmem:[#allocation2 + $0xb0] sm:$0xff]   ;;  %v317_v14 = vld [vmem:[%s4694_s28 + $0x6c] sm:$0xf] }
  0x31   : > { %345 = vst.msk [vmem:[#allocation2 + $0x128] sm:$0xf] %vm284_vm0, %v312_v56  ;;  %830 = vrot.lane.b32.xlu2 %v739_v57, %s4608_s29  ;;  %v759_v8 = vrot.slane %v757_v2, 4  ;;  %v762_v9 = vrot.slane %v760_v3, 5  ;;  %v749_v10 = vshrl.u32 %v4778_v5, 16  ;;  %v752_v11 = vshll.u32 %v4778_v5, 16 }
  0x32   : > { %346 = vst.msk [vmem:[#allocation2 + $0x12c] sm:$0xf] %vm284_vm0, %v313_v63  ;;  %v747_v12 = vor.u32 %v746_v4, %v743_v1  ;;  %v4786_v13 = vld [vmem:[#allocation2 + $0xe0] sm:$0xff]   ;;  %v318_v30 = vld [vmem:[%s4694_s28 + $0x70] sm:$0xf]  ;;  %v6521_v41 = vmov 0 }
  0x33   : > { %349 = vst.msk [vmem:[#allocation2 + $0x158] sm:$0xf] %vm284_vm0, %v316_v7  ;;  %826 = vrot.lane.b32.xlu1 %v723_v0, %s4608_s29  ;;  %v751_v15 = vrot.slane %v749_v10, 4  ;;  %v754_v16 = vrot.slane %v752_v11, 5  ;;  %v765_v17 = vshrl.u32 %v4786_v13, 16  ;;  %v768_v18 = vshll.u32 %v4786_v13, 16 }
  0x34   : > { %350 = vst.msk [vmem:[#allocation2 + $0x15c] sm:$0xf] %vm284_vm0, %v317_v14  ;;  %v314_v21 = vld [vmem:[%s4694_s28 + $0x60] sm:$0xf]  ;;  %v315_v22 = vld [vmem:[%s4694_s28 + $0x64] sm:$0xf]  ;;  %v763_v23 = vor.u32 %v762_v9, %v759_v8 }
  0x35   : > { %v4794_v19 = vld [vmem:[#allocation2 + $0x110] sm:$0xff]   ;;  %v767_v24 = vrot.slane %v765_v17, 4  ;;  %347 = vst.msk [vmem:[#allocation2 + $0x140] sm:$0xf] %vm284_vm0, %v314_v21  ;;  %v770_v28 = vrot.slane %v768_v18, 5  ;;  %v755_v31 = vor.u32 %v754_v16, %v751_v15  ;;  %v6522_v41 = vsel %vm4816_vm3, 4294967295, %v6521_v41 }
  0x36   : > { %v781_v26 = vshrl.u32 %v4794_v19, 16  ;;  %v784_v27 = vshll.u32 %v4794_v19, 16  ;;  %832 = vrot.lane.b32.xlu0 %v747_v12, %s4608_s29  ;;  %348 = vst.msk [vmem:[#allocation2 + $0x144] sm:$0xf] %vm284_vm0, %v315_v22  ;;  %v319_v35 = vld [vmem:[%s4694_s28 + $0x74] sm:$0xf] }
  0x37   : > { %v4802_v29 = vld [vmem:[#allocation2 + $0xf8] sm:$0xff]   ;;  %351 = vst.msk [vmem:[#allocation2 + $0x170] sm:$0xf] %vm284_vm0, %v318_v30  ;;  %v771_v42 = vor.u32 %v770_v28, %v767_v24  ;;  %v230_v45 = vld [vmem:[#allocation2 + $0x10] sm:$0x1] }
  0x38   : > { %v773_v33 = vshrl.u32 %v4802_v29, 16  ;;  %v776_v34 = vshll.u32 %v4802_v29, 16  ;;  %v783_v37 = vrot.slane %v781_v26, 4  ;;  %v786_v38 = vrot.slane %v784_v27, 5  ;;  %352 = vst.msk [vmem:[#allocation2 + $0x174] sm:$0xf] %vm284_vm0, %v319_v35 }
  0x39   : > { %v4809_v36 = vld [vmem:[#allocation2 + $0x128] sm:$0xff]   ;;  %836 = vrot.lane.b32.xlu2 %v763_v23, %s4608_s29  ;;  %6523 = vst [vmem:[#allocation6_spill] sm:$0xff] %v6522_v41  ;;  %v231_v51 = vsel %vm4816_vm3, 0, %v230_v45  ;;  %v236_v53 = vld [vmem:[#allocation2 + $0x40] sm:$0x1] }
  0x3a   : > { %v789_v39 = vshrl.u32 %v4809_v36, 16  ;;  %v792_v43 = vshll.u32 %v4809_v36, 16  ;;  %v775_v46 = vrot.slane %v773_v33, 4  ;;  %v778_v47 = vrot.slane %v776_v34, 5  ;;  %v233_v49 = vld [vmem:[#allocation2 + $0x28] sm:$0x1] }
  0x3b   : > { %v4821_v44 = vld [vmem:[#allocation2 + $0x158] sm:$0xff]   ;;  %834 = vrot.lane.b32.xlu1 %v755_v31, %s4608_s29  ;;  %v234_v52 = vsel %vm4816_vm3, 0, %v233_v49  ;;  %v787_v54 = vor.u32 %v786_v38, %v783_v37  ;;  %232 = vst [vmem:[#allocation2 + $0x10] sm:$0x1] %v231_v51  ;;  %v237_v59 = vsel %vm4816_vm3, 0, %v236_v53  ;;  %v901_v34 = vrot.slane %v4703_v6, 5 }
  0x3c   : > { %v791_v50 = vrot.slane %v789_v39, 4  ;;  %v805_v56 = vshrl.u32 %v4821_v44, 16  ;;  %v808_v57 = vshll.u32 %v4821_v44, 16  ;;  %v794_v60 = vrot.slane %v792_v43, 5  ;;  %235 = vst [vmem:[#allocation2 + $0x28] sm:$0x1] %v234_v52 }
  0x3d   : > { %v4830_v58 = vld [vmem:[#allocation2 + $0x140] sm:$0xff]   ;;  %v239_v63 = vld [vmem:[#allocation2 + $0x58] sm:$0x1]  ;;  %v779_v0 = vor.u32 %v778_v47, %v775_v46  ;;  %238 = vst [vmem:[#allocation2 + $0x40] sm:$0x1] %v237_v59 }
  0x3e   : > { %838 = vrot.lane.b32.xlu0 %v771_v42, %s4608_s29  ;;  %v797_v61 = vshrl.u32 %v4830_v58, 16  ;;  %v800_v1 = vshll.u32 %v4830_v58, 16  ;;  %v240_v2 = vsel %vm4816_vm3, 0, %v239_v63  ;;  %v242_v3 = vld [vmem:[#allocation2 + $0x70] sm:$0x1]  ;;  %v807_v8 = vrot.slane %v805_v56, 4 }
  0x3f   : > { %v4839_v4 = vld [vmem:[#allocation2 + $0x170] sm:$0xff]   ;;  %241 = vst [vmem:[#allocation2 + $0x58] sm:$0x1] %v240_v2  ;;  %v243_v7 = vsel %vm4816_vm3, 0, %v242_v3  ;;  %v810_v9 = vrot.slane %v808_v57, 5  ;;  %v795_v11 = vor.u32 %v794_v60, %v791_v50  ;;  %v904_v50 = vrot.slane %v4738_v32, 5 }
  0x40   : > { %244 = vst [vmem:[#allocation2 + $0x70] sm:$0x1] %v243_v7  ;;  %v245_v10 = vld [vmem:[#allocation2 + $0x88] sm:$0x1]  ;;  %v813_v12 = vshrl.u32 %v4839_v4, 16  ;;  %v816_v14 = vshll.u32 %v4839_v4, 16 }
  0x41   : > { %842 = vrot.lane.b32.xlu2 %v787_v54, %s4608_s29  ;;  %v246_v15 = vsel %vm4816_vm3, 0, %v245_v10  ;;  %v799_v16 = vrot.slane %v797_v61, 4  ;;  %v802_v17 = vrot.slane %v800_v1, 5  ;;  %v248_v21 = vld [vmem:[#allocation2 + $0xa0] sm:$0x1]  ;;  %v811_v22 = vor.u32 %v810_v9, %v807_v8 }
  0x42   : > { %247 = vst [vmem:[#allocation2 + $0x88] sm:$0x1] %v246_v15  ;;  %v403_v18 = vld [vmem:[#allocation2 + $0x10] sm:$0x1]  ;;  %v249_v24 = vsel %vm4816_vm3, 0, %v248_v21  ;;  %v815_v26 = vrot.slane %v813_v12, 4 }
  0x43   : > { %840 = vrot.lane.b32.xlu1 %v779_v0, %s4608_s29  ;;  %v868_v23 = vunpack.c.l.b16 %v403_v18  ;;  %v818_v27 = vrot.slane %v816_v14, 5  ;;  %250 = vst [vmem:[#allocation2 + $0xa0] sm:$0x1] %v249_v24  ;;  %v803_v28 = vor.u32 %v802_v17, %v799_v16  ;;  %v404_v31 = vld [vmem:[#allocation2 + $0x28] sm:$0x1]  ;;  %v907_v57 = vrot.slane %v4730_v25, 5 }
  0x44   : > { %v251_v37 = vld [vmem:[#allocation2 + $0xb8] sm:$0x1]  ;;  %v869_v38 = vunpack.c.l.b16 %v404_v31  ;;  %v405_v39 = vld [vmem:[#allocation2 + $0x40] sm:$0x1]  ;;  %v254_v45 = vld [vmem:[#allocation2 + $0xd0] sm:$0x1] }
  0x45   : > { %v884_v30 = vpack.c.b16 %v868_v23, %v868_v23  ;;  %v819_v33 = vor.u32 %v818_v27, %v815_v26  ;;  %v252_v42 = vsel %vm4816_vm3, 0, %v251_v37  ;;  %v870_v46 = vunpack.c.l.b16 %v405_v39  ;;  %v257_v53 = vld [vmem:[#allocation2 + $0xe8] sm:$0x1]  ;;  %v260_v3 = vld [vmem:[#allocation2 + $0x100] sm:$0x1] }
  0x46   : > { %844 = vrot.lane.b32.xlu0 %v795_v11, %s4608_s29  ;;  %253 = vst [vmem:[#allocation2 + $0xb8] sm:$0x1] %v252_v42  ;;  %v406_v47 = vld [vmem:[#allocation2 + $0x58] sm:$0x1]  ;;  %v255_v6 = vsel %vm4816_vm3, 0, %v254_v45  ;;  %v885_v49 = vpack.c.b16 %v869_v38, %v869_v38  ;;  %v258_v56 = vsel %vm4816_vm3, 0, %v257_v53 }
  0x47   : > { %v902_v35 = vrot.slane %v884_v30, 5  ;;  %256 = vst [vmem:[#allocation2 + $0xd0] sm:$0x1] %v255_v6  ;;  %v871_v51 = vunpack.c.l.b16 %v406_v47  ;;  %v886_v52 = vpack.c.b16 %v870_v46, %v870_v46  ;;  %v407_v63 = vld [vmem:[#allocation2 + $0x70] sm:$0x1]  ;;  %v910_v0 = vrot.slane %v4755_v48, 5 }
  0x48   : > { %v905_v54 = vrot.slane %v885_v49, 5  ;;  %259 = vst [vmem:[#allocation2 + $0xe8] sm:$0x1] %v258_v56  ;;  %v872_v7 = vunpack.c.l.b16 %v407_v63  ;;  %v261_v9 = vsel %vm4816_vm3, 0, %v260_v3  ;;  %v263_v10 = vld [vmem:[#allocation2 + $0x118] sm:$0x1] }
  0x49   : > { %848 = vrot.lane.b32.xlu2 %v811_v22, %s4608_s29  ;;  %v903_v43 = vsel %vm900_vm4, %v901_v34, %v902_v35  ;;  %v887_v59 = vpack.c.b16 %v871_v51, %v871_v51  ;;  %v908_v60 = vrot.slane %v886_v52, 5  ;;  %v408_v8 = vld [vmem:[#allocation2 + $0x88] sm:$0x1]  ;;  %262 = vst [vmem:[#allocation2 + $0x100] sm:$0x1] %v261_v9  ;;  %v264_v12 = vsel %vm4816_vm3, 0, %v263_v10 }
  0x4a   : > { %v906_v61 = vsel %vm900_vm4, %v904_v50, %v905_v54  ;;  %v873_v14 = vunpack.c.l.b16 %v408_v8  ;;  %v409_v15 = vld [vmem:[#allocation2 + $0xa0] sm:$0x1]  ;;  %265 = vst [vmem:[#allocation2 + $0x118] sm:$0x1] %v264_v12  ;;  %v888_v16 = vpack.c.b16 %v872_v7, %v872_v7  ;;  %v913_v17 = vrot.slane %v4721_v20, 5 }
  0x4b   : > { %846 = vrot.lane.b32.xlu1 %v803_v28, %s4608_s29  ;;  %v911_v1 = vrot.slane %v887_v59, 5  ;;  %v909_v2 = vsel %vm900_vm4, %v907_v57, %v908_v60  ;;  %v874_v18 = vunpack.c.l.b16 %v409_v15  ;;  %v185_v22 = vld [vmem:[#allocation2 + $0x64] sm:$0x8]  ;;  %v6524_v24 = vmov 0  ;;  %v266_v28 = vld [vmem:[#allocation2 + $0x130] sm:$0x1] }
  0x4c   : > { %v889_v21 = vpack.c.b16 %v873_v14, %v873_v14  ;;  %v914_v23 = vrot.slane %v888_v16, 5  ;;  %v6525_v24 = vsel %vm4882_vm7, 4294967295, %v6524_v24  ;;  %v916_v26 = vrot.slane %v4746_v40, 5  ;;  %v188_v38 = vld [vmem:[#allocation2 + $0x7c] sm:$0x8] }
  0x4d   : > { %v912_v11 = vsel %vm900_vm4, %v910_v0, %v911_v1  ;;  %6526 = vst [vmem:[#allocation7_spill] sm:$0xff] %v6525_v24  ;;  %v186_v27 = vsel %vm4882_vm7, 0, %v185_v22  ;;  %v890_v20 = vpack.c.b16 %v874_v18, %v874_v18  ;;  %v267_v30 = vsel %vm4816_vm3, 0, %v266_v28  ;;  %v269_v45 = vld [vmem:[#allocation2 + $0x148] sm:$0x1]  ;;  %v5139_v24 = vld [vmem:[#allocation2 + $0x20] sm:$0xff]  }
  0x4e   : > { %850 = vrot.lane.b32.xlu0 %v819_v33, %s4608_s29  ;;  %187 = vst [vmem:[#allocation2 + $0x64] sm:$0x8] %v186_v27  ;;  %v917_v31 = vrot.slane %v889_v21, 5  ;;  %v915_v33 = vsel %vm900_vm4, %v913_v17, %v914_v23  ;;  %v919_v40 = vrot.slane %v4763_v55, 5  ;;  %v411_v42 = vld [vmem:[#allocation2 + $0xd0] sm:$0x1] }
  0x4f   : > { %268 = vst [vmem:[#allocation2 + $0x130] sm:$0x1] %v267_v30  ;;  %v920_v35 = vrot.slane %v890_v20, 5  ;;  %v173_v46 = vld [vmem:[#allocation2 + $0x4] sm:$0x8]  ;;  %v270_v6 = vsel %vm4816_vm3, 0, %v269_v45  ;;  %v876_v49 = vunpack.c.l.b16 %v411_v42 }
  0x50   : > { %v918_v37 = vsel %vm900_vm4, %v916_v26, %v917_v31  ;;  %v174_v55 = vsel %vm4882_vm7, 0, %v173_v46  ;;  %v272_v51 = vld [vmem:[#allocation2 + $0x160] sm:$0x1]  ;;  %271 = vst [vmem:[#allocation2 + $0x148] sm:$0x1] %v270_v6  ;;  %v922_v54 = vrot.slane %v4778_v5, 5 }
  0x51   : > { %951 = vrot.lane.b32.xlu2 %v903_v43, %s4609_s30  ;;  %v189_v43 = vsel %vm4882_vm7, 0, %v188_v38  ;;  %v921_v47 = vsel %vm900_vm4, %v919_v40, %v920_v35  ;;  %175 = vst [vmem:[#allocation2 + $0x4] sm:$0x8] %v174_v55  ;;  %v273_v53 = vsel %vm4816_vm3, 0, %v272_v51  ;;  %v197_v59 = vld [vmem:[#allocation2 + $0xc4] sm:$0x8] }
  0x52   : > { %190 = vst [vmem:[#allocation2 + $0x7c] sm:$0x8] %v189_v43  ;;  %v925_v60 = vrot.slane %v4771_v62, 5  ;;  %v198_v63 = vsel %vm4882_vm7, 0, %v197_v59  ;;  %v179_v1 = vld [vmem:[#allocation2 + $0x34] sm:$0x8] }
  0x53   : > { %949 = vrot.lane.b32.xlu1 %v901_v34, %s4609_s30  ;;  %v410_v34 = vld [vmem:[#allocation2 + $0xb8] sm:$0x1]  ;;  %274 = vst [vmem:[#allocation2 + $0x160] sm:$0x1] %v273_v53  ;;  %v180_v5 = vsel %vm4882_vm7, 0, %v179_v1  ;;  %v931_v30 = vrot.slane %v4802_v29, 5 }
  0x54   : > { %v875_v39 = vunpack.c.l.b16 %v410_v34  ;;  %199 = vst [vmem:[#allocation2 + $0xc4] sm:$0x8] %v198_v63  ;;  %v413_v10 = vld [vmem:[#allocation2 + $0x100] sm:$0x1]  ;;  %v206_v15 = vld [vmem:[#allocation2 + $0x10c] sm:$0x8] }
  0x55   : > { %181 = vst [vmem:[#allocation2 + $0x34] sm:$0x8] %v180_v5  ;;  %v878_v16 = vunpack.c.l.b16 %v413_v10  ;;  %v207_v18 = vsel %vm4882_vm7, 0, %v206_v15  ;;  %v182_v21 = vld [vmem:[#allocation2 + $0x4c] sm:$0x8]  ;;  %v934_v38 = vrot.slane %v4794_v19, 5 }
  0x56   : > { %953 = vrot.lane.b32.xlu0 %v904_v50, %s4609_s30  ;;  %v412_v50 = vld [vmem:[#allocation2 + $0xe8] sm:$0x1]  ;;  %v891_v52 = vpack.c.b16 %v875_v39, %v875_v39  ;;  %208 = vst [vmem:[#allocation2 + $0x10c] sm:$0x8] %v207_v18  ;;  %v191_v27 = vld [vmem:[#allocation2 + $0x94] sm:$0x8] }
  0x57   : > { %v877_v56 = vunpack.c.l.b16 %v412_v50  ;;  %v894_v28 = vpack.c.b16 %v878_v16, %v878_v16  ;;  %v192_v20 = vsel %vm4882_vm7, 0, %v191_v27  ;;  %v194_v42 = vld [vmem:[#allocation2 + $0xac] sm:$0x8]  ;;  %v200_v45 = vld [vmem:[#allocation2 + $0xdc] sm:$0x8]  ;;  %v937_v19 = vrot.slane %v4809_v36, 5 }
  0x58   : > { %193 = vst [vmem:[#allocation2 + $0x94] sm:$0x8] %v192_v20  ;;  %v195_v29 = vsel %vm4882_vm7, 0, %v194_v42  ;;  %v416_v55 = vld [vmem:[#allocation2 + $0x148] sm:$0x1]  ;;  %v940_v63 = vrot.slane %v4830_v58, 5 }
  0x59   : > { %957 = vrot.lane.b32.xlu2 %v907_v57, %s4609_s30  ;;  %v892_v57 = vpack.c.b16 %v876_v49, %v876_v49  ;;  %v893_v3 = vpack.c.b16 %v877_v56, %v877_v56  ;;  %v932_v35 = vrot.slane %v894_v28, 5  ;;  %196 = vst [vmem:[#allocation2 + $0xac] sm:$0x8] %v195_v29  ;;  %v881_v51 = vunpack.c.l.b16 %v416_v55  ;;  %v203_v53 = vld [vmem:[#allocation2 + $0xf4] sm:$0x8] }
  0x5a   : > { %v943_v5 = vrot.slane %v4821_v44, 5  ;;  %v3992_v44 = vunpack.c.h.b16 %v4738_v32  ;;  %v946_v16 = vrot.slane %v4839_v4, 5  ;;  %v4000_v4 = vunpack.c.h.b16 %v4755_v48 }
  0x5b   : > { %955 = vrot.lane.b32.xlu1 %v906_v61, %s4609_s30  ;;  %v923_v61 = vrot.slane %v891_v52, 5  ;;  %v926_v7 = vrot.slane %v892_v57, 5  ;;  %v929_v12 = vrot.slane %v893_v3, 5  ;;  %v933_v46 = vsel %vm900_vm4, %v931_v30, %v932_v35  ;;  %v417_v52 = vld [vmem:[#allocation2 + $0x160] sm:$0x1] }
  0x5c   : > { %v204_v57 = vsel %vm4882_vm7, 0, %v203_v53  ;;  %v882_v59 = vunpack.c.l.b16 %v417_v52  ;;  %v651_v20 = vpack.c.b16 %v4000_v4, %v4000_v4 }
  0x5d   : > { %v924_v9 = vsel %vm900_vm4, %v922_v54, %v923_v61  ;;  %v927_v14 = vsel %vm900_vm4, %v925_v60, %v926_v7  ;;  %205 = vst [vmem:[#allocation2 + $0xf4] sm:$0x8] %v204_v57  ;;  %v897_v61 = vpack.c.b16 %v881_v51, %v881_v51  ;;  %v212_v7 = vld [vmem:[#allocation2 + $0x13c] sm:$0x8]  ;;  %v4446_v51 = vld [vmem:[#allocation2 + $0x7c] sm:$0xf0]  }
  0x5e   : > { %959 = vrot.lane.b32.xlu0 %v909_v2, %s4609_s30  ;;  %v176_v2 = vld [vmem:[#allocation2 + $0x1c] sm:$0x8]  ;;  %v213_v58 = vsel %vm4882_vm7, 0, %v212_v7 }
  0x5f   : > { %v177_v8 = vsel %vm4882_vm7, 0, %v176_v2  ;;  %v898_v2 = vpack.c.b16 %v882_v59, %v882_v59  ;;  %v941_v3 = vrot.slane %v897_v61, 5  ;;  %214 = vst [vmem:[#allocation2 + $0x13c] sm:$0x8] %v213_v58  ;;  %v5031_v59 = vld [vmem:[#allocation2 + $0x98] sm:$0xff]  }
  0x60   : > { %178 = vst [vmem:[#allocation2 + $0x1c] sm:$0x8] %v177_v8  ;;  %v218_v8 = vld [vmem:[#allocation2 + $0x16c] sm:$0x8]  ;;  %v4448_v58 = vld [vmem:[#allocation2 + $0xac] sm:$0xf0]  }
  0x61   : > { %963 = vrot.lane.b32.xlu2 %v912_v11, %s4609_s30  ;;  %v928_v11 = vrot.slane %v4786_v13, 5  ;;  %v183_v13 = vsel %vm4882_vm7, 0, %v182_v21 }
  0x62   : > { %184 = vst [vmem:[#allocation2 + $0x4c] sm:$0x8] %v183_v13 }
  0x63   : > { %961 = vrot.lane.b32.xlu1 %v910_v0, %s4609_s30  ;;  %v275_v0 = vld [vmem:[#allocation2 + $0x178] sm:$0x1]  ;;  %v930_v22 = vsel %vm900_vm4, %v928_v11, %v929_v12  ;;  %v219_v12 = vsel %vm4882_vm7, 0, %v218_v8 }
  0x64   : > { %v276_v62 = vsel %vm4816_vm3, 0, %v275_v0  ;;  %220 = vst [vmem:[#allocation2 + $0x16c] sm:$0x8] %v219_v12  ;;  %v5047_v12 = vld [vmem:[#allocation2 + $0xb0] sm:$0xff]  }
  0x65   : > { %277 = vst [vmem:[#allocation2 + $0x178] sm:$0x1] %v276_v62 }
  0x66   : > { %965 = vrot.lane.b32.xlu0 %v913_v17, %s4609_s30  ;;  %v414_v17 = vld [vmem:[#allocation2 + $0x118] sm:$0x1] }
  0x67   : > { %v879_v23 = vunpack.c.l.b16 %v414_v17 }
  0x69   : > { %969 = vrot.lane.b32.xlu2 %v916_v26, %s4609_s30  ;;  %v415_v26 = vld [vmem:[#allocation2 + $0x130] sm:$0x1]  ;;  %v895_v34 = vpack.c.b16 %v879_v23, %v879_v23  ;;  %v4291_v23 = vld [vmem:[#allocation2 + $0x1c] sm:$0x8]  ;;  %v4299_v42 = vld [vmem:[#allocation2 + $0x4c] sm:$0x8] }
  0x6a   : > { %v880_v31 = vunpack.c.l.b16 %v415_v26  ;;  %v4442_v26 = vld [vmem:[#allocation2 + $0x1c] sm:$0xf0]  }
  0x6b   : > { %967 = vrot.lane.b32.xlu1 %v915_v33, %s4609_s30  ;;  %v935_v43 = vrot.slane %v895_v34, 5  ;;  %v4443_v34 = vld [vmem:[#allocation2 + $0x34] sm:$0xf0]  }
  0x6c   : > { %v896_v39 = vpack.c.b16 %v880_v31, %v880_v31  ;;  %v4295_v31 = vld [vmem:[#allocation2 + $0x34] sm:$0x8] }
  0x6d   : > { %v936_v50 = vsel %vm900_vm4, %v934_v38, %v935_v43  ;;  %v4296_v48 = vor.u32 %v4443_v34, %v4295_v31  ;;  %v4444_v43 = vld [vmem:[#allocation2 + $0x4c] sm:$0xf0]   ;;  %v221_v34 = vld [vmem:[#allocation2 + $0x184] sm:$0x8] }
  0x6e   : > { %971 = vrot.lane.b32.xlu0 %v918_v37, %s4609_s30  ;;  %v938_v6 = vrot.slane %v896_v39, 5 }
  0x70   : > { %v939_v56 = vsel %vm900_vm4, %v937_v19, %v938_v6 }
  0x71   : > { %975 = vrot.lane.b32.xlu2 %v921_v47, %s4609_s30  ;;  %v201_v47 = vsel %vm4882_vm7, 0, %v200_v45  ;;  %v4300_v45 = vor.u32 %v4444_v43, %v4299_v42  ;;  %v222_v42 = vsel %vm4882_vm7, 0, %v221_v34  ;;  %v320_v43 = vld [vmem:[%s4694_s28 + $0x78] sm:$0xf]  ;;  %v4453_v34 = vld [vmem:[#allocation2 + $0x124] sm:$0xf0]  }
  0x72   : > { %202 = vst [vmem:[#allocation2 + $0xdc] sm:$0x8] %v201_v47  ;;  %v4445_v47 = vld [vmem:[#allocation2 + $0x64] sm:$0xf0]  }
  0x73   : > { %973 = vrot.lane.b32.xlu1 %v919_v40, %s4609_s30  ;;  %v215_v40 = vld [vmem:[#allocation2 + $0x154] sm:$0x8]  ;;  %223 = vst [vmem:[#allocation2 + $0x184] sm:$0x8] %v222_v42 }
  0x74   : > { %v216_v37 = vsel %vm4882_vm7, 0, %v215_v40  ;;  %353 = vst.msk [vmem:[#allocation2 + $0x188] sm:$0xf] %vm284_vm0, %v320_v43 }
  0x75   : > { %217 = vst [vmem:[#allocation2 + $0x154] sm:$0x8] %v216_v37 }
  0x76   : > { %977 = vrot.lane.b32.xlu0 %v922_v54, %s4609_s30  ;;  %v209_v54 = vld [vmem:[#allocation2 + $0x124] sm:$0x8] }
  0x77   : > { %v210_v36 = vsel %vm4882_vm7, 0, %v209_v54  ;;  %v5025_v54 = vld [vmem:[#allocation2 + $0x80] sm:$0xff]  }
  0x78   : > { %211 = vst [vmem:[#allocation2 + $0x124] sm:$0x8] %v210_v36  ;;  %v4068_v36 = vunpack.c.h.b16 %v5025_v54 }
  0x79   : > { %981 = vrot.lane.b32.xlu2 %v925_v60, %s4609_s30  ;;  %v418_v60 = vld [vmem:[#allocation2 + $0x178] sm:$0x1] }
  0x7a   : > { %v883_v0 = vunpack.c.l.b16 %v418_v60  ;;  %v4351_v41 = vld [vmem:[#allocation2 + $0x184] sm:$0x8] }
  0x7b   : > { %979 = vrot.lane.b32.xlu1 %v924_v9, %s4609_s30  ;;  %v3996_v9 = vunpack.c.h.b16 %v4730_v25 }
  0x7c   : > { %v899_v10 = vpack.c.b16 %v883_v0, %v883_v0  ;;  %v1118_v0 = vpack.c.b16 %v4068_v36, %v4068_v36 }
  0x7d   : > { %v649_v15 = vpack.c.b16 %v3996_v9, %v3996_v9 }
  0x7e   : > { %983 = vrot.lane.b32.xlu0 %v927_v14, %s4609_s30  ;;  %v942_v14 = vsel %vm900_vm4, %v940_v63, %v941_v3  ;;  %v947_v25 = vrot.slane %v899_v10, 5  ;;  %v4311_v3 = vld [vmem:[#allocation2 + $0x94] sm:$0x8]  ;;  %v4315_v10 = vld [vmem:[#allocation2 + $0xac] sm:$0x8] }
  0x80   : > { %v948_v32 = vsel %vm900_vm4, %v946_v16, %v947_v25  ;;  %v4076_v25 = vunpack.c.h.b16 %v5047_v12 }
  0x81   : > { %987 = vrot.lane.b32.xlu2 %v930_v22, %s4609_s30  ;;  %v647_v22 = vpack.c.b16 %v3992_v44, %v3992_v44  ;;  %v4319_v44 = vld [vmem:[#allocation2 + $0xc4] sm:$0x8] }
  0x83   : > { %985 = vrot.lane.b32.xlu1 %v928_v11, %s4609_s30  ;;  %v4936_v33 = vpop.permute.xlu2 %828  ;;  %v944_v11 = vrot.slane %v898_v2, 5 }
  0x84   : > { %6527 = vst [vmem:[#allocation8_spill] sm:$0xff] %v4936_v33 }
  0x85   : > { %v945_v18 = vsel %vm900_vm4, %v943_v5, %v944_v11 }
  0x86   : > { %989 = vrot.lane.b32.xlu0 %v931_v30, %s4609_s30  ;;  %v4292_v30 = vor.u32 %v4442_v26, %v4291_v23  ;;  %v5061_v23 = vld [vmem:[#allocation2 + $0xe0] sm:$0xff]   ;;  %v1122_v26 = vpack.c.b16 %v4076_v25, %v4076_v25 }
  0x89   : > { %993 = vrot.lane.b32.xlu2 %v934_v38, %s4609_s30 }
  0x8b   : > { %991 = vrot.lane.b32.xlu1 %v933_v46, %s4609_s30  ;;  %v4950_v49 = vpop.permute.xlu2 %830  ;;  %v4303_v46 = vld [vmem:[#allocation2 + $0x64] sm:$0x8] }
  0x8c   : > { %6528 = vst [vmem:[#allocation9_spill] sm:$0xff] %v4950_v49  ;;  %v4304_v6 = vor.u32 %v4445_v47, %v4303_v46  ;;  %v4450_v46 = vld [vmem:[#allocation2 + $0xdc] sm:$0xf0]  }
  0x8e   : > { %995 = vrot.lane.b32.xlu0 %v936_v50, %s4609_s30  ;;  %v4307_v50 = vld [vmem:[#allocation2 + $0x7c] sm:$0x8] }
  0x8f   : > { %v4308_v57 = vor.u32 %v4446_v51, %v4307_v50  ;;  %v4327_v51 = vld [vmem:[#allocation2 + $0xf4] sm:$0x8] }
  0x91   : > { %999 = vrot.lane.b32.xlu2 %v939_v56, %s4609_s30 }
  0x93   : > { %997 = vrot.lane.b32.xlu1 %v937_v19, %s4609_s30  ;;  %v4962_v1 = vpop.permute.xlu2 %836  ;;  %v5018_v19 = vld [vmem:[#allocation2 + $0x68] sm:$0xff]  }
  0x94   : > { %6529 = vst [vmem:[#allocation10_spill] sm:$0xff] %v4962_v1  ;;  %v4064_v53 = vunpack.c.h.b16 %v5018_v19  ;;  %v5164_v1 = vld [vmem:[#allocation2 + $0x50] sm:$0xff]  }
  0x95   : > { %v4966_v62 = vpop.permute.xlu0 %820 }
  0x96   : > { %1001 = vrot.lane.b32.xlu0 %v940_v63, %s4609_s30  ;;  %6530 = vst [vmem:[#allocation11_spill] sm:$0xff] %v4966_v62  ;;  %v1116_v60 = vpack.c.b16 %v4064_v53, %v4064_v53  ;;  %v4072_v63 = vunpack.c.h.b16 %v5031_v59  ;;  %v4451_v53 = vld [vmem:[#allocation2 + $0xf4] sm:$0xf0]  }
  0x98   : > { %v5042_v8 = vpack.c.b16 %v4072_v63, %v4072_v63  ;;  %v4328_v63 = vor.u32 %v4451_v53, %v4327_v51  ;;  %v5111_v51 = vld [vmem:[#allocation2 + $0x140] sm:$0xff]  }
  0x99   : > { %1005 = vrot.lane.b32.xlu2 %v943_v5, %s4609_s30  ;;  %v4447_v5 = vld [vmem:[#allocation2 + $0x94] sm:$0xf0]  }
  0x9a   : > { %6538 = vst [vmem:[#allocation19_spill] sm:$0xff] %v5042_v8  ;;  %v4312_v9 = vor.u32 %v4447_v5, %v4311_v3  ;;  %v4452_v3 = vld [vmem:[#allocation2 + $0x10c] sm:$0xf0]  }
  0x9b   : > { %1003 = vrot.lane.b32.xlu1 %v942_v14, %s4609_s30  ;;  %v4978_v17 = vpop.permute.xlu2 %842  ;;  %v4316_v14 = vor.u32 %v4448_v58, %v4315_v10  ;;  %v5088_v10 = vld [vmem:[#allocation2 + $0x110] sm:$0xff]  }
  0x9d   : > { %v4981_v21 = vpop.permute.xlu1 %824 }
  0x9e   : > { %6531 = vst [vmem:[#allocation12_spill] sm:$0xff] %v4981_v21  ;;  %v4985_v13 = vsel %vm2069_vm8, %v649_v15, %v4981_v21  ;;  %1007 = vrot.lane.b32.xlu0 %v945_v18, %s4609_s30  ;;  %v5055_v18 = vld [vmem:[#allocation2 + $0xc8] sm:$0xff]  }
  0x9f   : > { %6532 = vst [vmem:[#allocation13_spill] sm:$0xff] %v4985_v13  ;;  %v4080_v4 = vunpack.c.h.b16 %v5055_v18  ;;  %v1254_v13 = vshrl.u32 %v5025_v54, 16  ;;  %v1281_v21 = vshll.u32 %v5055_v18, 16 }
  0xa0   : > { %v4990_v27 = vpop.permute.xlu0 %822 }
  0xa1   : > { %6533 = vst [vmem:[#allocation14_spill] sm:$0xff] %v4990_v27  ;;  %v4994_v28 = vsel %vm2069_vm8, %v647_v22, %v4990_v27  ;;  %1011 = vrot.lane.b32.xlu2 %v948_v32, %s4609_s30  ;;  %v1124_v31 = vpack.c.b16 %v4080_v4, %v4080_v4 }
  0xa2   : > { %6534 = vst [vmem:[#allocation15_spill] sm:$0xff] %v4994_v28 }
  0xa3   : > { %1009 = vrot.lane.b32.xlu1 %v946_v16, %s4609_s30  ;;  %v4998_v40 = vpop.permute.xlu2 %848 }
  0xa5   : > { %v5000_v35 = vpop.permute.xlu1 %826 }
  0xa6   : > { %v5004_v37 = vsel %vm2069_vm8, %v651_v20, %v5000_v35  ;;  %1141 = vrot.lane.b32.xlu0 %v4292_v30, %s4610_s4  ;;  %v4084_v30 = vunpack.c.h.b16 %v5061_v23 }
  0xa8   : > { %v5007_v38 = vpop.permute.xlu0 %832 }
  0xa9   : > { %1145 = vrot.lane.b32.xlu2 %v4296_v48, %s4610_s4 }
  0xab   : > { %1143 = vrot.lane.b32.xlu1 %v647_v22, %s4610_s4  ;;  %v5011_v39 = vpop.permute.xlu2 %951 }
  0xac   : > { %6535 = vst [vmem:[#allocation16_spill] sm:$0xff] %v5011_v39 }
  0xad   : > { %v5013_v29 = vpop.permute.xlu1 %834 }
  0xae   : > { %1147 = vrot.lane.b32.xlu0 %v649_v15, %s4610_s4  ;;  %v4449_v15 = vld [vmem:[#allocation2 + $0xc4] sm:$0xf0]  }
  0xaf   : > { %v4320_v32 = vor.u32 %v4449_v15, %v4319_v44  ;;  %v4092_v44 = vunpack.c.h.b16 %v5088_v10  ;;  %v5094_v15 = vld [vmem:[#allocation2 + $0x128] sm:$0xff]  }
  0xb0   : > { %v5016_v55 = vpop.permute.xlu0 %838  ;;  %v4096_v4 = vunpack.c.h.b16 %v5094_v15  ;;  %v1310_v28 = vshrl.u32 %v5094_v15, 16 }
  0xb1   : > { %1151 = vrot.lane.b32.xlu2 %v651_v20, %s4610_s4 }
  0xb2   : > { %v1132_v43 = vpack.c.b16 %v4096_v4, %v4096_v4 }
  0xb3   : > { %1149 = vrot.lane.b32.xlu1 %v4300_v45, %s4610_s4  ;;  %v5022_v52 = vpop.permute.xlu2 %957  ;;  %v4323_v45 = vld [vmem:[#allocation2 + $0xdc] sm:$0x8] }
  0xb4   : > { %6536 = vst [vmem:[#allocation17_spill] sm:$0xff] %v5022_v52  ;;  %v4324_v50 = vor.u32 %v4450_v46, %v4323_v45  ;;  %v4339_v46 = vld [vmem:[#allocation2 + $0x13c] sm:$0x8]  ;;  %v1270_v52 = vshrl.u32 %v5047_v12, 16 }
  0xb5   : > { %v5027_v56 = vpop.permute.xlu1 %840 }
  0xb6   : > { %1153 = vrot.lane.b32.xlu0 %v4304_v6, %s4610_s4  ;;  %v1126_v6 = vpack.c.b16 %v4084_v30, %v4084_v30 }
  0xb8   : > { %v5033_v61 = vpop.permute.xlu0 %844 }
  0xb9   : > { %6537 = vst [vmem:[#allocation18_spill] sm:$0xff] %v5033_v61  ;;  %1157 = vrot.lane.b32.xlu2 %v4308_v57, %s4610_s4  ;;  %v321_v57 = vld [vmem:[%s4694_s28 + $0x7c] sm:$0xf]  ;;  %s3949_s28 = sshll.u32 %s161_s27, 5 }
  0xba   : > { %354 = vst.msk [vmem:[#allocation2 + $0x18c] sm:$0xf] %vm284_vm0, %v321_v57  ;;  %v4343_v57 = vld [vmem:[#allocation2 + $0x154] sm:$0x8]  ;;  %vm2508_vm0 = vcmask 261120   ;;  %s6289_s30 = scalar_lea.vmem [#allocation3], %s3949_s28 }
  0xbb   : > { %1155 = vrot.lane.b32.xlu1 %v1116_v60, %s4610_s4  ;;  %v5038_v2 = vpop.permute.xlu2 %963  ;;  %v5080_v60 = vld [vmem:[#allocation2 + $0xf8] sm:$0xff]  }
  0xbc   : > { %v1294_v61 = vshrl.u32 %v5080_v60, 16 }
  0xbd   : > { %v5040_v7 = vpop.permute.xlu1 %846 }
  0xbe   : > { %1159 = vrot.lane.b32.xlu0 %v1118_v0, %s4610_s4  ;;  %v4331_v0 = vld [vmem:[#allocation2 + $0x10c] sm:$0x8] }
  0xc0   : > { %v5045_v11 = vpop.permute.xlu0 %850 }
  0xc1   : > { %1163 = vrot.lane.b32.xlu2 %v5042_v8, %s4610_s4  ;;  %v5147_v39 = vld [vmem:[#allocation2 + $0x188] sm:$0xff]  }
  0xc3   : > { %1161 = vrot.lane.b32.xlu1 %v4312_v9, %s4610_s4  ;;  %v5052_v16 = vpop.permute.xlu2 %969  ;;  %v4088_v9 = vunpack.c.h.b16 %v5080_v60 }
  0xc4   : > { %6539 = vst [vmem:[#allocation20_spill] sm:$0xff] %v5052_v16 }
  0xc5   : > { %v5057_v22 = vpop.permute.xlu1 %949  ;;  %v5096_v25 = vpack.c.b16 %v4088_v9, %v4088_v9  ;;  %v5118_v9 = vld [vmem:[#allocation2 + $0x158] sm:$0xff]  }
  0xc6   : > { %6540 = vst [vmem:[#allocation21_spill] sm:$0xff] %v5057_v22  ;;  %1165 = vrot.lane.b32.xlu0 %v4316_v14, %s4610_s4  ;;  %v4332_v14 = vor.u32 %v4452_v3, %v4331_v0  ;;  %v4100_v3 = vunpack.c.h.b16 %v5111_v51  ;;  %v4104_v4 = vunpack.c.h.b16 %v5118_v9 }
  0xc7   : > { %6548 = vst [vmem:[#allocation29_spill] sm:$0xff] %v5118_v9 }
  0xc8   : > { %v5063_v20 = vpop.permute.xlu0 %953 }
  0xc9   : > { %6541 = vst [vmem:[#allocation22_spill] sm:$0xff] %v5063_v20  ;;  %1169 = vrot.lane.b32.xlu2 %v4320_v32, %s4610_s4  ;;  %v1342_v20 = vshrl.u32 %v5147_v39, 16 }
  0xcb   : > { %1167 = vrot.lane.b32.xlu1 %v1122_v26, %s4610_s4  ;;  %v5068_v48 = vpop.permute.xlu2 %975  ;;  %v1130_v26 = vpack.c.b16 %v4092_v44, %v4092_v44 }
  0xcd   : > { %v5073_v47 = vpop.permute.xlu1 %955 }
  0xce   : > { %6542 = vst [vmem:[#allocation23_spill] sm:$0xff] %v5073_v47  ;;  %1171 = vrot.lane.b32.xlu0 %v1124_v31, %s4610_s4  ;;  %v4335_v31 = vld [vmem:[#allocation2 + $0x124] sm:$0x8]  ;;  %v1329_v47 = vshll.u32 %v5118_v9, 16 }
  0xcf   : > { %v4336_v45 = vor.u32 %v4453_v34, %v4335_v31  ;;  %v1134_v31 = vpack.c.b16 %v4100_v3, %v4100_v3  ;;  %v1222_v3 = vshrl.u32 %v5139_v24, 16 }
  0xd0   : > { %v5078_v36 = vpop.permute.xlu0 %959 }
  0xd1   : > { %6543 = vst [vmem:[#allocation24_spill] sm:$0xff] %v5078_v36  ;;  %1175 = vrot.lane.b32.xlu2 %v1126_v6, %s4610_s4  ;;  %v4454_v6 = vld [vmem:[#allocation2 + $0x13c] sm:$0xf0]  }
  0xd2   : > { %v4340_v53 = vor.u32 %v4454_v6, %v4339_v46  ;;  %v4347_v6 = vld [vmem:[#allocation2 + $0x16c] sm:$0x8] }
  0xd3   : > { %1173 = vrot.lane.b32.xlu1 %v4324_v50, %s4610_s4  ;;  %v5085_v5 = vpop.permute.xlu2 %981 }
  0xd4   : > { %6544 = vst [vmem:[#allocation25_spill] sm:$0xff] %v5085_v5 }
  0xd5   : > { %v5090_v58 = vpop.permute.xlu1 %961 }
  0xd6   : > { %1177 = vrot.lane.b32.xlu0 %v4328_v63, %s4610_s4  ;;  %v4455_v63 = vld [vmem:[#allocation2 + $0x154] sm:$0xf0]  }
  0xd7   : > { %v4344_v44 = vor.u32 %v4455_v63, %v4343_v57  ;;  %v4456_v57 = vld [vmem:[#allocation2 + $0x16c] sm:$0xf0]  }
  0xd8   : > { %v5098_v32 = vpop.permute.xlu0 %965 }
  0xd9   : > { %6545 = vst [vmem:[#allocation26_spill] sm:$0xff] %v5098_v32  ;;  %1181 = vrot.lane.b32.xlu2 %v4332_v14, %s4610_s4  ;;  %v5151_v32 = vld [vmem:[#allocation2 + $0x38] sm:$0xff]  }
  0xda   : > { %v1230_v33 = vshrl.u32 %v5151_v32, 16  ;;  %v1233_v8 = vshll.u32 %v5151_v32, 16 }
  0xdb   : > { %1179 = vrot.lane.b32.xlu1 %v5096_v25, %s4610_s4  ;;  %v5104_v30 = vpop.permute.xlu2 %987 }
  0xdd   : > { %v5106_v42 = vpop.permute.xlu1 %967 }
  0xde   : > { %6546 = vst [vmem:[#allocation27_spill] sm:$0xff] %v5106_v42  ;;  %1183 = vrot.lane.b32.xlu0 %v1130_v26, %s4610_s4  ;;  %v5124_v26 = vld [vmem:[#allocation2 + $0x170] sm:$0xff]  }
  0xe0   : > { %v5109_v50 = vpop.permute.xlu0 %971 }
  0xe1   : > { %6547 = vst [vmem:[#allocation28_spill] sm:$0xff] %v5109_v50  ;;  %1187 = vrot.lane.b32.xlu2 %v1132_v43, %s4610_s4  ;;  %v4108_v43 = vunpack.c.h.b16 %v5124_v26  ;;  %v1241_v50 = vshll.u32 %v5164_v1, 16 }
  0xe3   : > { %1185 = vrot.lane.b32.xlu1 %v4336_v45, %s4610_s4  ;;  %v5115_v0 = vpop.permute.xlu2 %993  ;;  %v5130_v45 = vpack.c.b16 %v4104_v4, %v4104_v4  ;;  %v5137_v63 = vpack.c.b16 %v4108_v43, %v4108_v43  ;;  %v4348_v4 = vor.u32 %v4456_v57, %v4347_v6  ;;  %v1224_v43 = vrot.slane %v1222_v3, 4 }
  0xe4   : > { %v4112_v57 = vunpack.c.h.b16 %v5147_v39  ;;  %v1249_v3 = vshll.u32 %v5018_v19, 16 }
  0xe5   : > { %v5120_v14 = vpop.permute.xlu1 %973  ;;  %6549 = vst [vmem:[#allocation30_spill] sm:$0xff] %v5130_v45 }
  0xe6   : > { %1189 = vrot.lane.b32.xlu0 %v4340_v53, %s4610_s4  ;;  %6551 = vst [vmem:[#allocation32_spill] sm:$0xff] %v5137_v63 }
  0xe8   : > { %v5126_v34 = vpop.permute.xlu0 %977 }
  0xe9   : > { %1193 = vrot.lane.b32.xlu2 %v4344_v44, %s4610_s4  ;;  %v1225_v44 = vshll.u32 %v5139_v24, 16 }
  0xeb   : > { %1191 = vrot.lane.b32.xlu1 %v1134_v31, %s4610_s4  ;;  %v5133_v46 = vpop.permute.xlu2 %999  ;;  %v4457_v31 = vld [vmem:[#allocation2 + $0x184] sm:$0xf0]   ;;  %v1227_v22 = vrot.slane %v1225_v44, 5  ;;  %v1235_v44 = vrot.slane %v1233_v8, 5 }
  0xec   : > { %6550 = vst [vmem:[#allocation31_spill] sm:$0xff] %v5133_v46  ;;  %v4352_v62 = vor.u32 %v4457_v31, %v4351_v41  ;;  %v1232_v41 = vrot.slane %v1230_v33, 4  ;;  %v1140_v31 = vpack.c.b16 %v4112_v57, %v4112_v57  ;;  %v1257_v33 = vshll.u32 %v5025_v54, 16 }
  0xed   : > { %v5135_v53 = vpop.permute.xlu1 %979  ;;  %v1228_v5 = vor.u32 %v1227_v22, %v1224_v43  ;;  %v1251_v43 = vrot.slane %v1249_v3, 5  ;;  %v1243_v57 = vrot.slane %v1241_v50, 5  ;;  %v1272_v50 = vrot.slane %v1270_v52, 4 }
  0xee   : > { %1195 = vrot.lane.b32.xlu0 %v5130_v45, %s4610_s4  ;;  %v1236_v49 = vor.u32 %v1235_v44, %v1232_v41  ;;  %v1259_v3 = vrot.slane %v1257_v33, 5  ;;  %v1262_v44 = vshrl.u32 %v5031_v59, 16 }
  0xf0   : > { %v5145_v42 = vpop.permute.xlu0 %983 }
  0xf1   : > { %6552 = vst [vmem:[#allocation33_spill] sm:$0xff] %v5145_v42  ;;  %1199 = vrot.lane.b32.xlu2 %v5137_v63, %s4610_s4  ;;  %v1246_v63 = vshrl.u32 %v5018_v19, 16 }
  0xf3   : > { %1197 = vrot.lane.b32.xlu1 %v4348_v4, %s4610_s4  ;;  %v5156_v6 = vpop.permute.xlu2 %1005  ;;  %v1238_v4 = vshrl.u32 %v5164_v1, 16  ;;  %v1248_v22 = vrot.slane %v1246_v63, 4  ;;  %v1256_v63 = vrot.slane %v1254_v13, 4  ;;  %v1264_v13 = vrot.slane %v1262_v44, 4 }
  0xf4   : > { %v1296_v44 = vrot.slane %v1294_v61, 4  ;;  %v1321_v61 = vshll.u32 %v5111_v51, 16 }
  0xf5   : > { %v5159_v42 = vpop.permute.xlu1 %985  ;;  %v1240_v8 = vrot.slane %v1238_v4, 4  ;;  %v1252_v45 = vor.u32 %v1251_v43, %v1248_v22  ;;  %v1260_v22 = vor.u32 %v1259_v3, %v1256_v63  ;;  %v1278_v43 = vshrl.u32 %v5055_v18, 16 }
  0xf6   : > { %1201 = vrot.lane.b32.xlu0 %v4352_v62, %s4610_s4  ;;  %v1286_v3 = vshrl.u32 %v5061_v23, 16 }
  0xf7   : > { %v1244_v41 = vor.u32 %v1243_v57, %v1240_v8  ;;  %v1280_v52 = vrot.slane %v1278_v43, 4 }
  0xf8   : > { %v5168_v16 = vpop.permute.xlu0 %989 }
  0xf9   : > { %1349 = vrot.lane.b32.xlu2 %v1228_v5, %s4611_s5  ;;  %v1273_v5 = vshll.u32 %v5047_v12, 16 }
  0xfb   : > { %1203 = vrot.lane.b32.xlu1 %v1140_v31, %s4610_s4  ;;  %v5174_v62 = vpop.permute.xlu2 %1011  ;;  %v1265_v31 = vshll.u32 %v5031_v59, 16  ;;  %v1275_v4 = vrot.slane %v1273_v5, 5  ;;  %v1283_v5 = vrot.slane %v1281_v21, 5 }
  0xfd   : > { %v5176_v36 = vpop.permute.xlu1 %991  ;;  %v1267_v33 = vrot.slane %v1265_v31, 5  ;;  %v1276_v57 = vor.u32 %v1275_v4, %v1272_v50  ;;  %v1284_v50 = vor.u32 %v1283_v5, %v1280_v52  ;;  %v1302_v4 = vshrl.u32 %v5088_v10, 16 }
  0xfe   : > { %1351 = vrot.lane.b32.xlu0 %v1236_v49, %s4611_s5 }
  0xff   : > { %v5196_v63 = vor.u32 %v1267_v33, %v1264_v13 }
 0x100   : > { %v5183_v46 = vpop.permute.xlu0 %995 }
 0x101   : > { %1355 = vrot.lane.b32.xlu2 %v1252_v45, %s4611_s5  ;;  %v1297_v45 = vshll.u32 %v5080_v60, 16  ;;  %6555 = vst [vmem:[#allocation36_spill] sm:$0xff] %v5196_v63 }
 0x103   : > { %1353 = vrot.lane.b32.xlu1 %v1244_v41, %s4611_s5  ;;  %v5189_v49 = vpop.permute.xlu2 %1145  ;;  %v1289_v41 = vshll.u32 %v5061_v23, 16  ;;  %v1299_v31 = vrot.slane %v1297_v45, 5  ;;  %v1304_v45 = vrot.slane %v1302_v4, 4 }
 0x104   : > { %6553 = vst [vmem:[#allocation34_spill] sm:$0xff] %v5189_v49 }
 0x105   : > { %v5191_v8 = vpop.permute.xlu1 %997  ;;  %v1291_v43 = vrot.slane %v1289_v41, 5  ;;  %v5211_v33 = vor.u32 %v1299_v31, %v1296_v44  ;;  %v1323_v41 = vrot.slane %v1321_v61, 5  ;;  %v1326_v31 = vshrl.u32 %v5118_v9, 16 }
 0x106   : > { %6554 = vst [vmem:[#allocation35_spill] sm:$0xff] %v5191_v8  ;;  %1357 = vrot.lane.b32.xlu0 %v1260_v22, %s4611_s5  ;;  %v1305_v8 = vshll.u32 %v5088_v10, 16  ;;  %v1288_v22 = vrot.slane %v1286_v3, 4  ;;  %v1331_v61 = vrot.slane %v1329_v47, 5 }
 0x107   : > { %6557 = vst [vmem:[#allocation38_spill] sm:$0xff] %v5211_v33 }
 0x108   : > { %v5200_v49 = vpop.permute.xlu0 %1001  ;;  %v1307_v52 = vrot.slane %v1305_v8, 5  ;;  %v1292_v5 = vor.u32 %v1291_v43, %v1288_v22 }
 0x109   : > { %1361 = vrot.lane.b32.xlu2 %v1276_v57, %s4611_s5  ;;  %v1318_v57 = vshrl.u32 %v5111_v51, 16 }
 0x10a   : > { %v1308_v44 = vor.u32 %v1307_v52, %v1304_v45  ;;  %v1334_v52 = vshrl.u32 %v5124_v26, 16 }
 0x10b   : > { %1359 = vrot.lane.b32.xlu1 %v5196_v63, %s4611_s5  ;;  %v5207_v21 = vpop.permute.xlu2 %1151  ;;  %v1313_v63 = vshll.u32 %v5094_v15, 16  ;;  %v1320_v3 = vrot.slane %v1318_v57, 4  ;;  %v1328_v57 = vrot.slane %v1326_v31, 4 }
 0x10c   : > { %6556 = vst [vmem:[#allocation37_spill] sm:$0xff] %v5207_v21  ;;  %v1336_v47 = vrot.slane %v1334_v52, 4  ;;  %v1429_v52 = vrot.slane %v5139_v24, 5 }
 0x10d   : > { %v5209_v13 = vpop.permute.xlu1 %1003  ;;  %v1315_v4 = vrot.slane %v1313_v63, 5  ;;  %v1324_v43 = vor.u32 %v1323_v41, %v1320_v3  ;;  %v467_v3 = vld [vmem:[#allocation2 + $0x28] sm:$0x1]  ;;  %v5237_v41 = vor.u32 %v1331_v61, %v1328_v57 }
 0x10e   : > { %1363 = vrot.lane.b32.xlu0 %v1284_v50, %s4611_s5  ;;  %v1312_v50 = vrot.slane %v1310_v28, 4  ;;  %v1344_v28 = vrot.slane %v1342_v20, 4 }
 0x110   : > { %v5218_v21 = vpop.permute.xlu0 %1007  ;;  %v1316_v45 = vor.u32 %v1315_v4, %v1312_v50  ;;  %v1397_v50 = vunpack.c.l.b16 %v467_v3  ;;  %v468_v4 = vld [vmem:[#allocation2 + $0x40] sm:$0x1] }
 0x111   : > { %1367 = vrot.lane.b32.xlu2 %v5211_v33, %s4611_s5  ;;  %v1345_v33 = vshll.u32 %v5147_v39, 16  ;;  %v4433_v39 = vld [vmem:[#allocation2 + $0xac] sm:$0xf0]  }
 0x112   : > { %v1413_v61 = vpack.c.b16 %v1397_v50, %v1397_v50  ;;  %v470_v50 = vld [vmem:[#allocation2 + $0x70] sm:$0x1] }
 0x113   : > { %1365 = vrot.lane.b32.xlu1 %v1292_v5, %s4611_s5  ;;  %v5225_v8 = vpop.permute.xlu2 %1157  ;;  %v1337_v5 = vshll.u32 %v5124_v26, 16  ;;  %v1347_v63 = vrot.slane %v1345_v33, 5  ;;  %v1398_v33 = vunpack.c.l.b16 %v468_v4  ;;  %v1435_v4 = vrot.slane %v5164_v1, 5  ;;  %v472_v1 = vld [vmem:[#allocation2 + $0xa0] sm:$0x1] }
 0x114   : > { %6558 = vst [vmem:[#allocation39_spill] sm:$0xff] %v5225_v8  ;;  %v4255_v8 = vld [vmem:[#allocation2 + $0xac] sm:$0x8] }
 0x115   : > { %v5227_v22 = vpop.permute.xlu1 %1009  ;;  %v1339_v31 = vrot.slane %v1337_v5, 5  ;;  %v4256_v27 = vor.u32 %v4433_v39, %v4255_v8 }
 0x116   : > { %1369 = vrot.lane.b32.xlu0 %v1308_v44, %s4611_s5 }
 0x117   : > { %v5246_v20 = vor.u32 %v1339_v31, %v1336_v47 }
 0x118   : > { %v5234_v9 = vpop.permute.xlu0 %1141 }
 0x119   : > { %6559 = vst [vmem:[#allocation40_spill] sm:$0xff] %v5234_v9  ;;  %1373 = vrot.lane.b32.xlu2 %v1324_v43, %s4611_s5  ;;  %v1348_v9 = vor.u32 %v1347_v63, %v1344_v28  ;;  %v469_v43 = vld [vmem:[#allocation2 + $0x58] sm:$0x1]  ;;  %v1414_v63 = vpack.c.b16 %v1398_v33, %v1398_v33 }
 0x11a   : > { %6561 = vst [vmem:[#allocation42_spill] sm:$0xff] %v5246_v20  ;;  %v1399_v5 = vunpack.c.l.b16 %v469_v43  ;;  %v4267_v43 = vld [vmem:[#allocation2 + $0xf4] sm:$0x8] }
 0x11b   : > { %1371 = vrot.lane.b32.xlu1 %v1316_v45, %s4611_s5  ;;  %v5240_v44 = vpop.permute.xlu2 %1163  ;;  %v2107_v45 = vsel %vm2069_vm8, %v4256_v27, %v5013_v29  ;;  %v1432_v27 = vrot.slane %v5151_v32, 5  ;;  %v1433_v47 = vrot.slane %v1414_v63, 5 }
 0x11c   : > { %v2180_v8 = vsel %vm2150_vm9, %v2107_v45, %v5126_v34  ;;  %v1415_v24 = vpack.c.b16 %v1399_v5, %v1399_v5  ;;  %v1400_v5 = vunpack.c.l.b16 %v470_v50  ;;  %v1402_v50 = vunpack.c.l.b16 %v472_v1  ;;  %v4529_v1 = vld [vmem:[#allocation2 + $0xb0] sm:$0xff]  }
 0x11d   : > { %v5242_v26 = vpop.permute.xlu1 %1143  ;;  %v1434_v45 = vsel %vm900_vm4, %v1432_v27, %v1433_v47  ;;  %v1438_v47 = vrot.slane %v5018_v19, 5 }
 0x11e   : > { %6560 = vst [vmem:[#allocation41_spill] sm:$0xff] %v5242_v26  ;;  %1375 = vrot.lane.b32.xlu0 %v5237_v41, %s4611_s5  ;;  %v1436_v33 = vrot.slane %v1415_v24, 5  ;;  %v1418_v19 = vpack.c.b16 %v1402_v50, %v1402_v50  ;;  %v4279_v50 = vld [vmem:[#allocation2 + $0x13c] sm:$0x8] }
 0x120   : > { %v5248_v57 = vpop.permute.xlu0 %1147 }
 0x121   : > { %1379 = vrot.lane.b32.xlu2 %v1348_v9, %s4611_s5  ;;  %v1430_v9 = vrot.slane %v1413_v61, 5  ;;  %v4436_v61 = vld [vmem:[#allocation2 + $0xf4] sm:$0xf0]  }
 0x122   : > { %v4268_v63 = vor.u32 %v4436_v61, %v4267_v43 }
 0x123   : > { %1377 = vrot.lane.b32.xlu1 %v5246_v20, %s4611_s5  ;;  %v1170_v28 = vpop.permute.xlu2 %1169  ;;  %v1431_v31 = vsel %vm900_vm4, %v1429_v52, %v1430_v9  ;;  %v1416_v20 = vpack.c.b16 %v1400_v5, %v1400_v5 }
 0x124   : > { %v5259_v3 = vsel %vm2215_vm10, %v2180_v8, %v1170_v28  ;;  %v471_v8 = vld [vmem:[#allocation2 + $0x88] sm:$0x1] }
 0x125   : > { %v5261_v39 = vpop.permute.xlu1 %1149  ;;  %v1401_v9 = vunpack.c.l.b16 %v471_v8 }
 0x126   : > { %1477 = vrot.lane.b32.xlu0 %v1429_v52, %s4612_s6  ;;  %v1437_v52 = vsel %vm900_vm4, %v1435_v4, %v1436_v33 }
 0x127   : > { %v1417_v61 = vpack.c.b16 %v1401_v9, %v1401_v9 }
 0x128   : > { %v5265_v34 = vpop.permute.xlu0 %1153 }
 0x129   : > { %1481 = vrot.lane.b32.xlu2 %v1432_v27, %s4612_s6  ;;  %v2122_v27 = vsel %vm2069_vm8, %v4268_v63, %v5027_v56  ;;  %v1441_v63 = vrot.slane %v5025_v54, 5  ;;  %v5301_v54 = vrot.slane %v5031_v59, 5 }
 0x12a   : > { %v2192_v43 = vsel %vm2150_vm9, %v2122_v27, %v5168_v16  ;;  %v4016_v16 = vunpack.c.h.b16 %v4529_v1  ;;  %v1442_v27 = vrot.slane %v1417_v61, 5  ;;  %v474_v1 = vld [vmem:[#allocation2 + $0xd0] sm:$0x1] }
 0x12b   : > { %1479 = vrot.lane.b32.xlu1 %v1431_v31, %s4612_s6  ;;  %v5271_v32 = vpop.permute.xlu2 %1175  ;;  %v4527_v31 = vld [vmem:[#allocation2 + $0x110] sm:$0xff]  }
 0x12c   : > { %6562 = vst [vmem:[#allocation43_spill] sm:$0xff] %v5271_v32  ;;  %v4032_v26 = vunpack.c.h.b16 %v4527_v31 }
 0x12d   : > { %v5274_v28 = vpop.permute.xlu1 %1155 }
 0x12e   : > { %1483 = vrot.lane.b32.xlu0 %v1434_v45, %s4612_s6  ;;  %v4528_v45 = vld [vmem:[#allocation2 + $0x98] sm:$0xff]  }
 0x12f   : > { %v4012_v8 = vunpack.c.h.b16 %v4528_v45  ;;  %v4439_v45 = vld [vmem:[#allocation2 + $0x13c] sm:$0xf0]  }
 0x130   : > { %v5278_v24 = vpop.permute.xlu0 %1159 }
 0x131   : > { %6563 = vst [vmem:[#allocation44_spill] sm:$0xff] %v5278_v24  ;;  %1487 = vrot.lane.b32.xlu2 %v1437_v52, %s4612_s6  ;;  %v1439_v52 = vrot.slane %v1416_v20, 5  ;;  %v667_v24 = vpack.c.b16 %v4032_v26, %v4032_v26  ;;  %v1445_v26 = vrot.slane %v1418_v19, 5 }
 0x133   : > { %1485 = vrot.lane.b32.xlu1 %v1435_v4, %s4612_s6  ;;  %v1182_v33 = vpop.permute.xlu2 %1181  ;;  %v657_v4 = vpack.c.b16 %v4012_v8, %v4012_v8  ;;  %v1440_v9 = vsel %vm900_vm4, %v1438_v47, %v1439_v52  ;;  %v2129_v20 = vsel %vm2069_vm8, %v667_v24, %v4978_v17 }
 0x134   : > { %v5288_v5 = vsel %vm2215_vm10, %v2192_v43, %v1182_v33  ;;  %v473_v43 = vld [vmem:[#allocation2 + $0xb8] sm:$0x1]  ;;  %v659_v33 = vpack.c.b16 %v4016_v16, %v4016_v16  ;;  %v2198_v61 = vsel %vm2150_vm9, %v2129_v20, %v5183_v46 }
 0x135   : > { %6564 = vst [vmem:[#allocation45_spill] sm:$0xff] %v5288_v5  ;;  %v5290_v31 = vpop.permute.xlu1 %1161  ;;  %v2104_v52 = vsel %vm2069_vm8, %v657_v4, %v5007_v38  ;;  %v1403_v59 = vunpack.c.l.b16 %v473_v43  ;;  %v4280_v5 = vor.u32 %v4439_v45, %v4279_v50  ;;  %v1404_v4 = vunpack.c.l.b16 %v474_v1  ;;  %v4530_v45 = vld [vmem:[#allocation2 + $0x158] sm:$0xff]  }
 0x136   : > { %1489 = vrot.lane.b32.xlu0 %v1438_v47, %s4612_s6  ;;  %v1443_v47 = vsel %vm900_vm4, %v1441_v63, %v1442_v27  ;;  %v2178_v19 = vsel %vm2150_vm9, %v2104_v52, %v5068_v48  ;;  %v2109_v27 = vsel %vm2069_vm8, %v659_v33, %v5013_v29 }
 0x137   : > { %v2182_v43 = vsel %vm2150_vm9, %v2109_v27, %v5135_v53  ;;  %v1419_v48 = vpack.c.b16 %v1403_v59, %v1403_v59 }
 0x138   : > { %v5294_v32 = vpop.permute.xlu0 %1165 }
 0x139   : > { %1493 = vrot.lane.b32.xlu2 %v1441_v63, %s4612_s6  ;;  %v1446_v63 = vsel %vm900_vm4, %v5301_v54, %v1445_v26  ;;  %v2137_v26 = vsel %vm2069_vm8, %v4280_v5, %v5040_v7  ;;  %v1448_v59 = vrot.slane %v1419_v48, 5 }
 0x13a   : > { %v2204_v33 = vsel %vm2150_vm9, %v2137_v26, %v5200_v49 }
 0x13b   : > { %1491 = vrot.lane.b32.xlu1 %v1440_v9, %s4612_s6  ;;  %v1188_v8 = vpop.permute.xlu2 %1187  ;;  %v475_v9 = vld [vmem:[#allocation2 + $0xe8] sm:$0x1] }
 0x13c   : > { %v5310_v24 = vsel %vm2215_vm10, %v2198_v61, %v1188_v8  ;;  %v4044_v61 = vunpack.c.h.b16 %v4530_v45  ;;  %v1447_v8 = vrot.slane %v5047_v12, 5  ;;  %v1405_v29 = vunpack.c.l.b16 %v475_v9 }
 0x13d   : > { %v1168_v16 = vpop.permute.xlu1 %1167 }
 0x13e   : > { %v5315_v46 = vsel %vm2215_vm10, %v2178_v19, %v1168_v16  ;;  %1495 = vrot.lane.b32.xlu0 %v1443_v47, %s4612_s6  ;;  %v1420_v47 = vpack.c.b16 %v1404_v4, %v1404_v4  ;;  %v1450_v19 = vrot.slane %v5055_v18, 5  ;;  %v673_v5 = vpack.c.b16 %v4044_v61, %v4044_v61  ;;  %v4531_v16 = vld [vmem:[#allocation2 + $0xf8] sm:$0xff]   ;;  %v476_v4 = vld [vmem:[#allocation2 + $0x100] sm:$0x1] }
 0x13f   : > { %v1421_v12 = vpack.c.b16 %v1405_v29, %v1405_v29  ;;  %v1449_v9 = vsel %vm900_vm4, %v1447_v8, %v1448_v59  ;;  %v1406_v29 = vunpack.c.l.b16 %v476_v4 }
 0x140   : > { %v1172_v20 = vpop.permute.xlu0 %1171  ;;  %v1451_v49 = vrot.slane %v1420_v47, 5  ;;  %v4437_v47 = vld [vmem:[#allocation2 + $0x10c] sm:$0xf0]  }
 0x141   : > { %v5325_v50 = vsel %vm2215_vm10, %v2182_v43, %v1172_v20  ;;  %1499 = vrot.lane.b32.xlu2 %v1446_v63, %s4612_s6  ;;  %v4028_v63 = vunpack.c.h.b16 %v4531_v16  ;;  %v2144_v43 = vsel %vm2069_vm8, %v673_v5, %v4998_v40  ;;  %v1453_v20 = vrot.slane %v5061_v23, 5 }
 0x142   : > { %v1454_v18 = vrot.slane %v1421_v12, 5  ;;  %v2210_v45 = vsel %vm2150_vm9, %v2144_v43, %v5218_v21  ;;  %v1452_v26 = vsel %vm900_vm4, %v1450_v19, %v1451_v49  ;;  %v4239_v49 = vld [vmem:[#allocation2 + $0x4c] sm:$0x8]  ;;  %v5369_v43 = vrot.slane %v5080_v60, 5 }
 0x143   : > { %1497 = vrot.lane.b32.xlu1 %v5301_v54, %s4612_s6  ;;  %v1194_v53 = vpop.permute.xlu2 %1193  ;;  %v665_v48 = vpack.c.b16 %v4028_v63, %v4028_v63  ;;  %v1422_v63 = vpack.c.b16 %v1406_v29, %v1406_v29 }
 0x144   : > { %v5336_v52 = vsel %vm2215_vm10, %v2204_v33, %v1194_v53  ;;  %v477_v33 = vld [vmem:[#allocation2 + $0x118] sm:$0x1]  ;;  %v4271_v53 = vld [vmem:[#allocation2 + $0x10c] sm:$0x8]  ;;  %v1455_v23 = vsel %vm900_vm4, %v1453_v20, %v1454_v18 }
 0x145   : > { %v5338_v1 = vpop.permute.xlu1 %1173  ;;  %v2124_v21 = vsel %vm2069_vm8, %v665_v48, %v5027_v56  ;;  %v1407_v5 = vunpack.c.l.b16 %v477_v33  ;;  %v4272_v12 = vor.u32 %v4437_v47, %v4271_v53  ;;  %v1459_v33 = vrot.slane %v5088_v10, 5  ;;  %v4532_v53 = vld [vmem:[#allocation2 + $0x140] sm:$0xff]  }
 0x146   : > { %1501 = vrot.lane.b32.xlu0 %v1447_v8, %s4612_s6  ;;  %v4040_v60 = vunpack.c.h.b16 %v4532_v53  ;;  %v4441_v53 = vld [vmem:[#allocation2 + $0x16c] sm:$0xf0]  }
 0x147   : > { %v1423_v18 = vpack.c.b16 %v1407_v5, %v1407_v5  ;;  %v4251_v5 = vld [vmem:[#allocation2 + $0x94] sm:$0x8] }
 0x148   : > { %v5342_v27 = vpop.permute.xlu0 %1177 }
 0x149   : > { %1505 = vrot.lane.b32.xlu2 %v1450_v19, %s4612_s6  ;;  %v2194_v19 = vsel %vm2150_vm9, %v2124_v21, %v5176_v36  ;;  %v2127_v36 = vsel %vm2069_vm8, %v4272_v12, %v4978_v17  ;;  %v4432_v12 = vld [vmem:[#allocation2 + $0x94] sm:$0xf0]  }
 0x14b   : > { %1503 = vrot.lane.b32.xlu1 %v1449_v9, %s4612_s6  ;;  %v1200_v61 = vpop.permute.xlu2 %1199  ;;  %v4429_v9 = vld [vmem:[#allocation2 + $0x4c] sm:$0xf0]  }
 0x14c   : > { %v5354_v8 = vsel %vm2215_vm10, %v2210_v45, %v1200_v61  ;;  %v4240_v48 = vor.u32 %v4429_v9, %v4239_v49  ;;  %v1457_v45 = vrot.slane %v1422_v63, 5  ;;  %v479_v61 = vld [vmem:[#allocation2 + $0x148] sm:$0x1] }
 0x14d   : > { %v5356_v59 = vpop.permute.xlu1 %1179 }
 0x14e   : > { %1507 = vrot.lane.b32.xlu0 %v1452_v26, %s4612_s6  ;;  %v2196_v26 = vsel %vm2150_vm9, %v2127_v36, %v5115_v0  ;;  %v2087_v17 = vsel %vm2069_vm8, %v4240_v48, %v5000_v35  ;;  %v1458_v0 = vsel %vm900_vm4, %v5369_v43, %v1457_v45  ;;  %v4252_v48 = vor.u32 %v4432_v12, %v4251_v5 }
 0x14f   : > { %v2164_v10 = vsel %vm2150_vm9, %v2087_v17, %v5090_v58  ;;  %v4533_v17 = vld [vmem:[#allocation2 + $0xe0] sm:$0xff]  }
 0x150   : > { %v1184_v16 = vpop.permute.xlu0 %1183  ;;  %v2229_v35 = vsel %vm2215_vm10, %v2164_v10, %v5265_v34  ;;  %v4435_v10 = vld [vmem:[#allocation2 + $0xdc] sm:$0xf0]  }
 0x151   : > { %v5365_v4 = vsel %vm2215_vm10, %v2194_v19, %v1184_v16  ;;  %1511 = vrot.lane.b32.xlu2 %v1455_v23, %s4612_s6  ;;  %v1409_v23 = vunpack.c.l.b16 %v479_v61  ;;  %v2166_v19 = vsel %vm2150_vm9, %v5004_v37, %v5038_v2  ;;  %v671_v16 = vpack.c.b16 %v4040_v60, %v4040_v60  ;;  %v4283_v37 = vld [vmem:[#allocation2 + $0x154] sm:$0x8]  ;;  %v4440_v2 = vld [vmem:[#allocation2 + $0x154] sm:$0xf0]  }
 0x152   : > { %v2231_v63 = vsel %vm2215_vm10, %v2166_v19, %v5274_v28  ;;  %v1465_v28 = vrot.slane %v5111_v51, 5  ;;  %v6518_v61 = vrot.slane %v5094_v15, 5  ;;  %v4024_v51 = vunpack.c.h.b16 %v4533_v17 }
 0x153   : > { %1509 = vrot.lane.b32.xlu1 %v1453_v20, %s4612_s6  ;;  %v5372_v56 = vpop.permute.xlu2 %1349  ;;  %v1460_v20 = vrot.slane %v1423_v18, 5  ;;  %v1425_v9 = vpack.c.b16 %v1409_v23, %v1409_v23  ;;  %v2139_v45 = vsel %vm2069_vm8, %v671_v16, %v5040_v7  ;;  %v2102_v23 = vsel %vm2069_vm8, %v4252_v48, %v5007_v38  ;;  %v4263_v7 = vld [vmem:[#allocation2 + $0xdc] sm:$0x8] }
 0x154   : > { %v2206_v60 = vsel %vm2150_vm9, %v2139_v45, %v5209_v13  ;;  %v2176_v5 = vsel %vm2150_vm9, %v2102_v23, %v5120_v14  ;;  %v663_v48 = vpack.c.b16 %v4024_v51, %v4024_v51 }
 0x155   : > { %v1186_v29 = vpop.permute.xlu1 %1185  ;;  %v1461_v58 = vsel %vm900_vm4, %v1459_v33, %v1460_v20  ;;  %v2241_v13 = vsel %vm2215_vm10, %v2176_v5, %v5294_v32  ;;  %v4387_v32 = vld [vmem:[#allocation2 + $0xf4] sm:$0x8] }
 0x156   : > { %v5380_v47 = vsel %vm2215_vm10, %v2196_v26, %v1186_v29  ;;  %1513 = vrot.lane.b32.xlu0 %v5369_v43, %s4612_s6  ;;  %v1466_v26 = vrot.slane %v1425_v9, 5  ;;  %v4284_v29 = vor.u32 %v4440_v2, %v4283_v37  ;;  %v4231_v9 = vld [vmem:[#allocation2 + $0x1c] sm:$0x8]  ;;  %v4427_v37 = vld [vmem:[#allocation2 + $0x1c] sm:$0xf0]   ;;  %v4264_v2 = vor.u32 %v4435_v10, %v4263_v7  ;;  %v4535_v7 = vld [vmem:[#allocation2 + $0x128] sm:$0xff]  }
 0x157   : > { %v2119_v51 = vsel %vm2069_vm8, %v663_v48, %v5016_v55  ;;  %v4036_v10 = vunpack.c.h.b16 %v4535_v7 }
 0x158   : > { %v5386_v21 = vpop.permute.xlu0 %1189  ;;  %v1467_v19 = vsel %vm900_vm4, %v1465_v28, %v1466_v26  ;;  %v2142_v16 = vsel %vm2069_vm8, %v4284_v29, %v4998_v40  ;;  %v4403_v29 = vld [vmem:[#allocation2 + $0x154] sm:$0x8] }
 0x159   : > { %1517 = vrot.lane.b32.xlu2 %v1459_v33, %s4612_s6  ;;  %v4287_v33 = vld [vmem:[#allocation2 + $0x16c] sm:$0x8] }
 0x15a   : > { %v4288_v12 = vor.u32 %v4441_v53, %v4287_v33  ;;  %v4470_v33 = vld [vmem:[#allocation2 + $0x154] sm:$0xf0]   ;;  %v540_v53 = vld [vmem:[#allocation2 + $0x100] sm:$0x1] }
 0x15b   : > { %1515 = vrot.lane.b32.xlu1 %v1458_v0, %s4612_s6  ;;  %v1356_v49 = vpop.permute.xlu2 %1355 }
 0x15c   : > { %v5403_v18 = vsel %vm2280_vm11, %v2229_v35, %v1356_v49  ;;  %v5406_v36 = vsel %vm2280_vm11, %v2231_v63, %v1356_v49  ;;  %v4534_v35 = vld [vmem:[#allocation2 + $0x170] sm:$0xff]   ;;  %v2147_v26 = vsel %vm2069_vm8, %v4288_v12, %v5045_v11  ;;  %v4275_v12 = vld [vmem:[#allocation2 + $0x124] sm:$0x8] }
 0x15d   : > { %v5408_v34 = vpop.permute.xlu1 %1191  ;;  %v4048_v63 = vunpack.c.h.b16 %v4534_v35  ;;  %v2212_v23 = vsel %vm2150_vm9, %v2147_v26, %v5227_v22  ;;  %v2190_v22 = vsel %vm2150_vm9, %v2119_v51, %v5104_v30  ;;  %v4428_v35 = vld [vmem:[#allocation2 + $0x34] sm:$0xf0]   ;;  %v6566_v26 = vld [vmem:[#allocation22_spill] sm:$0xff] }
 0x15e   : > { %1519 = vrot.lane.b32.xlu0 %v1461_v58, %s4612_s6  ;;  %v4466_v58 = vld [vmem:[#allocation2 + $0xf4] sm:$0xf0]  }
 0x160   : > { %v1196_v20 = vpop.permute.xlu0 %1195 }
 0x161   : > { %v5420_v0 = vsel %vm2215_vm10, %v2206_v60, %v1196_v20  ;;  %1525 = vrot.lane.b32.xlu2 %v1465_v28, %s4612_s6  ;;  %v2208_v28 = vsel %vm2150_vm9, %v2142_v16, %v5156_v6  ;;  %v4232_v60 = vor.u32 %v4427_v37, %v4231_v9  ;;  %v675_v20 = vpack.c.b16 %v4048_v63, %v4048_v63 }
 0x162   : > { %v2117_v6 = vsel %vm2069_vm8, %v4264_v2, %v5016_v55  ;;  %v1933_v16 = vunpack.c.l.b16 %v540_v53  ;;  %v4235_v55 = vld [vmem:[#allocation2 + $0x34] sm:$0x8]  ;;  %v669_v37 = vpack.c.b16 %v4036_v10, %v4036_v10 }
 0x163   : > { %1521 = vrot.lane.b32.xlu1 %v6518_v61, %s4612_s6  ;;  %v1362_v38 = vpop.permute.xlu2 %1361  ;;  %v4236_v48 = vor.u32 %v4428_v35, %v4235_v55 }
 0x164   : > { %v5434_v49 = vsel %vm2280_vm11, %v2241_v13, %v1362_v38  ;;  %v5438_v14 = vsel %vm2280_vm11, %v5315_v46, %v1362_v38  ;;  %v4388_v46 = vor.u32 %v4466_v58, %v4387_v32  ;;  %v4438_v13 = vld [vmem:[#allocation2 + $0x124] sm:$0xf0]   ;;  %v2188_v38 = vsel %vm2150_vm9, %v2117_v6, %v5159_v42 }
 0x165   : > { %v1198_v45 = vpop.permute.xlu1 %1197  ;;  %v2253_v63 = vsel %vm2215_vm10, %v2188_v38, %v5342_v27  ;;  %v2255_v32 = vsel %vm2215_vm10, %v2190_v22, %v5356_v59  ;;  %v2149_v58 = vsel %vm2069_vm8, %v675_v20, %v5045_v11  ;;  %v4276_v9 = vor.u32 %v4438_v13, %v4275_v12  ;;  %v6565_v59 = vld [vmem:[#allocation14_spill] sm:$0xff]  ;;  %v544_v13 = vld [vmem:[#allocation2 + $0x160] sm:$0x1]  ;;  %v6573_v38 = vld [vmem:[#allocation31_spill] sm:$0xff] }
 0x166   : > { %v5443_v40 = vsel %vm2215_vm10, %v2208_v28, %v1198_v45  ;;  %1527 = vrot.lane.b32.xlu0 %v1467_v19, %s4612_s6  ;;  %v4404_v19 = vor.u32 %v4470_v33, %v4403_v29  ;;  %v2214_v27 = vsel %vm2150_vm9, %v2149_v58, %v5174_v62  ;;  %v2077_v28 = vsel %vm2069_vm8, %v4232_v60, %v6565_v59  ;;  %v6567_v29 = vld [vmem:[#allocation23_spill] sm:$0xff]  ;;  %v6569_v20 = vld [vmem:[#allocation34_spill] sm:$0xff]  ;;  %v6572_v22 = vld [vmem:[#allocation12_spill] sm:$0xff] }
 0x167   : > { %v1949_v11 = vpack.c.b16 %v1933_v16, %v1933_v16  ;;  %v6568_v33 = vld [vmem:[#allocation15_spill] sm:$0xff]  ;;  %v6570_v60 = vld [vmem:[#allocation18_spill] sm:$0xff] }
 0x168   : > { %v1202_v17 = vpop.permute.xlu0 %1201  ;;  %v2158_v53 = vsel %vm2150_vm9, %v6568_v33, %v6567_v29  ;;  %v2132_v6 = vsel %vm2069_vm8, %v4276_v9, %v6570_v60  ;;  %v2134_v51 = vsel %vm2069_vm8, %v669_v37, %v6570_v60  ;;  %v6571_v12 = vld [vmem:[#allocation38_spill] sm:$0xff]  ;;  %v6574_v16 = vld [vmem:[#allocation35_spill] sm:$0xff]  ;;  %v6575_v9 = vld [vmem:[#allocation17_spill] sm:$0xff]  ;;  %v1937_v33 = vunpack.c.l.b16 %v544_v13 }
 0x169   : > { %v5455_v5 = vsel %vm2215_vm10, %v2212_v23, %v1202_v17  ;;  %1703 = vrot.lane.b32.xlu2 %v5096_v25, %s4613_s7  ;;  %v2223_v23 = vsel %vm2215_vm10, %v2158_v53, %v5248_v57  ;;  %v2082_v57 = vsel %vm2069_vm8, %v4236_v48, %v6572_v22  ;;  %v2200_v55 = vsel %vm2150_vm9, %v2132_v6, %v6574_v16  ;;  %v6576_v48 = vld [vmem:[#allocation30_spill] sm:$0xff]  ;;  %v6579_v53 = vld [vmem:[#allocation37_spill] sm:$0xff] }
 0x16a   : > { %v1982_v35 = vrot.slane %v1949_v11, 5  ;;  %v2160_v37 = vsel %vm2150_vm9, %v2082_v57, %v6575_v9  ;;  %v6581_v22 = vld [vmem:[#allocation29_spill] sm:$0xff] }
 0x16b   : > { %1701 = vrot.lane.b32.xlu1 %v4388_v46, %s4613_s7  ;;  %v1368_v25 = vpop.permute.xlu2 %1367  ;;  %v2156_v46 = vsel %vm2150_vm9, %v2077_v28, %v6566_v26  ;;  %v6577_v28 = vld [vmem:[#allocation24_spill] sm:$0xff]  ;;  %v6578_v26 = vld [vmem:[#allocation13_spill] sm:$0xff]  ;;  %v5546_v57 = vrot.slane %v6581_v22, 5 }
 0x16c   : > { %v5471_v30 = vsel %vm2280_vm11, %v2253_v63, %v1368_v25  ;;  %v5474_v42 = vsel %vm2280_vm11, %v2255_v32, %v1368_v25  ;;  %v2221_v62 = vsel %vm2215_vm10, %v2156_v46, %v6569_v20  ;;  %v4247_v63 = vld [vmem:[#allocation2 + $0x7c] sm:$0x8]  ;;  %v4431_v32 = vld [vmem:[#allocation2 + $0x7c] sm:$0xf0]   ;;  %v2162_v11 = vsel %vm2150_vm9, %v6578_v26, %v6577_v28  ;;  %v4537_v16 = vld [vmem:[#allocation2 + $0xc8] sm:$0xff]  }
 0x16d   : > { %v1204_v2 = vpop.permute.xlu1 %1203  ;;  %v4536_v25 = vld [vmem:[#allocation2 + $0x80] sm:$0xff]   ;;  %v1983_v60 = vsel %vm900_vm4, %v5369_v43, %v1982_v35  ;;  %v4434_v9 = vld [vmem:[#allocation2 + $0xc4] sm:$0xf0]  }
 0x16e   : > { %v2279_v45 = vsel %vm2215_vm10, %v2214_v27, %v1204_v2  ;;  %1717 = vrot.lane.b32.xlu0 %v4404_v19, %s4613_s7  ;;  %v2202_v19 = vsel %vm2150_vm9, %v2134_v51, %v6573_v38  ;;  %v4008_v58 = vunpack.c.h.b16 %v4536_v25  ;;  %v2265_v27 = vsel %vm2215_vm10, %v2200_v55, %v5386_v21  ;;  %v4355_v38 = vld [vmem:[#allocation2 + $0x34] sm:$0x8]  ;;  %v6582_v35 = vld [vmem:[#allocation20_spill] sm:$0xff]  ;;  %v5554_v25 = vld [vmem:[#allocation2 + $0x38] sm:$0xff]  }
 0x16f   : > { %v2267_v2 = vsel %vm2215_vm10, %v2202_v19, %v5408_v34  ;;  %v2227_v21 = vsel %vm2215_vm10, %v2162_v11, %v6579_v53  ;;  %v2225_v34 = vsel %vm2215_vm10, %v2160_v37, %v5261_v39  ;;  %v6580_v39 = vld [vmem:[#allocation9_spill] sm:$0xff]  ;;  %v4458_v19 = vld [vmem:[#allocation2 + $0x34] sm:$0xf0]   ;;  %v4020_v55 = vunpack.c.h.b16 %v4537_v16  ;;  %v6583_v37 = vld [vmem:[#allocation28_spill] sm:$0xff] }
 0x170   : > { %v1352_v17 = vpop.permute.xlu0 %1351  ;;  %v655_v6 = vpack.c.b16 %v4008_v58, %v4008_v58  ;;  %v4259_v58 = vld [vmem:[#allocation2 + $0xc4] sm:$0x8]  ;;  %v4356_v11 = vor.u32 %v4458_v19, %v4355_v38  ;;  %v6585_v22 = vld [vmem:[#allocation25_spill] sm:$0xff]  ;;  %v4371_v16 = vld [vmem:[#allocation2 + $0x94] sm:$0x8] }
 0x171   : > { %v5496_v7 = vsel %vm2280_vm11, %v2221_v62, %v1352_v17  ;;  %v5499_v10 = vsel %vm2280_vm11, %v2223_v23, %v1352_v17  ;;  %1893 = vrot.lane.b32.xlu2 %v6571_v12, %s4614_s8  ;;  %v4248_v62 = vor.u32 %v4431_v32, %v4247_v63  ;;  %v1953_v12 = vpack.c.b16 %v1937_v33, %v1937_v33  ;;  %v6586_v38 = vld [vmem:[#allocation33_spill] sm:$0xff] }
 0x173   : > { %1719 = vrot.lane.b32.xlu1 %v6576_v48, %s4613_s7  ;;  %v1374_v59 = vpop.permute.xlu2 %1373  ;;  %v2097_v13 = vsel %vm2069_vm8, %v4248_v62, %v6580_v39 }
 0x174   : > { %v5521_v46 = vsel %vm2280_vm11, %v2265_v27, %v1374_v59  ;;  %v5524_v29 = vsel %vm2280_vm11, %v2267_v2, %v1374_v59  ;;  %v2172_v63 = vsel %vm2150_vm9, %v2097_v13, %v6582_v35  ;;  %v1994_v59 = vrot.slane %v1953_v12, 5  ;;  %v6584_v12 = vld [vmem:[#allocation10_spill] sm:$0xff]  ;;  %v532_v35 = vld [vmem:[#allocation2 + $0x40] sm:$0x1] }
 0x175   : > { %v1354_v20 = vpop.permute.xlu1 %1353 }
 0x176   : > { %v5531_v23 = vsel %vm2280_vm11, %v2225_v34, %v1354_v20  ;;  %v5534_v17 = vsel %vm2280_vm11, %v2227_v21, %v1354_v20  ;;  %1901 = vrot.lane.b32.xlu0 %v5237_v41, %s4614_s8  ;;  %v2099_v41 = vsel %vm2069_vm8, %v655_v6, %v6580_v39  ;;  %v661_v21 = vpack.c.b16 %v4020_v55, %v4020_v55  ;;  %v4462_v55 = vld [vmem:[#allocation2 + $0x94] sm:$0xf0]  }
 0x177   : > { %v2174_v27 = vsel %vm2150_vm9, %v2099_v41, %v6583_v37  ;;  %v1753_v6 = vshll.u32 %v5554_v25, 16 }
 0x178   : > { %v5540_v51 = vpop.permute.xlu0 %1357  ;;  %v2239_v28 = vsel %vm2215_vm10, %v2174_v27, %v5240_v44  ;;  %v1995_v44 = vsel %vm900_vm4, %v5546_v57, %v1994_v59  ;;  %v2114_v13 = vsel %vm2069_vm8, %v661_v21, %v6584_v12  ;;  %v6588_v21 = vld [vmem:[#allocation45_spill] sm:$0xff] }
 0x179   : > { %2039 = vrot.lane.b32.xlu2 %v1983_v60, %s4615_s9  ;;  %v1750_v60 = vshrl.u32 %v5554_v25, 16  ;;  %v2186_v19 = vsel %vm2150_vm9, %v2114_v13, %v6586_v38  ;;  %v1755_v59 = vrot.slane %v1753_v6, 5 }
 0x17b   : > { %2037 = vrot.lane.b32.xlu1 %v5369_v43, %s4615_s9  ;;  %v1380_v32 = vpop.permute.xlu2 %1379  ;;  %v2237_v43 = vsel %vm2215_vm10, %v2172_v63, %v5290_v31  ;;  %v6587_v63 = vld [vmem:[#allocation43_spill] sm:$0xff] }
 0x17c   : > { %v5560_v2 = vsel %vm2280_vm11, %v5455_v5, %v1380_v32  ;;  %v5563_v48 = vsel %vm2280_vm11, %v2279_v45, %v1380_v32  ;;  %v4116_v5 = vunpack.c.h.b16 %v5554_v25  ;;  %v4260_v45 = vor.u32 %v4434_v9, %v4259_v58 }
 0x17d   : > { %v1360_v26 = vpop.permute.xlu1 %1359  ;;  %v2251_v32 = vsel %vm2215_vm10, %v2186_v19, %v6587_v63  ;;  %v4538_v63 = vld [vmem:[#allocation2 + $0x8] sm:$0xff]  }
 0x17e   : > { %v5570_v33 = vsel %vm2280_vm11, %v2237_v43, %v1360_v26  ;;  %v5573_v53 = vsel %vm2280_vm11, %v2239_v28, %v1360_v26  ;;  %2053 = vrot.lane.b32.xlu0 %v5546_v57, %s4615_s9  ;;  %v1638_v62 = vpack.c.b16 %v4116_v5, %v4116_v5  ;;  %v2112_v39 = vsel %vm2069_vm8, %v4260_v45, %v6584_v12  ;;  %v536_v26 = vld [vmem:[#allocation2 + $0xa0] sm:$0x1]  ;;  %v4243_v5 = vld [vmem:[#allocation2 + $0x64] sm:$0x8]  ;;  %v4430_v45 = vld [vmem:[#allocation2 + $0x64] sm:$0xf0]  }
 0x17f   : > { %v4372_v28 = vor.u32 %v4462_v55, %v4371_v16  ;;  %v1925_v43 = vunpack.c.l.b16 %v532_v35  ;;  %v6590_v35 = vld [vmem:[#allocation8_spill] sm:$0xff] }
 0x180   : > { %v1364_v34 = vpop.permute.xlu0 %1363 }
 0x181   : > { %v5582_v31 = vsel %vm2280_vm11, %v5259_v3, %v1364_v34  ;;  %v5586_v20 = vsel %vm2280_vm11, %v5325_v50, %v1364_v34  ;;  %1669 = vrot.lane.b32.xlu2 %v4356_v11, %s4613_s7  ;;  %v2184_v50 = vsel %vm2150_vm9, %v2112_v39, %v6585_v22  ;;  %v1941_v12 = vpack.c.b16 %v1925_v43, %v1925_v43 }
 0x182   : > { %v2249_v58 = vsel %vm2215_vm10, %v2184_v50, %v5338_v1  ;;  %v4244_v39 = vor.u32 %v4430_v45, %v4243_v5  ;;  %v1957_v22 = vrot.slane %v5554_v25, 5  ;;  %v4426_v50 = vld [vmem:[#allocation2 + $0x4] sm:$0xf0]   ;;  %v6593_v5 = vld [vmem:[#allocation36_spill] sm:$0xff] }
 0x183   : > { %2055 = vrot.lane.b32.xlu1 %v1995_v44, %s4615_s9  ;;  %v1482_v3 = vpop.permute.xlu2 %1481  ;;  %v6589_v44 = vld [vmem:[#allocation19_spill] sm:$0xff]  ;;  %v1958_v55 = vrot.slane %v1941_v12, 5  ;;  %v6595_v12 = vld [vmem:[#allocation21_spill] sm:$0xff] }
 0x184   : > { %v5602_v41 = vsel %vm2329_vm12, %v5496_v7, %v1482_v3  ;;  %v1752_v7 = vrot.slane %v1750_v60, 4  ;;  %v1929_v60 = vunpack.c.l.b16 %v536_v26 }
 0x185   : > { %v1366_v9 = vpop.permute.xlu1 %1365 }
 0x186   : > { %v5609_v37 = vsel %vm2280_vm11, %v2249_v58, %v1366_v9  ;;  %v5612_v27 = vsel %vm2280_vm11, %v2251_v32, %v1366_v9  ;;  %1671 = vrot.lane.b32.xlu0 %v1638_v62, %s4613_s7  ;;  %v1756_v62 = vor.u32 %v1755_v59, %v1752_v7  ;;  %v1945_v16 = vpack.c.b16 %v1929_v60, %v1929_v60  ;;  %v6591_v9 = vld [vmem:[#allocation26_spill] sm:$0xff]  ;;  %v480_v59 = vld [vmem:[#allocation2 + $0x160] sm:$0x1] }
 0x187   : > { %v3988_v32 = vunpack.c.h.b16 %v4538_v63 }
 0x188   : > { %v1370_v11 = vpop.permute.xlu0 %1369  ;;  %v1970_v26 = vrot.slane %v1945_v16, 5 }
 0x189   : > { %v5617_v1 = vsel %vm2280_vm11, %v6588_v21, %v1370_v11  ;;  %v5621_v34 = vsel %vm2280_vm11, %v5365_v4, %v1370_v11  ;;  %1687 = vrot.lane.b32.xlu2 %v6589_v44, %s4613_s7  ;;  %v4227_v4 = vld [vmem:[#allocation2 + $0x4] sm:$0x8]  ;;  %v645_v44 = vpack.c.b16 %v3988_v32, %v3988_v32  ;;  %v4391_v32 = vld [vmem:[#allocation2 + $0x10c] sm:$0x8] }
 0x18a   : > { %v4228_v58 = vor.u32 %v4426_v50, %v4227_v4  ;;  %v6596_v4 = vld [vmem:[#allocation40_spill] sm:$0xff] }
 0x18b   : > { %1685 = vrot.lane.b32.xlu1 %v4372_v28, %s4613_s7  ;;  %v1488_v6 = vpop.permute.xlu2 %1487  ;;  %v6592_v28 = vld [vmem:[#allocation39_spill] sm:$0xff] }
 0x18c   : > { %v5628_v13 = vsel %vm2329_vm12, %v5534_v17, %v1488_v6  ;;  %v2092_v17 = vsel %vm2069_vm8, %v4244_v39, %v6590_v35 }
 0x18d   : > { %v1372_v3 = vpop.permute.xlu1 %1371  ;;  %v2168_v7 = vsel %vm2150_vm9, %v2092_v17, %v6591_v9 }
 0x18e   : > { %v5633_v38 = vsel %vm2280_vm11, %v5380_v47, %v1372_v3  ;;  %v5637_v19 = vsel %vm2280_vm11, %v5310_v24, %v1372_v3  ;;  %1877 = vrot.lane.b32.xlu0 %v1756_v62, %s4614_s8  ;;  %v2233_v43 = vsel %vm2215_vm10, %v2168_v7, %v6592_v28  ;;  %v6594_v62 = vld [vmem:[#allocation11_spill] sm:$0xff]  ;;  %v6598_v28 = vld [vmem:[#allocation41_spill] sm:$0xff] }
 0x18f   : > { %v2294_v11 = vsel %vm2280_vm11, %v2233_v43, %v5540_v51  ;;  %v2072_v60 = vsel %vm2069_vm8, %v4228_v58, %v6594_v62  ;;  %v6597_v58 = vld [vmem:[#allocation16_spill] sm:$0xff] }
 0x190   : > { %v1376_v25 = vpop.permute.xlu0 %1375  ;;  %v2152_v39 = vsel %vm2150_vm9, %v2072_v60, %v6595_v12 }
 0x191   : > { %v5646_v47 = vsel %vm2280_vm11, %v5336_v52, %v1376_v25  ;;  %v5650_v24 = vsel %vm2280_vm11, %v5420_v0, %v1376_v25  ;;  %2005 = vrot.lane.b32.xlu2 %v1957_v22, %s4615_s9  ;;  %v1959_v52 = vsel %vm900_vm4, %v1957_v22, %v1958_v55  ;;  %v1410_v0 = vunpack.c.l.b16 %v480_v59  ;;  %v4467_v25 = vld [vmem:[#allocation2 + $0x10c] sm:$0xf0]  }
 0x192   : > { %v1971_v22 = vsel %vm900_vm4, %v5301_v54, %v1970_v26  ;;  %v2217_v16 = vsel %vm2215_vm10, %v2152_v39, %v6596_v4  ;;  %v4218_v59 = vld [vmem:[#allocation2 + $0x110] sm:$0xff]  }
 0x193   : > { %1885 = vrot.lane.b32.xlu1 %v6593_v5, %s4614_s8  ;;  %v1494_v45 = vpop.permute.xlu2 %1493  ;;  %v2282_v55 = vsel %vm2280_vm11, %v2217_v16, %v5372_v56  ;;  %v1426_v63 = vpack.c.b16 %v1410_v0, %v1410_v0  ;;  %v1822_v60 = vshrl.u32 %v4218_v59, 16  ;;  %v4471_v4 = vld [vmem:[#allocation2 + $0x16c] sm:$0xf0]   ;;  %v541_v16 = vld [vmem:[#allocation2 + $0x118] sm:$0x1] }
 0x194   : > { %v5661_v21 = vsel %vm2329_vm12, %v2294_v11, %v1494_v45 }
 0x195   : > { %v1378_v6 = vpop.permute.xlu1 %1377  ;;  %v1469_v11 = vrot.slane %v1426_v63, 5  ;;  %v1824_v63 = vrot.slane %v1822_v60, 4  ;;  %v6602_v60 = vld [vmem:[#allocation44_spill] sm:$0xff] }
 0x196   : > { %v5669_v3 = vsel %vm2280_vm11, %v5443_v40, %v1378_v6  ;;  %v5673_v50 = vsel %vm2280_vm11, %v5354_v8, %v1378_v6  ;;  %2007 = vrot.lane.b32.xlu0 %v1959_v52, %s4615_s9  ;;  %v2074_v8 = vsel %vm2069_vm8, %v645_v44, %v6594_v62  ;;  %v4392_v52 = vor.u32 %v4467_v25, %v4391_v32 }
 0x197   : > { %v2154_v9 = vsel %vm2150_vm9, %v2074_v8, %v6597_v58  ;;  %v1470_v62 = vsel %vm900_vm4, %v5546_v57, %v1469_v11  ;;  %v1825_v6 = vshll.u32 %v4218_v59, 16  ;;  %v1934_v25 = vunpack.c.l.b16 %v541_v16  ;;  %v545_v58 = vld [vmem:[#allocation2 + $0x178] sm:$0x1] }
 0x198   : > { %v1478_v17 = vpop.permute.xlu0 %1477  ;;  %v2219_v43 = vsel %vm2215_vm10, %v2154_v9, %v6598_v28  ;;  %v6599_v28 = vld [vmem:[#allocation32_spill] sm:$0xff]  ;;  %v1938_v11 = vunpack.c.l.b16 %v545_v58  ;;  %v4459_v58 = vld [vmem:[#allocation2 + $0x4c] sm:$0xf0]  }
 0x199   : > { %v5683_v40 = vsel %vm2329_vm12, %v2282_v55, %v1478_v17  ;;  %2023 = vrot.lane.b32.xlu2 %v1971_v22, %s4615_s9  ;;  %v2283_v5 = vsel %vm2280_vm11, %v2219_v43, %v5372_v56  ;;  %v4407_v22 = vld [vmem:[#allocation2 + $0x16c] sm:$0x8]  ;;  %v1827_v8 = vrot.slane %v1825_v6, 5 }
 0x19a   : > { %v4408_v32 = vor.u32 %v4471_v4, %v4407_v22  ;;  %v4540_v4 = vld [vmem:[#allocation2 + $0x170] sm:$0xff]  }
 0x19b   : > { %2021 = vrot.lane.b32.xlu1 %v5301_v54, %s4615_s9  ;;  %v1500_v7 = vpop.permute.xlu2 %1499  ;;  %v4152_v54 = vunpack.c.h.b16 %v4218_v59  ;;  %v1828_v43 = vor.u32 %v1827_v8, %v1824_v63  ;;  %v5748_v16 = vrot.slane %v4540_v4, 5 }
 0x19c   : > { %v5696_v26 = vsel %vm2329_vm12, %v5573_v53, %v1500_v7 }
 0x19d   : > { %v1480_v45 = vpop.permute.xlu1 %1479  ;;  %v1656_v56 = vpack.c.b16 %v4152_v54, %v4152_v54  ;;  %v1984_v54 = vrot.slane %v4218_v59, 5 }
 0x19e   : > { %v5701_v0 = vsel %vm2329_vm12, %v2283_v5, %v1480_v45  ;;  %1529 = vrot.lane.b32.xlu0 %v5546_v57, %s4612_s6  ;;  %v4539_v57 = vld [vmem:[#allocation2 + $0x68] sm:$0xff]   ;;  %v1950_v5 = vpack.c.b16 %v1934_v25, %v1934_v25 }
 0x19f   : > { %v4004_v55 = vunpack.c.h.b16 %v4539_v57  ;;  %v6603_v57 = vld [vmem:[#allocation42_spill] sm:$0xff]  ;;  %v4359_v25 = vld [vmem:[#allocation2 + $0x4c] sm:$0x8] }
 0x1a0   : > { %v1484_v44 = vpop.permute.xlu0 %1483 }
 0x1a1   : > { %v5709_v53 = vsel %vm2329_vm12, %v5499_v10, %v1484_v44  ;;  %1705 = vrot.lane.b32.xlu2 %v4392_v52, %s4613_s7  ;;  %v6600_v44 = vld [vmem:[#allocation27_spill] sm:$0xff] }
 0x1a3   : > { %1531 = vrot.lane.b32.xlu1 %v1470_v62, %s4612_s6  ;;  %v1506_v12 = vpop.permute.xlu2 %1505 }
 0x1a4   : > { %v5715_v39 = vsel %vm2329_vm12, %v5582_v31, %v1506_v12  ;;  %v653_v31 = vpack.c.b16 %v4004_v55, %v4004_v55  ;;  %v1985_v12 = vrot.slane %v1950_v5, 5 }
 0x1a5   : > { %v1486_v17 = vpop.permute.xlu1 %1485 }
 0x1a6   : > { %v5719_v10 = vsel %vm2329_vm12, %v5531_v23, %v1486_v17  ;;  %1707 = vrot.lane.b32.xlu0 %v1656_v56, %s4613_s7  ;;  %v2094_v45 = vsel %vm2069_vm8, %v653_v31, %v6590_v35  ;;  %v1954_v56 = vpack.c.b16 %v1938_v11, %v1938_v11  ;;  %v1986_v17 = vsel %vm900_vm4, %v1984_v54, %v1985_v12  ;;  %v5764_v31 = vld [vmem:[#allocation2 + $0x50] sm:$0xff]  }
 0x1a7   : > { %v2170_v62 = vsel %vm2150_vm9, %v2094_v45, %v6600_v44  ;;  %v4120_v5 = vunpack.c.h.b16 %v5764_v31  ;;  %v5776_v45 = vld [vmem:[#allocation2 + $0xb0] sm:$0xff]   ;;  %v1761_v12 = vshll.u32 %v5764_v31, 16  ;;  %vm3790_vm8 = vcmask 1046534  }
 0x1a8   : > { %v1490_v9 = vpop.permute.xlu0 %1489  ;;  %v2235_v6 = vsel %vm2215_vm10, %v2170_v62, %v6602_v60  ;;  %v1790_v44 = vshrl.u32 %v5776_v45, 16  ;;  %vm3792_vm9 = vcmask 1047559  }
 0x1a9   : > { %v5724_v7 = vsel %vm2329_vm12, %v5403_v18, %v1490_v9  ;;  %1723 = vrot.lane.b32.xlu2 %v6599_v28, %s4613_s7  ;;  %v2295_v22 = vsel %vm2280_vm11, %v2235_v6, %v5540_v51  ;;  %v1640_v60 = vpack.c.b16 %v4120_v5, %v4120_v5  ;;  %v1758_v6 = vshrl.u32 %v5764_v31, 16  ;;  %v481_v5 = vld [vmem:[#allocation2 + $0x178] sm:$0x1] }
 0x1aa   : > { %v1792_v4 = vrot.slane %v1790_v44, 4 }
 0x1ab   : > { %1721 = vrot.lane.b32.xlu1 %v4408_v32, %s4613_s7  ;;  %v5729_v23 = vpop.permute.xlu2 %1511 }
 0x1ad   : > { %v1492_v52 = vpop.permute.xlu1 %1491 }
 0x1ae   : > { %v5737_v18 = vsel %vm2329_vm12, %v5406_v36, %v1492_v52  ;;  %1895 = vrot.lane.b32.xlu0 %v1828_v43, %s4614_s8  ;;  %v1997_v36 = vrot.slane %v1954_v56, 5  ;;  %v4375_v43 = vld [vmem:[#allocation2 + $0xac] sm:$0x8]  ;;  %v4136_v56 = vunpack.c.h.b16 %v5776_v45 }
 0x1af   : > { %6601 = vst [vmem:[#allocation14_spill] sm:$0xff] %v5737_v18 }
 0x1b0   : > { %v1496_v35 = vpop.permute.xlu0 %1495  ;;  %v1998_v32 = vsel %vm900_vm4, %v5748_v16, %v1997_v36 }
 0x1b1   : > { %v5745_v59 = vsel %vm2329_vm12, %v2295_v22, %v1496_v35  ;;  %2041 = vrot.lane.b32.xlu2 %v1984_v54, %s4615_s9 }
 0x1b3   : > { %1903 = vrot.lane.b32.xlu1 %v6603_v57, %s4614_s8  ;;  %v1518_v55 = vpop.permute.xlu2 %1517  ;;  %v1648_v57 = vpack.c.b16 %v4136_v56, %v4136_v56 }
 0x1b4   : > { %v5755_v63 = vsel %vm2329_vm12, %v5617_v1, %v1518_v55  ;;  %v4360_v1 = vor.u32 %v4459_v58, %v4359_v25  ;;  %v537_v25 = vld [vmem:[#allocation2 + $0xb8] sm:$0x1] }
 0x1b5   : > { %v1498_v51 = vpop.permute.xlu1 %1497 }
 0x1b6   : > { %v5759_v8 = vsel %vm2329_vm12, %v5570_v33, %v1498_v51  ;;  %2043 = vrot.lane.b32.xlu0 %v1986_v17, %s4615_s9  ;;  %v4463_v33 = vld [vmem:[#allocation2 + $0xac] sm:$0xf0]   ;;  %v1760_v17 = vrot.slane %v1758_v6, 4  ;;  %v1763_v51 = vrot.slane %v1761_v12, 5  ;;  %v1960_v12 = vrot.slane %v5764_v31, 5 }
 0x1b7   : > { %v4376_v54 = vor.u32 %v4463_v33, %v4375_v43  ;;  %v1930_v33 = vunpack.c.l.b16 %v537_v25 }
 0x1b8   : > { %v1502_v9 = vpop.permute.xlu0 %1501  ;;  %v1764_v43 = vor.u32 %v1763_v51, %v1760_v17 }
 0x1b9   : > { %v5768_v28 = vsel %vm2329_vm12, %v5434_v49, %v1502_v9  ;;  %2059 = vrot.lane.b32.xlu2 %v1998_v32, %s4615_s9  ;;  %v1793_v49 = vshll.u32 %v5776_v45, 16 }
 0x1bb   : > { %2057 = vrot.lane.b32.xlu1 %v5748_v16, %s4615_s9  ;;  %v5773_v11 = vpop.permute.xlu2 %1525  ;;  %v1795_v36 = vrot.slane %v1793_v49, 5 }
 0x1bd   : > { %v1504_v52 = vpop.permute.xlu1 %1503  ;;  %v1796_v9 = vor.u32 %v1795_v36, %v1792_v4  ;;  %v1946_v36 = vpack.c.b16 %v1930_v33, %v1930_v33 }
 0x1be   : > { %v5782_v62 = vsel %vm2329_vm12, %v5438_v14, %v1504_v52  ;;  %1673 = vrot.lane.b32.xlu0 %v4360_v1, %s4613_s7  ;;  %v533_v14 = vld [vmem:[#allocation2 + $0x58] sm:$0x1]  ;;  %v278_v1 = vld [vmem:[#allocation2 + $0x190] sm:$0x1] }
 0x1bf   : > { %v1926_v32 = vunpack.c.l.b16 %v533_v14  ;;  %v279_v44 = vsel %vm4816_vm3, 0, %v278_v1  ;;  %v1973_v25 = vrot.slane %v1946_v36, 5  ;;  %v4472_v36 = vld [vmem:[#allocation2 + $0x184] sm:$0xf0]  }
 0x1c0   : > { %v1508_v22 = vpop.permute.xlu0 %1507  ;;  %280 = vst [vmem:[#allocation2 + $0x190] sm:$0x1] %v279_v44  ;;  %v4395_v44 = vld [vmem:[#allocation2 + $0x124] sm:$0x8] }
 0x1c1   : > { %v5790_v35 = vsel %vm2329_vm12, %v5586_v20, %v1508_v22  ;;  %1689 = vrot.lane.b32.xlu2 %v4376_v54, %s4613_s7  ;;  %v2818_v20 = vld [vmem:[%s6498_s1 + $0x10] sm:$0x3]  ;;  %v1942_v56 = vpack.c.b16 %v1926_v32, %v1926_v32  ;;  %v1411_v22 = vunpack.c.l.b16 %v481_v5  ;;  %v3983_v32 = vld [vmem:[%s6498_s1 + $0x8] sm:$0xff] }
 0x1c2   : > { %v2832_v52 = vunpack.c.l.b16 %v2818_v20  ;;  %v3982_v20 = vld [vmem:[%s6498_s1] sm:$0xff] }
 0x1c3   : > { %1675 = vrot.lane.b32.xlu1 %v1640_v60, %s4613_s7  ;;  %v5794_v55 = vpop.permute.xlu2 %1703  ;;  %v1427_v31 = vpack.c.b16 %v1411_v22, %v1411_v22  ;;  %v4411_v22 = vld [vmem:[#allocation2 + $0x184] sm:$0x8] }
 0x1c4   : > { %v2835_v6 = vpack.c.b16 %v2832_v52, %v2832_v52 }
 0x1c5   : > { %v5796_v58 = vpop.permute.xlu1 %1509 }
 0x1c6   : > { %1691 = vrot.lane.b32.xlu0 %v1648_v57, %s4613_s7  ;;  %v2889_v14 = vsel %vm2887_vm13, %v2835_v6, 0  ;;  %v1961_v57 = vrot.slane %v1942_v56, 5  ;;  %v5843_v6 = vld [vmem:[#allocation2 + $0x128] sm:$0xff]  }
 0x1c7   : > { %4418 = vmatpush.bf16.msra.mxu2 %v2889_v14  ;;  %4419 = vmatpush.bf16.msra.mxu3 %v2889_v14 }
 0x1c8   : > { %v1514_v49 = vpop.permute.xlu0 %1513  ;;  %2896 = vmatpush.bf16.msra.mxu0 %v2889_v14  ;;  %4417 = vmatpush.bf16.msra.mxu1 %v2889_v14  ;;  %v1962_v1 = vsel %vm900_vm4, %v1960_v12, %v1961_v57  ;;  %v4156_v14 = vunpack.c.h.b16 %v5843_v6  ;;  %v5851_v57 = vld [vmem:[#allocation2 + $0x188] sm:$0xff]  }
 0x1c9   : > { %v5806_v60 = vsel %vm2329_vm12, %v5471_v30, %v1514_v49  ;;  %1887 = vrot.lane.b32.xlu2 %v1796_v9, %s4614_s8  ;;  %v1972_v30 = vrot.slane %v5776_v45, 5  ;;  %v4468_v49 = vld [vmem:[#allocation2 + $0x124] sm:$0xf0]  }
 0x1cb   : > { %1879 = vrot.lane.b32.xlu1 %v1764_v43, %s4614_s8  ;;  %v5811_v4 = vpop.permute.xlu2 %1893  ;;  %4421 = vmatpush.bf16.msra.mxu2 %v3983_v32  ;;  %v1974_v33 = vsel %vm900_vm4, %v1972_v30, %v1973_v25  ;;  %v4172_v25 = vunpack.c.h.b16 %v5851_v57 }
 0x1cc   : > { %4422 = vmatpush.bf16.msra.mxu3 %v3983_v32  ;;  %2897 = vmatpush.bf16.msra.mxu0 %v3983_v32 }
 0x1cd   : > { %v1516_v17 = vpop.permute.xlu1 %1515  ;;  %4420 = vmatpush.bf16.msra.mxu1 %v3983_v32  ;;  %v1865_v32 = vshll.u32 %v5851_v57, 16 }
 0x1ce   : > { %v5817_v51 = vsel %vm2329_vm12, %v5474_v42, %v1516_v17  ;;  %2009 = vrot.lane.b32.xlu0 %v1960_v12, %s4615_s9  ;;  %v1472_v42 = vrot.slane %v1427_v31, 5  ;;  %v4396_v12 = vor.u32 %v4468_v49, %v4395_v44  ;;  %v1862_v31 = vshrl.u32 %v5851_v57, 16 }
 0x1cf   : > { %4424 = vmatpush.bf16.msra.mxu2 %v3982_v20 }
 0x1d0   : > { %v1520_v9 = vpop.permute.xlu0 %1519  ;;  %4425 = vmatpush.bf16.msra.mxu3 %v3982_v20  ;;  %2898 = vmatpush.bf16.msra.mxu0 %v3982_v20  ;;  %v1473_v52 = vsel %vm900_vm4, %v5748_v16, %v1472_v42 }
 0x1d1   : > { %v5826_v45 = vsel %vm2329_vm12, %v5621_v34, %v1520_v9  ;;  %2025 = vrot.lane.b32.xlu2 %v1972_v30, %s4615_s9  ;;  %4423 = vmatpush.bf16.msra.mxu1 %v3982_v20  ;;  %v4412_v30 = vor.u32 %v4472_v36, %v4411_v22  ;;  %v1658_v9 = vpack.c.b16 %v4156_v14, %v4156_v14  ;;  %v1864_v20 = vrot.slane %v1862_v31, 4  ;;  %v546_v22 = vld [vmem:[#allocation2 + $0x190] sm:$0x1] }
 0x1d2   : > { %v2365_v36 = vsel %vm2329_vm12, %v5612_v27, %v5729_v23  ;;  %v2363_v27 = vsel %vm2329_vm12, %v5609_v37, %v5796_v58  ;;  %v1999_v37 = vrot.slane %v5851_v57, 5  ;;  %v5884_v58 = vld [vmem:[#allocation2 + $0x68] sm:$0xff]  }
 0x1d3   : > { %2011 = vrot.lane.b32.xlu1 %v1962_v1, %s4615_s9  ;;  %v2040_v43 = vpop.permute.xlu2 %2039  ;;  %v1830_v1 = vshrl.u32 %v5843_v6, 16 }
 0x1d5   : > { %v1522_v5 = vpop.permute.xlu1 %1521  ;;  %v1832_v49 = vrot.slane %v1830_v1, 4 }
 0x1d6   : > { %v5836_v34 = vsel %vm2329_vm12, %v5633_v38, %v1522_v5  ;;  %2027 = vrot.lane.b32.xlu0 %v1974_v33, %s4615_s9  ;;  %v1867_v33 = vrot.slane %v1865_v32, 5  ;;  %v542_v5 = vld [vmem:[#allocation2 + $0x130] sm:$0x1] }
 0x1d7   : > { %v1935_v14 = vunpack.c.l.b16 %v542_v5 }
 0x1d8   : > { %v5841_v56 = vpop.permute.xlu0 %1527  ;;  %v1868_v32 = vor.u32 %v1867_v33, %v1864_v20  ;;  %v1987_v20 = vrot.slane %v5843_v6, 5 }
 0x1d9   : > { %1535 = vrot.lane.b32.xlu2 %v1473_v52, %s4612_s6  ;;  %v1666_v52 = vpack.c.b16 %v4172_v25, %v4172_v25  ;;  %v1951_v18 = vpack.c.b16 %v1935_v14, %v1935_v14 }
 0x1db   : > { %1533 = vrot.lane.b32.xlu1 %v5748_v16, %s4612_s6  ;;  %v5848_v38 = vpop.permute.xlu2 %1669  ;;  %v1833_v16 = vshll.u32 %v5843_v6, 16 }
 0x1dd   : > { %v1702_v17 = vpop.permute.xlu1 %1701 }
 0x1de   : > { %1709 = vrot.lane.b32.xlu0 %v4396_v12, %s4613_s7  ;;  %v1835_v12 = vrot.slane %v1833_v16, 5 }
 0x1e0   : > { %v1718_v42 = vpop.permute.xlu0 %1717  ;;  %v1836_v16 = vor.u32 %v1835_v12, %v1832_v49 }
 0x1e1   : > { %1725 = vrot.lane.b32.xlu2 %v4412_v30, %s4613_s7  ;;  %v2430_v30 = vsel %vm2394_vm14, %v2365_v36, %v5794_v55  ;;  %v2428_v55 = vsel %vm2394_vm14, %v2363_v27, %v1702_v17  ;;  %v2379_v17 = vsel %vm2329_vm12, %v5521_v46, %v5773_v11  ;;  %v2381_v46 = vsel %vm2329_vm12, %v5524_v29, %v5841_v56  ;;  %v4363_v29 = vld [vmem:[#allocation2 + $0x64] sm:$0x8]  ;;  %v4460_v56 = vld [vmem:[#allocation2 + $0x64] sm:$0xf0]  }
 0x1e2   : > { %v2486_v25 = vsel %vm2459_vm15, %v2430_v30, %v5811_v4  ;;  %v2485_v49 = vsel %vm2459_vm15, %v2428_v55, %v5811_v4 }
 0x1e3   : > { %1711 = vrot.lane.b32.xlu1 %v1658_v9, %s4613_s7  ;;  %v5861_v44 = vpop.permute.xlu2 %1687  ;;  %v1939_v9 = vunpack.c.l.b16 %v546_v22  ;;  %v2544_v1 = vsel %vm2508_vm0, %v2486_v25, %v2040_v43  ;;  %v1988_v43 = vrot.slane %v1951_v18, 5  ;;  %v2444_v18 = vsel %vm2394_vm14, %v2379_v17, %v1718_v42  ;;  %v4379_v17 = vld [vmem:[#allocation2 + $0xc4] sm:$0x8] }
 0x1e4   : > { %v2701_v23 = vshrl.u32 %v2544_v1, 16  ;;  %v2704_v5 = vshll.u32 %v2544_v1, 16 }
 0x1e5   : > { %v1720_v31 = vpop.permute.xlu1 %1719  ;;  %v1955_v33 = vpack.c.b16 %v1939_v9, %v1939_v9  ;;  %v1989_v25 = vsel %vm900_vm4, %v1987_v20, %v1988_v43  ;;  %v4124_v9 = vunpack.c.h.b16 %v5884_v58 }
 0x1e6   : > { %1727 = vrot.lane.b32.xlu0 %v1666_v52, %s4613_s7  ;;  %v2703_v6 = vrot.slane %v2701_v23, 3  ;;  %v2706_v14 = vrot.slane %v2704_v5, 4  ;;  %v2446_v42 = vsel %vm2394_vm14, %v2381_v46, %v1720_v31  ;;  %v224_v46 = vld [vmem:[#allocation2 + $0x19c] sm:$0x8] }
 0x1e7   : > { %v2000_v36 = vrot.slane %v1955_v33, 5  ;;  %v1642_v43 = vpack.c.b16 %v4124_v9, %v4124_v9 }
 0x1e8   : > { %v1902_v61 = vpop.permute.xlu0 %1901  ;;  %v2707_v23 = vor.u32 %v2706_v14, %v2703_v6  ;;  %v1769_v6 = vshll.u32 %v5884_v58, 16  ;;  %v4364_v14 = vor.u32 %v4460_v56, %v4363_v29 }
 0x1e9   : > { %1905 = vrot.lane.b32.xlu2 %v1868_v32, %s4614_s8  ;;  %v2497_v32 = vsel %vm2459_vm15, %v2444_v18, %v1902_v61  ;;  %v2001_v27 = vsel %vm900_vm4, %v1999_v37, %v2000_v36  ;;  %v5912_v18 = vld [vmem:[#allocation2 + $0xc8] sm:$0xff]  }
 0x1eb   : > { %1897 = vrot.lane.b32.xlu1 %v1836_v16, %s4614_s8  ;;  %v5879_v52 = vpop.permute.xlu2 %2005 }
 0x1ed   : > { %v2038_v12 = vpop.permute.xlu1 %2037 }
 0x1ee   : > { %v2542_v22 = vsel %vm2508_vm0, %v2485_v49, %v2038_v12  ;;  %2045 = vrot.lane.b32.xlu0 %v1987_v20, %s4615_s9  ;;  %v2498_v49 = vsel %vm2459_vm15, %v2446_v42, %v1902_v61  ;;  %v1771_v42 = vrot.slane %v1769_v6, 5 }
 0x1ef   : > { %v2694_v30 = vshrl.u32 %v2542_v22, 16  ;;  %v2697_v4 = vshll.u32 %v2542_v22, 16  ;;  %v1766_v22 = vshrl.u32 %v5884_v58, 16 }
 0x1f0   : > { %v2054_v57 = vpop.permute.xlu0 %2053 }
 0x1f1   : > { %v2696_v11 = vrot.slane %v2694_v30, 3  ;;  %v2699_v1 = vrot.slane %v2697_v4, 4  ;;  %v2558_v16 = vsel %vm2508_vm0, %v2497_v32, %v2054_v57  ;;  %2061 = vrot.lane.b32.xlu2 %v1999_v37, %s4615_s9  ;;  %v4464_v37 = vld [vmem:[#allocation2 + $0xc4] sm:$0xf0]   ;;  %v534_v57 = vld [vmem:[#allocation2 + $0x70] sm:$0x1] }
 0x1f2   : > { %v2754_v20 = vshrl.u32 %v2558_v16, 16  ;;  %v2757_v33 = vshll.u32 %v2558_v16, 16  ;;  %v4380_v9 = vor.u32 %v4464_v37, %v4379_v17  ;;  %v1768_v16 = vrot.slane %v1766_v22, 4 }
 0x1f3   : > { %v2700_v55 = vor.u32 %v2699_v1, %v2696_v11  ;;  %2047 = vrot.lane.b32.xlu1 %v1989_v25, %s4615_s9  ;;  %v5903_v5 = vpop.permute.xlu2 %2023 }
 0x1f4   : > { %v2756_v30 = vrot.slane %v2754_v20, 3  ;;  %v2759_v61 = vrot.slane %v2757_v33, 4  ;;  %v225_v20 = vsel %vm4882_vm7, 0, %v224_v46  ;;  %v1772_v17 = vor.u32 %v1771_v42, %v1768_v16 }
 0x1f5   : > { %v2056_v12 = vpop.permute.xlu1 %2055  ;;  %v2708_v31 = vsel %vm2573_vm1, %v2700_v55, %v2707_v23  ;;  %v1801_v23 = vshll.u32 %v5912_v18, 16  ;;  %v1927_v55 = vunpack.c.l.b16 %v534_v57  ;;  %226 = vst [vmem:[#allocation2 + $0x19c] sm:$0x8] %v225_v20  ;;  %vm3788_vm7 = vcmask 1045509  }
 0x1f6   : > { %v2560_v36 = vsel %vm2508_vm0, %v2498_v49, %v2056_v12  ;;  %2063 = vrot.lane.b32.xlu0 %v2001_v27, %s4615_s9  ;;  %3968 = vmatmul.msk.bf16.vlgmr.msra.gmra.mxu2 %vm2838_vm2, %v2708_v31  ;;  %v1798_v27 = vshrl.u32 %v5912_v18, 16  ;;  %v2760_v33 = vor.u32 %v2759_v61, %v2756_v30  ;;  %v4140_v12 = vunpack.c.h.b16 %v5912_v18 }
 0x1f7   : > { %v2761_v4 = vshrl.u32 %v2560_v36, 16  ;;  %v2764_v32 = vshll.u32 %v2560_v36, 16  ;;  %v1803_v22 = vrot.slane %v1801_v23, 5  ;;  %v1943_v6 = vpack.c.b16 %v1927_v55, %v1927_v55  ;;  %v478_v36 = vld [vmem:[#allocation2 + $0x130] sm:$0x1] }
 0x1f8   : > { %v1672_v25 = vpop.permute.xlu0 %1671  ;;  %v1800_v37 = vrot.slane %v1798_v27, 4  ;;  %v1650_v30 = vpack.c.b16 %v4140_v12, %v4140_v12  ;;  %v1408_v57 = vunpack.c.l.b16 %v478_v36  ;;  %v2414_v27 = vsel %vm2394_vm14, %v5745_v59, %v5861_v44 }
 0x1f9   : > { %v2763_v11 = vrot.slane %v2761_v4, 3  ;;  %v2766_v1 = vrot.slane %v2764_v32, 4  ;;  %1679 = vrot.lane.b32.xlu2 %v1642_v43, %s4613_s7  ;;  %v538_v4 = vld [vmem:[#allocation2 + $0xd0] sm:$0x1] }
 0x1fa   : > { %v1804_v46 = vor.u32 %v1803_v22, %v1800_v37  ;;  %v1931_v42 = vunpack.c.l.b16 %v538_v4  ;;  %v1424_v55 = vpack.c.b16 %v1408_v57, %v1408_v57  ;;  %v482_v37 = vld [vmem:[#allocation2 + $0x190] sm:$0x1] }
 0x1fb   : > { %v2767_v56 = vor.u32 %v2766_v1, %v2763_v11  ;;  %1677 = vrot.lane.b32.xlu1 %v4364_v14, %s4613_s7  ;;  %v5920_v49 = vpop.permute.xlu2 %1705  ;;  %v2396_v14 = vsel %vm2394_vm14, %v5683_v40, %v5848_v38  ;;  %v1964_v11 = vrot.slane %v1943_v6, 5  ;;  %v281_v40 = vld [vmem:[#allocation2 + $0x1a8] sm:$0x1]  ;;  %v1412_v57 = vunpack.c.l.b16 %v482_v37 }
 0x1fc   : > { %v282_v38 = vsel %vm4816_vm3, 0, %v281_v40  ;;  %v1947_v54 = vpack.c.b16 %v1931_v42, %v1931_v42  ;;  %vm3780_vm3 = vcmask 1041409  }
 0x1fd   : > { %v1686_v43 = vpop.permute.xlu1 %1685  ;;  %v2768_v31 = vsel %vm2573_vm1, %v2760_v33, %v2767_v56  ;;  %283 = vst [vmem:[#allocation2 + $0x1a8] sm:$0x1] %v282_v38  ;;  %v2398_v33 = vsel %vm2394_vm14, %v5701_v0, %v1672_v25 }
 0x1fe   : > { %1693 = vrot.lane.b32.xlu0 %v4380_v9, %s4613_s7  ;;  %3972 = vmatmul.msk.bf16.vlgmr.msra.gmra.mxu3 %vm2838_vm2, %v2768_v31  ;;  %v1963_v9 = vrot.slane %v5884_v58, 5  ;;  %v1975_v31 = vrot.slane %v5912_v18, 5 }
 0x200   : > { %v1878_v61 = vpop.permute.xlu0 %1877  ;;  %v1965_v20 = vsel %vm900_vm4, %v1963_v9, %v1964_v11 }
 0x201   : > { %v2461_v32 = vsel %vm2459_vm15, %v2396_v14, %v1878_v61  ;;  %1881 = vrot.lane.b32.xlu2 %v1772_v17, %s4614_s8  ;;  %v2462_v56 = vsel %vm2459_vm15, %v2398_v33, %v1878_v61  ;;  %v1463_v17 = vrot.slane %v1424_v55, 5  ;;  %v2412_v61 = vsel %vm2394_vm14, %v5661_v21, %v1686_v43 }
 0x202   : > { %v2510_v1 = vsel %vm2508_vm0, %v2461_v32, %v5879_v52 }
 0x203   : > { %1695 = vrot.lane.b32.xlu1 %v1650_v30, %s4613_s7  ;;  %v5935_v16 = vpop.permute.xlu2 %1723  ;;  %v2574_v58 = vshrl.u32 %v2510_v1, 16  ;;  %v2577_v29 = vshll.u32 %v2510_v1, 16 }
 0x205   : > { %v1886_v23 = vpop.permute.xlu1 %1885  ;;  %v2576_v22 = vrot.slane %v2574_v58, 3  ;;  %v2579_v6 = vrot.slane %v2577_v29, 4  ;;  %v1428_v29 = vpack.c.b16 %v1412_v57, %v1412_v57 }
 0x206   : > { %v2474_v52 = vsel %vm2459_vm15, %v2414_v27, %v1886_v23  ;;  %1889 = vrot.lane.b32.xlu0 %v1804_v46, %s4614_s8  ;;  %v2473_v18 = vsel %vm2459_vm15, %v2412_v61, %v1886_v23 }
 0x207   : > { %v2528_v59 = vsel %vm2508_vm0, %v2474_v52, %v5903_v5  ;;  %v1976_v5 = vrot.slane %v1947_v54, 5  ;;  %v2580_v42 = vor.u32 %v2579_v6, %v2576_v22  ;;  %v4399_v54 = vld [vmem:[#allocation2 + $0x13c] sm:$0x8]  ;;  %v1475_v37 = vrot.slane %v1428_v29, 5 }
 0x208   : > { %v2008_v44 = vpop.permute.xlu0 %2007  ;;  %v2641_v0 = vshrl.u32 %v2528_v59, 16  ;;  %v2644_v25 = vshll.u32 %v2528_v59, 16 }
 0x209   : > { %v2512_v12 = vsel %vm2508_vm0, %v2462_v56, %v2008_v44  ;;  %2015 = vrot.lane.b32.xlu2 %v1965_v20, %s4615_s9  ;;  %v1977_v23 = vsel %vm900_vm4, %v1975_v31, %v1976_v5  ;;  %v4469_v56 = vld [vmem:[#allocation2 + $0x13c] sm:$0xf0]  }
 0x20a   : > { %v2581_v36 = vshrl.u32 %v2512_v12, 16  ;;  %v2584_v30 = vshll.u32 %v2512_v12, 16  ;;  %v2643_v38 = vrot.slane %v2641_v0, 3  ;;  %v2646_v27 = vrot.slane %v2644_v25, 4 }
 0x20b   : > { %2013 = vrot.lane.b32.xlu1 %v1963_v9, %s4615_s9  ;;  %v5954_v14 = vpop.permute.xlu2 %2041  ;;  %v6606_v9 = vrot.slane %v5094_v15, 5  ;;  %v4541_v15 = vld [vmem:[#allocation2 + $0x188] sm:$0xff]   ;;  %v4400_v6 = vor.u32 %v4469_v56, %v4399_v54 }
 0x20c   : > { %v2583_v4 = vrot.slane %v2581_v36, 3  ;;  %v2586_v32 = vrot.slane %v2584_v30, 4  ;;  %v1474_v33 = vrot.slane %v4541_v15, 5  ;;  %v2647_v12 = vor.u32 %v2646_v27, %v2643_v38  ;;  %v5977_v30 = vld [vmem:[#allocation2 + $0x1a0] sm:$0xff]   ;;  %v547_v38 = vld [vmem:[#allocation2 + $0x1a8] sm:$0x1] }
 0x20d   : > { %v2022_v46 = vpop.permute.xlu1 %2021  ;;  %v1464_v40 = vsel %vm900_vm4, %v6606_v9, %v1463_v17  ;;  %v5971_v17 = vld [vmem:[#allocation2 + $0x140] sm:$0xff]   ;;  %v4176_v5 = vunpack.c.h.b16 %v5977_v30 }
 0x20e   : > { %v2587_v11 = vor.u32 %v2586_v32, %v2583_v4  ;;  %v2526_v1 = vsel %vm2508_vm0, %v2473_v18, %v2022_v46  ;;  %2029 = vrot.lane.b32.xlu0 %v1975_v31, %s4615_s9  ;;  %v4160_v36 = vunpack.c.h.b16 %v5971_v17  ;;  %v1476_v25 = vsel %vm900_vm4, %v1474_v33, %v1475_v37  ;;  %v4415_v18 = vld [vmem:[#allocation2 + $0x19c] sm:$0x8]  ;;  %v4473_v46 = vld [vmem:[#allocation2 + $0x19c] sm:$0xf0]  }
 0x20f   : > { %v2634_v55 = vshrl.u32 %v2526_v1, 16  ;;  %v2637_v21 = vshll.u32 %v2526_v1, 16  ;;  %v1838_v4 = vshrl.u32 %v5971_v17, 16  ;;  %v1841_v32 = vshll.u32 %v5971_v17, 16 }
 0x210   : > { %v5964_v43 = vpop.permute.xlu0 %1529  ;;  %v2588_v58 = vsel %vm2573_vm1, %v2580_v42, %v2587_v11  ;;  %v1660_v61 = vpack.c.b16 %v4160_v36, %v4160_v36  ;;  %v543_v11 = vld [vmem:[#allocation2 + $0x148] sm:$0x1]  ;;  %v1668_v42 = vpack.c.b16 %v4176_v5, %v4176_v5  ;;  %v4416_v27 = vor.u32 %v4473_v46, %v4415_v18 }
 0x211   : > { %v2636_v52 = vrot.slane %v2634_v55, 3  ;;  %v2639_v20 = vrot.slane %v2637_v21, 4  ;;  %3960 = vmatmul.msk.bf16.vlgmr.msra.gmra.mxu0 %vm2838_vm2, %v2588_v58  ;;  %1523 = vrot.lane.b32.xlu2 %v1464_v40, %s4612_s6  ;;  %v1840_v9 = vrot.slane %v1838_v4, 4  ;;  %v1843_v40 = vrot.slane %v1841_v32, 5 }
 0x212   : > { %v1870_v55 = vshrl.u32 %v5977_v30, 16  ;;  %v1873_v21 = vshll.u32 %v5977_v30, 16  ;;  %v1936_v58 = vunpack.c.l.b16 %v543_v11 }
 0x213   : > { %v2640_v59 = vor.u32 %v2639_v20, %v2636_v52  ;;  %2031 = vrot.lane.b32.xlu1 %v1977_v23, %s4615_s9  ;;  %v2060_v44 = vpop.permute.xlu2 %2059  ;;  %v2432_v23 = vsel %vm2394_vm14, %v5806_v60, %v5920_v49  ;;  %v1940_v20 = vunpack.c.l.b16 %v547_v38 }
 0x214   : > { %v1952_v60 = vpack.c.b16 %v1936_v58, %v1936_v58 }
 0x215   : > { %v1532_v31 = vpop.permute.xlu1 %1531  ;;  %v2648_v22 = vsel %vm2573_vm1, %v2640_v59, %v2647_v12  ;;  %v1872_v59 = vrot.slane %v1870_v55, 4  ;;  %v1875_v12 = vrot.slane %v1873_v21, 5 }
 0x216   : > { %1537 = vrot.lane.b32.xlu0 %v1474_v33, %s4612_s6  ;;  %3964 = vmatmul.msk.bf16.vlgmr.msra.gmra.mxu1 %vm2838_vm2, %v2648_v22  ;;  %v2385_v15 = vsel %vm2329_vm12, %v5650_v24, %v1532_v31  ;;  %v1844_v33 = vor.u32 %v1843_v40, %v1840_v9  ;;  %v1990_v22 = vrot.slane %v5971_v17, 5  ;;  %v1991_v5 = vrot.slane %v1952_v60, 5  ;;  %v6027_v60 = vld [vmem:[#allocation2 + $0x80] sm:$0xff]  }
 0x217   : > { %v2450_v37 = vsel %vm2394_vm14, %v2385_v15, %v5935_v16  ;;  %v2002_v17 = vrot.slane %v5977_v30, 5 }
 0x218   : > { %v1708_v0 = vpop.permute.xlu0 %1707  ;;  %v1992_v38 = vsel %vm900_vm4, %v1990_v22, %v1991_v5  ;;  %v6035_v5 = vld [vmem:[#allocation2 + $0xe0] sm:$0xff]  }
 0x219   : > { %1713 = vrot.lane.b32.xlu2 %v4400_v6, %s4613_s7  ;;  %v1956_v6 = vpack.c.b16 %v1940_v20, %v1940_v20 }
 0x21b   : > { %1539 = vrot.lane.b32.xlu1 %v1476_v25, %s4612_s6  ;;  %v5985_v57 = vpop.permute.xlu2 %1689  ;;  %v1876_v25 = vor.u32 %v1875_v12, %v1872_v59  ;;  %v2003_v18 = vrot.slane %v1956_v6, 5  ;;  %v4461_v59 = vld [vmem:[#allocation2 + $0x7c] sm:$0xf0]   ;;  %v4383_v6 = vld [vmem:[#allocation2 + $0xdc] sm:$0x8]  ;;  %s3984_s6 = sshll.u32 %s4658_s16, 5 }
 0x21c   : > { %s3880_s16 = sshll.u32 %s6289_s30, 4  ;;  %s3881_s16 = int_to_ptr.vmem [resolvable:$true] %s3880_s16 }
 0x21d   : > { %v1722_v1 = vpop.permute.xlu1 %1721 }
 0x21e   : > { %1715 = vrot.lane.b32.xlu0 %v1660_v61, %s4613_s7 }
 0x220   : > { %v1896_v29 = vpop.permute.xlu0 %1895 }
 0x221   : > { %v2488_v52 = vsel %vm2459_vm15, %v2432_v23, %v1896_v29  ;;  %1731 = vrot.lane.b32.xlu2 %v1668_v42, %s4613_s7 }
 0x222   : > { %v2546_v54 = vsel %vm2508_vm0, %v2488_v52, %v5954_v14  ;;  %v2434_v14 = vsel %vm2394_vm14, %v5817_v51, %v1708_v0  ;;  %v2383_v51 = vsel %vm2329_vm12, %v5646_v47, %v5964_v43  ;;  %v2004_v43 = vsel %vm900_vm4, %v2002_v17, %v2003_v18  ;;  %v4367_v52 = vld [vmem:[#allocation2 + $0x7c] sm:$0x8] }
 0x223   : > { %1729 = vrot.lane.b32.xlu1 %v4416_v27, %s4613_s7  ;;  %v6000_v56 = vpop.permute.xlu2 %1887  ;;  %v2709_v36 = vshrl.u32 %v2546_v54, 16  ;;  %v2712_v24 = vshll.u32 %v2546_v54, 16  ;;  %v2489_v61 = vsel %vm2459_vm15, %v2434_v14, %v1896_v29  ;;  %v2448_v27 = vsel %vm2394_vm14, %v2383_v51, %v1722_v1 }
 0x224   : > { %v1809_v18 = vshll.u32 %v6035_v5, 16 }
 0x225   : > { %v1904_v49 = vpop.permute.xlu1 %1903  ;;  %v2711_v46 = vrot.slane %v2709_v36, 3  ;;  %v2714_v11 = vrot.slane %v2712_v24, 4  ;;  %v4465_v36 = vld [vmem:[#allocation2 + $0xdc] sm:$0xf0]  }
 0x226   : > { %v2501_v31 = vsel %vm2459_vm15, %v2450_v37, %v1904_v49  ;;  %1899 = vrot.lane.b32.xlu0 %v1844_v33, %s4614_s8  ;;  %v2500_v21 = vsel %vm2459_vm15, %v2448_v27, %v1904_v49 }
 0x227   : > { %v2564_v4 = vsel %vm2508_vm0, %v2501_v31, %v2060_v44  ;;  %v2715_v47 = vor.u32 %v2714_v11, %v2711_v46  ;;  %v1774_v11 = vshrl.u32 %v6027_v60, 16 }
 0x228   : > { %v2044_v32 = vpop.permute.xlu0 %2043  ;;  %v2776_v0 = vshrl.u32 %v2564_v4, 16  ;;  %v2779_v40 = vshll.u32 %v2564_v4, 16 }
 0x229   : > { %v2548_v16 = vsel %vm2508_vm0, %v2489_v61, %v2044_v32  ;;  %2049 = vrot.lane.b32.xlu2 %v1990_v22, %s4615_s9  ;;  %v4368_v22 = vor.u32 %v4461_v59, %v4367_v52  ;;  %v4384_v32 = vor.u32 %v4465_v36, %v4383_v6 }
 0x22a   : > { %v2716_v42 = vshrl.u32 %v2548_v16, 16  ;;  %v2719_v9 = vshll.u32 %v2548_v16, 16  ;;  %v2778_v20 = vrot.slane %v2776_v0, 3  ;;  %v2781_v15 = vrot.slane %v2779_v40, 4  ;;  %v535_v40 = vld [vmem:[#allocation2 + $0x88] sm:$0x1] }
 0x22b   : > { %1907 = vrot.lane.b32.xlu1 %v1876_v25, %s4614_s8  ;;  %v6018_v44 = vpop.permute.xlu2 %2025  ;;  %v4128_v25 = vunpack.c.h.b16 %v6027_v60  ;;  %v1806_v16 = vshrl.u32 %v6035_v5, 16  ;;  %v1811_v0 = vrot.slane %v1809_v18, 5 }
 0x22c   : > { %v2718_v30 = vrot.slane %v2716_v42, 3  ;;  %v2721_v55 = vrot.slane %v2719_v9, 4  ;;  %v2782_v14 = vor.u32 %v2781_v15, %v2778_v20  ;;  %v1777_v42 = vshll.u32 %v6027_v60, 16 }
 0x22d   : > { %v2058_v58 = vpop.permute.xlu1 %2057  ;;  %v1644_v46 = vpack.c.b16 %v4128_v25, %v4128_v25  ;;  %v1808_v51 = vrot.slane %v1806_v16, 4 }
 0x22e   : > { %v2722_v23 = vor.u32 %v2721_v55, %v2718_v30  ;;  %v2562_v29 = vsel %vm2508_vm0, %v2500_v21, %v2058_v58  ;;  %2051 = vrot.lane.b32.xlu0 %v1992_v38, %s4615_s9  ;;  %v1776_v30 = vrot.slane %v1774_v11, 4  ;;  %v1779_v55 = vrot.slane %v1777_v42, 5  ;;  %v539_v21 = vld [vmem:[#allocation2 + $0xe8] sm:$0x1] }
 0x22f   : > { %v2769_v33 = vshrl.u32 %v2562_v29, 16  ;;  %v2772_v54 = vshll.u32 %v2562_v29, 16  ;;  %v1928_v58 = vunpack.c.l.b16 %v535_v40  ;;  %v1932_v52 = vunpack.c.l.b16 %v539_v21 }
 0x230   : > { %v1674_v1 = vpop.permute.xlu0 %1673  ;;  %v2723_v12 = vsel %vm2573_vm1, %v2715_v47, %v2722_v23  ;;  %v1812_v47 = vor.u32 %v1811_v0, %v1808_v51  ;;  %v1780_v20 = vor.u32 %v1779_v55, %v1776_v30 }
 0x231   : > { %v2771_v49 = vrot.slane %v2769_v33, 3  ;;  %v2774_v37 = vrot.slane %v2772_v54, 4  ;;  %3969 = vmatmul.msk.bf16.gmra.mxu2 %vm2838_vm2, %v2723_v12  ;;  %2067 = vrot.lane.b32.xlu2 %v2004_v43, %s4615_s9  ;;  %v2400_v23 = vsel %vm2394_vm14, %v5602_v41, %v1674_v1  ;;  %v1944_v33 = vpack.c.b16 %v1928_v58, %v1928_v58 }
 0x232   : > { %v2416_v54 = vsel %vm2394_vm14, %v5759_v8, %v5985_v57  ;;  %v1966_v1 = vrot.slane %v6027_v60, 5  ;;  %v1948_v12 = vpack.c.b16 %v1932_v52, %v1932_v52 }
 0x233   : > { %v2775_v24 = vor.u32 %v2774_v37, %v2771_v49  ;;  %2065 = vrot.lane.b32.xlu1 %v2002_v17, %s4615_s9  ;;  %v6032_v31 = vpop.permute.xlu2 %1535  ;;  %v4144_v17 = vunpack.c.h.b16 %v6035_v5  ;;  %v2476_v41 = vsel %vm2459_vm15, %v2416_v54, %v6000_v56  ;;  %v1967_v57 = vrot.slane %v1944_v33, 5 }
 0x234   : > { %v2530_v49 = vsel %vm2508_vm0, %v2476_v41, %v6018_v44 }
 0x235   : > { %v1676_v61 = vpop.permute.xlu1 %1675  ;;  %v2783_v4 = vsel %vm2573_vm1, %v2775_v24, %v2782_v14  ;;  %v1652_v38 = vpack.c.b16 %v4144_v17, %v4144_v17  ;;  %v1978_v14 = vrot.slane %v6035_v5, 5  ;;  %v2649_v25 = vshrl.u32 %v2530_v49, 16 }
 0x236   : > { %1681 = vrot.lane.b32.xlu0 %v4368_v22, %s4613_s7  ;;  %3973 = vmatmul.msk.bf16.gmra.mxu3 %vm2838_vm2, %v2783_v4  ;;  %v2402_v8 = vsel %vm2394_vm14, %v5709_v53, %v1676_v61  ;;  %v2652_v44 = vshll.u32 %v2530_v49, 16 }
 0x238   : > { %v1692_v9 = vpop.permute.xlu0 %1691  ;;  %v2654_v51 = vrot.slane %v2652_v44, 4 }
 0x239   : > { %1697 = vrot.lane.b32.xlu2 %v4384_v32, %s4613_s7  ;;  %v2418_v36 = vsel %vm2394_vm14, %v5696_v26, %v1692_v9  ;;  %v1979_v32 = vrot.slane %v1948_v12, 5  ;;  %v2651_v9 = vrot.slane %v2649_v25, 3 }
 0x23a   : > { %v2477_v61 = vsel %vm2459_vm15, %v2418_v36, %v6000_v56 }
 0x23b   : > { %1683 = vrot.lane.b32.xlu1 %v1644_v46, %s4613_s7  ;;  %v6047_v27 = vpop.permute.xlu2 %1725  ;;  %v1968_v46 = vsel %vm900_vm4, %v1966_v1, %v1967_v57  ;;  %v1980_v56 = vsel %vm900_vm4, %v1978_v14, %v1979_v32  ;;  %vm3782_vm4 = vcmask 1042434  }
 0x23d   : > { %v1880_v29 = vpop.permute.xlu1 %1879 }
 0x23e   : > { %v2464_v43 = vsel %vm2459_vm15, %v2400_v23, %v1880_v29  ;;  %1699 = vrot.lane.b32.xlu0 %v1652_v38, %s4613_s7  ;;  %v2465_v24 = vsel %vm2459_vm15, %v2402_v8, %v1880_v29 }
 0x240   : > { %v2010_v15 = vpop.permute.xlu0 %2009 }
 0x241   : > { %v2514_v59 = vsel %vm2508_vm0, %v2464_v43, %v2010_v15  ;;  %1891 = vrot.lane.b32.xlu2 %v1812_v47, %s4614_s8  ;;  %v2655_v47 = vor.u32 %v2654_v51, %v2651_v9 }
 0x242   : > { %v2589_v37 = vshrl.u32 %v2514_v59, 16  ;;  %v2592_v22 = vshll.u32 %v2514_v59, 16 }
 0x243   : > { %1883 = vrot.lane.b32.xlu1 %v1780_v20, %s4614_s8  ;;  %v6064_v6 = vpop.permute.xlu2 %1905 }
 0x244   : > { %v2591_v16 = vrot.slane %v2589_v37, 3  ;;  %v2594_v18 = vrot.slane %v2592_v22, 4 }
 0x245   : > { %v2012_v60 = vpop.permute.xlu1 %2011 }
 0x246   : > { %v2516_v4 = vsel %vm2508_vm0, %v2465_v24, %v2012_v60  ;;  %2017 = vrot.lane.b32.xlu0 %v1966_v1, %s4615_s9  ;;  %v2595_v38 = vor.u32 %v2594_v18, %v2591_v16 }
 0x247   : > { %v2596_v17 = vshrl.u32 %v2516_v4, 16  ;;  %v2599_v53 = vshll.u32 %v2516_v4, 16 }
 0x248   : > { %v2028_v26 = vpop.permute.xlu0 %2027 }
 0x249   : > { %v2598_v11 = vrot.slane %v2596_v17, 3  ;;  %v2601_v42 = vrot.slane %v2599_v53, 4  ;;  %v2532_v5 = vsel %vm2508_vm0, %v2477_v61, %v2028_v26  ;;  %2033 = vrot.lane.b32.xlu2 %v1978_v14, %s4615_s9 }
 0x24a   : > { %v2656_v0 = vshrl.u32 %v2532_v5, 16  ;;  %v2659_v40 = vshll.u32 %v2532_v5, 16 }
 0x24b   : > { %v2602_v30 = vor.u32 %v2601_v42, %v2598_v11  ;;  %2019 = vrot.lane.b32.xlu1 %v1968_v46, %s4615_s9  ;;  %v2062_v55 = vpop.permute.xlu2 %2061 }
 0x24c   : > { %v2658_v21 = vrot.slane %v2656_v0, 3  ;;  %v2661_v58 = vrot.slane %v2659_v40, 4 }
 0x24d   : > { %v1534_v23 = vpop.permute.xlu1 %1533  ;;  %v2603_v29 = vsel %vm2573_vm1, %v2595_v38, %v2602_v30 }
 0x24e   : > { %v2662_v43 = vor.u32 %v2661_v58, %v2658_v21  ;;  %2035 = vrot.lane.b32.xlu0 %v1980_v56, %s4615_s9  ;;  %3961 = vmatmul.msk.bf16.gmra.mxu0 %vm2838_vm2, %v2603_v29  ;;  %v2387_v59 = vsel %vm2329_vm12, %v5669_v3, %v1534_v23  ;;  %s3879_s9 = scalar_lea.hbm %s6500_s3, %s3984_s6 }
 0x24f   : > { %v2452_v1 = vsel %vm2394_vm14, %v2387_v59, %v6047_v27  ;;  %v2389_v27 = vsel %vm2329_vm12, %v5673_v50, %v6032_v31  ;;  %s3882_s10 = sshll.u32 %s3879_s9, 4  ;;  %s3883_s10 = int_to_ptr.hbm [resolvable:$true] %s3882_s10 }
 0x250   : > { %v1710_v52 = vpop.permute.xlu0 %1709  ;;  %v2663_v20 = vsel %vm2573_vm1, %v2655_v47, %v2662_v43  ;;  %v2503_v22 = vsel %vm2459_vm15, %v2452_v1, %v6064_v6  ;;  %s4557_s17 = sshra.s32 %s3883_s10, 4  ;;  %s4558_s17 = int_to_ptr.hbm [resolvable:$true] %s4557_s17 }
 0x251   : > { %3965 = vmatmul.msk.bf16.gmra.mxu1 %vm2838_vm2, %v2663_v20  ;;  %v2436_v12 = vsel %vm2394_vm14, %v5755_v63, %v1710_v52  ;;  %v2566_v36 = vsel %vm2508_vm0, %v2503_v22, %v2062_v55  ;;  %s4559_s19 = scalar_lea.hbm %s4558_s17, 32  ;;  %p4564_p0 = scmp.lt.s32.totalorder %s4558_s17, %s6500_s3 }
 0x252   : > { %v2784_v32 = vshrl.u32 %v2566_v36, 16  ;;  %v2787_v16 = vshll.u32 %v2566_v36, 16  ;;  %p4560_p11 = scmp.ne.s32.totalorder %s4558_s17, %s4559_s19  ;;  %p4565_p1 = scmp.lt.s32.totalorder %s4563_s25, %s4559_s19 }
 0x253   : > { %v1680_v15 = vpop.permute.xlu2 %1679 }
 0x254   : > { %v2786_v5 = vrot.slane %v2784_v32, 3  ;;  %v2789_v9 = vrot.slane %v2787_v16, 4  ;;  %v2406_v47 = vsel %vm2394_vm14, %v5628_v13, %v1680_v15  ;;  %p4561_p12 = pnand %p4560_p11, %p4675_p5  ;;  %p4566_p2 = por %p4565_p1, %p4564_p0 }
 0x255   : > { %v1712_v33 = vpop.permute.xlu1 %1711 }
 0x256   : > { %v2438_v63 = vsel %vm2394_vm14, %v5826_v45, %v1712_v33  ;;  %p4562_p13 = pneg %p4561_p12 }
 0x258   : > { %v1728_v54 = vpop.permute.xlu0 %1727  ;;  %p4567_p3 = pnand %p4566_p2, %p4562_p13 }
 0x259   : > { %v2454_v14 = vsel %vm2394_vm14, %v2389_v27, %v1728_v54 }
 0x25a   : > { %v2504_v26 = vsel %vm2459_vm15, %v2454_v14, %v6064_v6  ;;  %v2790_v6 = vor.u32 %v2789_v9, %v2786_v5 }
 0x25b   : > { %v1882_v41 = vpop.permute.xlu2 %1881 }
 0x25c   : > { %v2468_v52 = vsel %vm2459_vm15, %v2406_v47, %v1882_v41 }
 0x25d   : > { %v1898_v49 = vpop.permute.xlu1 %1897 }
 0x25e   : > { %v2491_v37 = vsel %vm2459_vm15, %v2436_v12, %v1898_v49  ;;  %v2492_v25 = vsel %vm2459_vm15, %v2438_v63, %v1898_v49 }
 0x260   : > { %v2046_v8 = vpop.permute.xlu0 %2045 }
 0x261   : > { %v2550_v57 = vsel %vm2508_vm0, %v2491_v37, %v2046_v8 }
 0x262   : > { %v2724_v24 = vshrl.u32 %v2550_v57, 16  ;;  %v2727_v3 = vshll.u32 %v2550_v57, 16 }
 0x263   : > { %v2016_v60 = vpop.permute.xlu2 %2015 }
 0x264   : > { %v2726_v18 = vrot.slane %v2724_v24, 3  ;;  %v2729_v17 = vrot.slane %v2727_v3, 4  ;;  %v2520_v20 = vsel %vm2508_vm0, %v2468_v52, %v2016_v60 }
 0x265   : > { %v2048_v44 = vpop.permute.xlu1 %2047  ;;  %v2611_v54 = vshrl.u32 %v2520_v20, 16  ;;  %v2614_v1 = vshll.u32 %v2520_v20, 16 }
 0x266   : > { %v2552_v4 = vsel %vm2508_vm0, %v2492_v25, %v2048_v44  ;;  %v2730_v51 = vor.u32 %v2729_v17, %v2726_v18 }
 0x267   : > { %v2731_v53 = vshrl.u32 %v2552_v4, 16  ;;  %v2734_v61 = vshll.u32 %v2552_v4, 16  ;;  %v2613_v22 = vrot.slane %v2611_v54, 3  ;;  %v2616_v57 = vrot.slane %v2614_v1, 4 }
 0x268   : > { %v2064_v50 = vpop.permute.xlu0 %2063 }
 0x269   : > { %v2733_v31 = vrot.slane %v2731_v53, 3  ;;  %v2736_v46 = vrot.slane %v2734_v61, 4  ;;  %v2568_v45 = vsel %vm2508_vm0, %v2504_v26, %v2064_v50  ;;  %v2617_v63 = vor.u32 %v2616_v57, %v2613_v22 }
 0x26a   : > { %v2791_v11 = vshrl.u32 %v2568_v45, 16  ;;  %v2794_v42 = vshll.u32 %v2568_v45, 16 }
 0x26b   : > { %v2737_v0 = vor.u32 %v2736_v46, %v2733_v31  ;;  %v6108_v40 = vpop.permute.xlu2 %1523 }
 0x26c   : > { %v2793_v38 = vrot.slane %v2791_v11, 3  ;;  %v2796_v30 = vrot.slane %v2794_v42, 4 }
 0x26d   : > { %v1678_v55 = vpop.permute.xlu1 %1677  ;;  %v2738_v56 = vsel %vm2573_vm1, %v2730_v51, %v2737_v0 }
 0x26e   : > { %v2797_v21 = vor.u32 %v2796_v30, %v2793_v38  ;;  %3970 = vmatmul.msk.bf16.gmra.mxu2 %vm2838_vm2, %v2738_v56  ;;  %v2404_v59 = vsel %vm2394_vm14, %v5719_v10, %v1678_v55 }
 0x26f   : > { %v2467_v49 = vsel %vm2459_vm15, %v2404_v59, %v1882_v41 }
 0x270   : > { %v1694_v58 = vpop.permute.xlu0 %1693  ;;  %v2798_v23 = vsel %vm2573_vm1, %v2790_v6, %v2797_v21 }
 0x271   : > { %3974 = vmatmul.msk.bf16.gmra.mxu3 %vm2838_vm2, %v2798_v23  ;;  %v2420_v13 = vsel %vm2394_vm14, %v5768_v28, %v1694_v58  ;;  %v2377_v23 = vsel %vm2329_vm12, %v5637_v19, %v6108_v40 }
 0x273   : > { %v1714_v29 = vpop.permute.xlu2 %1713 }
 0x274   : > { %v2440_v0 = vsel %vm2394_vm14, %v5836_v34, %v1714_v29 }
 0x275   : > { %v1696_v43 = vpop.permute.xlu1 %1695 }
 0x276   : > { %v2422_v41 = vsel %vm2394_vm14, %v5782_v62, %v1696_v43 }
 0x278   : > { %v1890_v33 = vpop.permute.xlu0 %1889 }
 0x279   : > { %v2479_v24 = vsel %vm2459_vm15, %v2420_v13, %v1890_v33  ;;  %v2480_v32 = vsel %vm2459_vm15, %v2422_v41, %v1890_v33  ;;  %v2940_v54 = vpop.f32.mrf.mxu2 }
 0x27b   : > { %v1732_v12 = vpop.permute.xlu2 %1731 }
 0x27d   : > { %v2014_v37 = vpop.permute.xlu1 %2013 }
 0x27e   : > { %v2518_v8 = vsel %vm2508_vm0, %v2467_v49, %v2014_v37 }
 0x27f   : > { %v2604_v15 = vshrl.u32 %v2518_v8, 16  ;;  %v2607_v36 = vshll.u32 %v2518_v8, 16 }
 0x280   : > { %v2030_v3 = vpop.permute.xlu0 %2029 }
 0x281   : > { %v2606_v60 = vrot.slane %v2604_v15, 3  ;;  %v2609_v27 = vrot.slane %v2607_v36, 4  ;;  %v2534_v10 = vsel %vm2508_vm0, %v2479_v24, %v2030_v3 }
 0x282   : > { %v2664_v25 = vshrl.u32 %v2534_v10, 16  ;;  %v2667_v44 = vshll.u32 %v2534_v10, 16 }
 0x283   : > { %v2610_v14 = vor.u32 %v2609_v27, %v2606_v60  ;;  %v2050_v4 = vpop.permute.xlu2 %2049  ;;  %v2960_v27 = vpop.f32.mrf.mxu3 }
 0x284   : > { %v2666_v17 = vrot.slane %v2664_v25, 3  ;;  %v2669_v53 = vrot.slane %v2667_v44, 4 }
 0x285   : > { %v2032_v28 = vpop.permute.xlu1 %2031  ;;  %v2618_v16 = vsel %vm2573_vm1, %v2610_v14, %v2617_v63 }
 0x286   : > { %v2536_v18 = vsel %vm2508_vm0, %v2480_v32, %v2032_v28  ;;  %3962 = vmatmul.msk.bf16.gmra.mxu0 %vm2838_vm2, %v2618_v16  ;;  %v2670_v46 = vor.u32 %v2669_v53, %v2666_v17  ;;  %v2942_v16 = vpop.f32.mrf.mxu2 }
 0x287   : > { %v2671_v61 = vshrl.u32 %v2536_v18, 16  ;;  %v2674_v26 = vshll.u32 %v2536_v18, 16 }
 0x288   : > { %v1538_v50 = vpop.permute.xlu0 %1537 }
 0x289   : > { %v2673_v62 = vrot.slane %v2671_v61, 3  ;;  %v2676_v31 = vrot.slane %v2674_v26, 4  ;;  %v2391_v40 = vsel %vm2329_vm12, %v5560_v2, %v1538_v50  ;;  %v6167_v50 = vld [vmem:[%s6499_s2] ss:$0 sm:$0xff] }
 0x28b   : > { %v2677_v45 = vor.u32 %v2676_v31, %v2673_v62  ;;  %v2068_v5 = vpop.permute.xlu2 %2067 }
 0x28d   : > { %v1540_v11 = vpop.permute.xlu1 %1539  ;;  %v2678_v42 = vsel %vm2573_vm1, %v2670_v46, %v2677_v45  ;;  %v2962_v46 = vpop.f32.mrf.mxu3 }
 0x28e   : > { %3966 = vmatmul.msk.bf16.gmra.mxu1 %vm2838_vm2, %v2678_v42  ;;  %v2393_v56 = vsel %vm2329_vm12, %v5563_v48, %v1540_v11  ;;  %v2900_v45 = vpop.f32.mrf.mxu0 }
 0x28f   : > { %v2458_v58 = vsel %vm2394_vm14, %v2393_v56, %v1732_v12 }
 0x290   : > { %v1716_v9 = vpop.permute.xlu0 %1715 }
 0x291   : > { %v2442_v29 = vsel %vm2394_vm14, %v2377_v23, %v1716_v9  ;;  %v6172_v9 = vadd.f32 %v6167_v50, %v2942_v16 }
 0x293   : > { %v1698_v38 = vpop.permute.xlu2 %1697  ;;  %v2920_v11 = vpop.f32.mrf.mxu1 }
 0x294   : > { %v2424_v17 = vsel %vm2394_vm14, %v5715_v39, %v1698_v38  ;;  %v6179_v38 = vadd.f32 %v6167_v50, %v2900_v45 }
 0x295   : > { %v1730_v51 = vpop.permute.xlu1 %1729 }
 0x296   : > { %v2456_v8 = vsel %vm2394_vm14, %v2391_v40, %v1730_v51  ;;  %v2961_v51 = vadd.f32 %v6167_v50, %v2960_v27 }
 0x298   : > { %v1900_v30 = vpop.permute.xlu0 %1899 }
 0x299   : > { %v2494_v55 = vsel %vm2459_vm15, %v2440_v0, %v1900_v30  ;;  %v2495_v52 = vsel %vm2459_vm15, %v2442_v29, %v1900_v30  ;;  %v6176_v0 = vadd.f32 %v6167_v50, %v2962_v46  ;;  %v2997_v29 = vmax.f32 %v6172_v9, 0.0 }
 0x29a   : > { %v2554_v21 = vsel %vm2508_vm0, %v2494_v55, %v2050_v4  ;;  %v6182_v55 = vadd.f32 %v6167_v50, %v2920_v11 }
 0x29b   : > { %v2739_v47 = vshrl.u32 %v2554_v21, 16  ;;  %v2742_v43 = vshll.u32 %v2554_v21, 16  ;;  %v6149_v12 = vpop.permute.xlu2 %1891 }
 0x29c   : > { %v2482_v26 = vsel %vm2459_vm15, %v2424_v17, %v6149_v12 }
 0x29d   : > { %v1908_v6 = vpop.permute.xlu1 %1907  ;;  %v2741_v59 = vrot.slane %v2739_v47, 3  ;;  %v2744_v1 = vrot.slane %v2742_v43, 4 }
 0x29e   : > { %v2507_v34 = vsel %vm2459_vm15, %v2458_v58, %v1908_v6  ;;  %v2506_v15 = vsel %vm2459_vm15, %v2456_v8, %v1908_v6 }
 0x29f   : > { %v2572_v20 = vsel %vm2508_vm0, %v2507_v34, %v2068_v5  ;;  %v2745_v60 = vor.u32 %v2744_v1, %v2741_v59  ;;  %v2941_v5 = vadd.f32 %v6167_v50, %v2940_v54 }
 0x2a0   : > { %v2052_v48 = vpop.permute.xlu0 %2051  ;;  %v2806_v37 = vshrl.u32 %v2572_v20, 16  ;;  %v2809_v22 = vshll.u32 %v2572_v20, 16  ;;  %v3005_v20 = vmax.f32 %v6176_v0, 0.0 }
 0x2a1   : > { %v2556_v33 = vsel %vm2508_vm0, %v2495_v52, %v2052_v48  ;;  %v2996_v43 = vmax.f32 %v2941_v5, 0.0  ;;  %v3004_v52 = vmax.f32 %v2961_v51, 0.0 }
 0x2a2   : > { %v2746_v49 = vshrl.u32 %v2556_v33, 16  ;;  %v2749_v19 = vshll.u32 %v2556_v33, 16  ;;  %v2808_v10 = vrot.slane %v2806_v37, 3  ;;  %v2811_v41 = vrot.slane %v2809_v22, 4 }
 0x2a3   : > { %v2034_v18 = vpop.permute.xlu2 %2033  ;;  %v2988_v33 = vmax.f32 %v6182_v55, 0.0 }
 0x2a4   : > { %v2748_v57 = vrot.slane %v2746_v49, 3  ;;  %v2751_v13 = vrot.slane %v2749_v19, 4  ;;  %v2812_v28 = vor.u32 %v2811_v41, %v2808_v10  ;;  %v2538_v62 = vsel %vm2508_vm0, %v2482_v26, %v2034_v18 }
 0x2a5   : > { %v2066_v36 = vpop.permute.xlu1 %2065  ;;  %v2679_v39 = vshrl.u32 %v2538_v62, 16  ;;  %v2682_v42 = vshll.u32 %v2538_v62, 16 }
 0x2a6   : > { %v2752_v24 = vor.u32 %v2751_v13, %v2748_v57  ;;  %v2570_v3 = vsel %vm2508_vm0, %v2506_v15, %v2066_v36  ;;  %v6607_v36 = vld [vmem:[#allocation14_spill] sm:$0xff] }
 0x2a7   : > { %v2799_v63 = vshrl.u32 %v2570_v3, 16  ;;  %v2802_v14 = vshll.u32 %v2570_v3, 16  ;;  %v6189_v58 = vrot.slane %v2679_v39, 3  ;;  %v6191_v23 = vrot.slane %v2682_v42, 4 }
 0x2a8   : > { %v1682_v25 = vpop.permute.xlu0 %1681  ;;  %v2753_v2 = vsel %vm2573_vm1, %v2745_v60, %v2752_v24 }
 0x2a9   : > { %v2801_v44 = vrot.slane %v2799_v63, 3  ;;  %v2804_v4 = vrot.slane %v2802_v14, 4  ;;  %3971 = vmatmul.msk.bf16.gmra.mxu2 %vm2838_vm2, %v2753_v2  ;;  %v2408_v56 = vsel %vm2394_vm14, %v5724_v7, %v1682_v25  ;;  %v2980_v7 = vmax.f32 %v6179_v38, 0.0 }
 0x2aa   : > { %v2685_v19 = vor.u32 %v6191_v23, %v6189_v58 }
 0x2ab   : > { %v2805_v32 = vor.u32 %v2804_v4, %v2801_v44 }
 0x2ad   : > { %v1684_v53 = vpop.permute.xlu1 %1683  ;;  %v2813_v61 = vsel %vm2573_vm1, %v2805_v32, %v2812_v28 }
 0x2ae   : > { %3975 = vmatmul.msk.bf16.gmra.mxu3 %vm2838_vm2, %v2813_v61  ;;  %v6208_v24 = vsel %vm2394_vm14, %v6607_v36, %v1684_v53 }
 0x2b0   : > { %v1700_v31 = vpop.permute.xlu0 %1699 }
 0x2b1   : > { %v2426_v54 = vsel %vm2394_vm14, %v5790_v35, %v1700_v31 }
 0x2b2   : > { %v6212_v27 = vsel %vm2459_vm15, %v2426_v54, %v6149_v12 }
 0x2b4   : > { %v2945_v30 = vpop.f32.mrf.mxu2 }
 0x2b5   : > { %v2946_v21 = vadd.f32 %v6167_v50, %v2945_v30  ;;  %v6187_v6 = vpop.permute.xlu1 %1883 }
 0x2b6   : > { %v2470_v47 = vsel %vm2459_vm15, %v2408_v56, %v6187_v6 }
 0x2b7   : > { %v2998_v34 = vmax.f32 %v2946_v21, 0.0 }
 0x2b8   : > { %v2018_v48 = vpop.permute.xlu0 %2017 }
 0x2b9   : > { %v3020_v59 = vmax.f32 %v2996_v43, %v2998_v34  ;;  %v2522_v1 = vsel %vm2508_vm0, %v2470_v47, %v2018_v48  ;;  %v2965_v49 = vpop.f32.mrf.mxu3 }
 0x2ba   : > { %v2619_v40 = vshrl.u32 %v2522_v1, 16  ;;  %v2622_v37 = vshll.u32 %v2522_v1, 16  ;;  %v2966_v22 = vadd.f32 %v6167_v50, %v2965_v49 }
 0x2bb   : > { %v3068_v8 = vrot.slane %v3020_v59, 2  ;;  %v3069_v57 = vrot.slane %v3020_v59, 4  ;;  %v3070_v13 = vrot.slane %v3020_v59, 6  ;;  %v3364_v15 = vsel %vm2887_vm13, %v3020_v59, -inf }
 0x2bc   : > { %v3365_v35 = vrot.slane %v3364_v15, 4  ;;  %v3006_v3 = vmax.f32 %v2966_v22, 0.0  ;;  %v2947_v60 = vpop.f32.mrf.mxu2  ;;  %v6220_v32 = vrot.slane %v2619_v40, 3  ;;  %v6222_v28 = vrot.slane %v2622_v37, 4 }
 0x2bd   : > { %v3371_v10 = vsel %vm2887_vm13, %v3068_v8, -inf  ;;  %v3378_v41 = vsel %vm2887_vm13, %v3069_v57, -inf  ;;  %v3385_v63 = vsel %vm2887_vm13, %v3070_v13, -inf  ;;  %v6218_v14 = vadd.f32 %v6167_v50, %v2947_v60 }
 0x2be   : > { %v3366_v25 = vmax.f32 %v3364_v15, %v3365_v35  ;;  %v3372_v2 = vrot.slane %v3371_v10, 4  ;;  %v3379_v44 = vrot.slane %v3378_v41, 4  ;;  %v3386_v4 = vrot.slane %v3385_v63, 4 }
 0x2bf   : > { %v3024_v16 = vmax.f32 %v3004_v52, %v3006_v3  ;;  %v2999_v12 = vmax.f32 %v6218_v14, 0.0 }
 0x2c0   : > { %v3367_v18 = vrot.slane %v3366_v25, 2  ;;  %v3373_v17 = vmax.f32 %v3371_v10, %v3372_v2  ;;  %v3380_v53 = vmax.f32 %v3378_v41, %v3379_v44  ;;  %v3387_v61 = vmax.f32 %v3385_v63, %v3386_v4 }
 0x2c1   : > { %v3080_v26 = vrot.slane %v3024_v16, 2  ;;  %v3081_v62 = vrot.slane %v3024_v16, 4  ;;  %v3082_v31 = vrot.slane %v3024_v16, 6  ;;  %v3476_v46 = vsel %vm2887_vm13, %v3024_v16, -inf }
 0x2c2   : > { %v3368_v45 = vmax.f32 %v3366_v25, %v3367_v18  ;;  %v3374_v11 = vrot.slane %v3373_v17, 2  ;;  %v3381_v39 = vrot.slane %v3380_v53, 2  ;;  %v3388_v42 = vrot.slane %v3387_v61, 2 }
 0x2c3   : > { %v3477_v5 = vrot.slane %v3476_v46, 4  ;;  %v3483_v51 = vsel %vm2887_vm13, %v3080_v26, -inf  ;;  %v3490_v30 = vsel %vm2887_vm13, %v3081_v62, -inf  ;;  %v3497_v56 = vsel %vm2887_vm13, %v3082_v31, -inf }
 0x2c4   : > { %v3369_v21 = vrot.slane %v3368_v45, 1  ;;  %v3375_v47 = vmax.f32 %v3373_v17, %v3374_v11  ;;  %v3382_v43 = vmax.f32 %v3380_v53, %v3381_v39  ;;  %v3389_v34 = vmax.f32 %v3387_v61, %v3388_v42 }
 0x2c5   : > { %v3478_v52 = vmax.f32 %v3476_v46, %v3477_v5  ;;  %v3484_v48 = vrot.slane %v3483_v51, 4  ;;  %v3491_v54 = vrot.slane %v3490_v30, 4  ;;  %v3498_v59 = vrot.slane %v3497_v56, 4 }
 0x2c6   : > { %v3370_v1 = vmax.f32 %v3368_v45, %v3369_v21  ;;  %v3376_v49 = vrot.slane %v3375_v47, 1  ;;  %v3383_v40 = vrot.slane %v3382_v43, 1  ;;  %v3390_v37 = vrot.slane %v3389_v34, 1 }
 0x2c7   : > { %v3479_v22 = vrot.slane %v3478_v52, 2  ;;  %v3485_v8 = vmax.f32 %v3483_v51, %v3484_v48  ;;  %v3492_v57 = vmax.f32 %v3490_v30, %v3491_v54  ;;  %v3499_v13 = vmax.f32 %v3497_v56, %v3498_v59  ;;  %v2020_v48 = vpop.permute.xlu1 %2019 }
 0x2c8   : > { %v3377_v15 = vmax.f32 %v3375_v47, %v3376_v49  ;;  %v3384_v36 = vmax.f32 %v3382_v43, %v3383_v40  ;;  %v3391_v35 = vmax.f32 %v3389_v34, %v3390_v37  ;;  %v3620_v3 = vpack.c.bf16 %v3370_v1, %v3370_v1 }
 0x2c9   : > { %v3480_v60 = vmax.f32 %v3478_v52, %v3479_v22  ;;  %v3486_v10 = vrot.slane %v3485_v8, 2  ;;  %v3493_v41 = vrot.slane %v3492_v57, 2  ;;  %v3500_v63 = vrot.slane %v3499_v13, 2 }
 0x2ca   : > { %v3621_v14 = vpack.c.bf16 %v3377_v15, %v3377_v15  ;;  %v3622_v25 = vpack.c.bf16 %v3384_v36, %v3384_v36  ;;  %v2471_v2 = vsel %vm2459_vm15, %v6208_v24, %v6187_v6  ;;  %v2625_v44 = vor.u32 %v6222_v28, %v6220_v32 }
 0x2cb   : > { %v3481_v4 = vrot.slane %v3480_v60, 1  ;;  %v3487_v16 = vmax.f32 %v3485_v8, %v3486_v10  ;;  %v3494_v18 = vmax.f32 %v3492_v57, %v3493_v41  ;;  %v3501_v17 = vmax.f32 %v3499_v13, %v3500_v63  ;;  %v6242_v57 = vpop.f32.mrf.mxu0 }
 0x2cc   : > { %v3623_v53 = vpack.c.bf16 %v3391_v35, %v3391_v35  ;;  %v3748_v61 = vunpack.c.l.b16 %v3620_v3  ;;  %v3749_v26 = vunpack.c.l.b16 %v3621_v14  ;;  %v3021_v62 = vmax.f32 %v2997_v29, %v2999_v12 }
 0x2cd   : > { %v3482_v31 = vmax.f32 %v3480_v60, %v3481_v4  ;;  %v3488_v46 = vrot.slane %v3487_v16, 1  ;;  %v3495_v45 = vrot.slane %v3494_v18, 1  ;;  %v3502_v11 = vrot.slane %v3501_v17, 1  ;;  %v2036_v4 = vpop.permute.xlu0 %2035 }
 0x2ce   : > { %v3750_v39 = vunpack.c.l.b16 %v3622_v25  ;;  %v3071_v42 = vrot.slane %v3021_v62, 2  ;;  %v3072_v6 = vrot.slane %v3021_v62, 4  ;;  %v3073_v24 = vrot.slane %v3021_v62, 6 }
 0x2cf   : > { %v3815_v5 = vsel %vm3780_vm3, %v3749_v26, %v3748_v61  ;;  %v3489_v51 = vmax.f32 %v3487_v16, %v3488_v46  ;;  %v3496_v30 = vmax.f32 %v3494_v18, %v3495_v45  ;;  %v3503_v56 = vmax.f32 %v3501_v17, %v3502_v11  ;;  %v2967_v16 = vpop.f32.mrf.mxu3 }
 0x2d0   : > { %v3751_v21 = vunpack.c.l.b16 %v3623_v53  ;;  %v3636_v47 = vpack.c.bf16 %v3482_v31, %v3482_v31  ;;  %v3392_v43 = vsel %vm2887_vm13, %v3021_v62, -inf  ;;  %v3399_v9 = vsel %vm2887_vm13, %v3071_v42, -inf }
 0x2d1   : > { %v3637_v29 = vpack.c.bf16 %v3489_v51, %v3489_v51  ;;  %v3638_v12 = vpack.c.bf16 %v3496_v30, %v3496_v30  ;;  %v3639_v34 = vpack.c.bf16 %v3503_v56, %v3503_v56  ;;  %v3393_v52 = vrot.slane %v3392_v43, 4 }
 0x2d2   : > { %v3816_v54 = vsel %vm3782_vm4, %v3750_v39, %v3815_v5  ;;  %v3400_v59 = vrot.slane %v3399_v9, 4  ;;  %v3406_v1 = vsel %vm2887_vm13, %v3072_v6, -inf  ;;  %v3413_v49 = vsel %vm2887_vm13, %v3073_v24, -inf  ;;  %v6255_v39 = vpop.f32.mrf.mxu1 }
 0x2d3   : > { %v3764_v40 = vunpack.c.l.b16 %v3636_v47  ;;  %v3765_v37 = vunpack.c.l.b16 %v3637_v29  ;;  %v3766_v22 = vunpack.c.l.b16 %v3638_v12  ;;  %v3394_v8 = vmax.f32 %v3392_v43, %v3393_v52  ;;  %v2905_v12 = vpop.f32.mrf.mxu0 }
 0x2d4   : > { %v3401_v13 = vmax.f32 %v3399_v9, %v3400_v59  ;;  %v3407_v15 = vrot.slane %v3406_v1, 4  ;;  %v3414_v36 = vrot.slane %v3413_v49, 4  ;;  %v2524_v35 = vsel %vm2508_vm0, %v2471_v2, %v2020_v48 }
 0x2d5   : > { %v3817_v3 = vsel %vm3784_vm5, %v3751_v21, %v3816_v54  ;;  %v6246_v60 = vunpack.c.l.b16 %v3639_v34  ;;  %v3829_v10 = vsel %vm3780_vm3, %v3765_v37, %v3764_v40  ;;  %v3395_v41 = vrot.slane %v3394_v8, 2 }
 0x2d6   : > { %v3402_v63 = vrot.slane %v3401_v13, 2  ;;  %v3408_v14 = vmax.f32 %v3406_v1, %v3407_v15  ;;  %v3415_v25 = vmax.f32 %v3413_v49, %v3414_v36  ;;  %v6250_v18 = vsel %vm3782_vm4, %v3766_v22, %v3829_v10 }
 0x2d7   : > { %v3396_v17 = vmax.f32 %v3394_v8, %v3395_v41  ;;  %v2626_v53 = vshrl.u32 %v2524_v35, 16  ;;  %v2629_v62 = vshll.u32 %v2524_v35, 16  ;;  %v2540_v45 = vsel %vm2508_vm0, %v6212_v27, %v2036_v4 }
 0x2d8   : > { %v3403_v2 = vmax.f32 %v3401_v13, %v3402_v63  ;;  %v3409_v61 = vrot.slane %v3408_v14, 2  ;;  %v3416_v26 = vrot.slane %v3415_v25, 2  ;;  %v2968_v11 = vadd.f32 %v6167_v50, %v2967_v16 }
 0x2d9   : > { %v3397_v31 = vrot.slane %v3396_v17, 1  ;;  %v2628_v46 = vrot.slane %v2626_v53, 3  ;;  %v2631_v5 = vrot.slane %v2629_v62, 4  ;;  %v2686_v30 = vshrl.u32 %v2540_v45, 16 }
 0x2da   : > { %v3404_v42 = vrot.slane %v3403_v2, 1  ;;  %v3410_v6 = vmax.f32 %v3408_v14, %v3409_v61  ;;  %v3417_v24 = vmax.f32 %v3415_v25, %v3416_v26  ;;  %v2689_v56 = vshll.u32 %v2540_v45, 16  ;;  %v2925_v14 = vpop.f32.mrf.mxu1 }
 0x2db   : > { %v3398_v51 = vmax.f32 %v3396_v17, %v3397_v31  ;;  %v3007_v21 = vmax.f32 %v2968_v11, 0.0  ;;  %v2632_v29 = vor.u32 %v2631_v5, %v2628_v46  ;;  %v2688_v34 = vrot.slane %v2686_v30, 3  ;;  %v2907_v23 = vpop.f32.mrf.mxu0 }
 0x2dc   : > { %v3405_v47 = vmax.f32 %v3403_v2, %v3404_v42  ;;  %v3411_v43 = vrot.slane %v3410_v6, 1  ;;  %v3418_v9 = vrot.slane %v3417_v24, 1  ;;  %v2691_v52 = vrot.slane %v2689_v56, 4 }
 0x2dd   : > { %v3624_v27 = vpack.c.bf16 %v3398_v51, %v3398_v51  ;;  %v3025_v48 = vmax.f32 %v3005_v20, %v3007_v21  ;;  %v2633_v49 = vsel %vm2573_vm1, %v2625_v44, %v2632_v29  ;;  %v2906_v61 = vadd.f32 %v6167_v50, %v2905_v12 }
 0x2de   : > { %v3412_v54 = vmax.f32 %v3410_v6, %v3411_v43  ;;  %v3419_v59 = vmax.f32 %v3417_v24, %v3418_v9  ;;  %v3625_v1 = vpack.c.bf16 %v3405_v47, %v3405_v47  ;;  %v2692_v37 = vor.u32 %v2691_v52, %v2688_v34  ;;  %3963 = vmatmul.msk.bf16.gmra.mxu0 %vm2838_vm2, %v2633_v49 }
 0x2df   : > { %v3752_v40 = vunpack.c.l.b16 %v3624_v27  ;;  %v3083_v22 = vrot.slane %v3025_v48, 2  ;;  %v3084_v8 = vrot.slane %v3025_v48, 4  ;;  %v3085_v20 = vrot.slane %v3025_v48, 6 }
 0x2e0   : > { %v3626_v13 = vpack.c.bf16 %v3412_v54, %v3412_v54  ;;  %v3627_v15 = vpack.c.bf16 %v3419_v59, %v3419_v59  ;;  %v3753_v0 = vunpack.c.l.b16 %v3625_v1  ;;  %v3504_v35 = vsel %vm2887_vm13, %v3025_v48, -inf }
 0x2e1   : > { %v3818_v36 = vsel %vm3786_vm6, %v3752_v40, %v3817_v3  ;;  %v3511_v32 = vsel %vm2887_vm13, %v3083_v22, -inf  ;;  %v3518_v28 = vsel %vm2887_vm13, %v3084_v8, -inf  ;;  %v3505_v63 = vrot.slane %v3504_v35, 4 }
 0x2e2   : > { %v3754_v44 = vunpack.c.l.b16 %v3626_v13  ;;  %v3755_v10 = vunpack.c.l.b16 %v3627_v15  ;;  %v3819_v41 = vsel %vm3788_vm7, %v3753_v0, %v3818_v36  ;;  %v3512_v25 = vrot.slane %v3511_v32, 4 }
 0x2e3   : > { %v3519_v4 = vrot.slane %v3518_v28, 4  ;;  %v3525_v16 = vsel %vm2887_vm13, %v3085_v20, -inf  ;;  %v2693_v3 = vsel %vm2573_vm1, %v2685_v19, %v2692_v37  ;;  %v3506_v53 = vmax.f32 %v3504_v35, %v3505_v63 }
 0x2e4   : > { %v3820_v17 = vsel %vm3790_vm8, %v3754_v44, %v3819_v41  ;;  %v3526_v2 = vrot.slane %v3525_v16, 4  ;;  %3967 = vmatmul.msk.bf16.gmra.mxu1 %vm2838_vm2, %v2693_v3  ;;  %v3513_v62 = vmax.f32 %v3511_v32, %v3512_v25  ;;  %v2926_v46 = vadd.f32 %v6167_v50, %v2925_v14 }
 0x2e5   : > { %v3821_v26 = vsel %vm3792_vm9, %v3755_v10, %v3820_v17  ;;  %v3520_v31 = vmax.f32 %v3518_v28, %v3519_v4  ;;  %v3507_v11 = vrot.slane %v3506_v53, 2  ;;  %v2982_v58 = vmax.f32 %v2906_v61, 0.0 }
 0x2e6   : > { %v3847_v45 = vpack.c.b16 %v3821_v26, %v3821_v26  ;;  %v3527_v42 = vmax.f32 %v3525_v16, %v3526_v2  ;;  %v6284_v19 = vadd.f32 %v6167_v50, %v6242_v57  ;;  %v3514_v6 = vrot.slane %v3513_v62, 2 }
 0x2e7   : > { %v3521_v24 = vrot.slane %v3520_v31, 2  ;;  %v2990_v5 = vmax.f32 %v2926_v46, 0.0  ;;  %v3831_v51 = vsel %vm3784_vm5, %v6246_v60, %v6250_v18  ;;  %v3508_v30 = vmax.f32 %v3506_v53, %v3507_v11 }
 0x2e8   : > { %3863 = vst [vmem:[%s6289_s30 + $0x10] sm:$0xf] %v3847_v45  ;;  %v3528_v56 = vrot.slane %v3527_v42, 2  ;;  %v3012_v21 = vmax.f32 %v2980_v7, %v2982_v58  ;;  %v3515_v47 = vmax.f32 %v3513_v62, %v3514_v6  ;;  %v6299_v9 = vadd.f32 %v6167_v50, %v2907_v23 }
 0x2e9   : > { %v3522_v43 = vmax.f32 %v3520_v31, %v3521_v24  ;;  %v6296_v57 = vmax.f32 %v2988_v33, %v2990_v5  ;;  %v3509_v29 = vrot.slane %v3508_v30, 1 }
 0x2ea   : > { %v3529_v60 = vmax.f32 %v3527_v42, %v3528_v56  ;;  %v3044_v18 = vrot.slane %v3012_v21, 2  ;;  %v3045_v12 = vrot.slane %v3012_v21, 4  ;;  %v3516_v27 = vrot.slane %v3515_v47, 1 }
 0x2eb   : > { %v3523_v34 = vrot.slane %v3522_v43, 1  ;;  %v3046_v52 = vrot.slane %v3012_v21, 6  ;;  %v3140_v48 = vsel %vm2887_vm13, %v3012_v21, -inf  ;;  %v3510_v38 = vmax.f32 %v3508_v30, %v3509_v29 }
 0x2ec   : > { %v3530_v7 = vrot.slane %v3529_v60, 1  ;;  %v3141_v54 = vrot.slane %v3140_v48, 4  ;;  %v3147_v59 = vsel %vm2887_vm13, %v3044_v18, -inf  ;;  %v3517_v55 = vmax.f32 %v3515_v47, %v3516_v27 }
 0x2ed   : > { %v3524_v33 = vmax.f32 %v3522_v43, %v3523_v34  ;;  %v3148_v1 = vrot.slane %v3147_v59, 4  ;;  %v3154_v49 = vsel %vm2887_vm13, %v3045_v12, -inf  ;;  %v3640_v37 = vpack.c.bf16 %v3510_v38, %v3510_v38 }
 0x2ee   : > { %v3531_v40 = vmax.f32 %v3529_v60, %v3530_v7  ;;  %v3142_v22 = vmax.f32 %v3140_v48, %v3141_v54  ;;  %v3155_v8 = vrot.slane %v3154_v49, 4  ;;  %v3641_v13 = vpack.c.bf16 %v3517_v55, %v3517_v55 }
 0x2ef   : > { %v3642_v15 = vpack.c.bf16 %v3524_v33, %v3524_v33  ;;  %v3149_v0 = vmax.f32 %v3147_v59, %v3148_v1  ;;  %v3161_v20 = vsel %vm2887_vm13, %v3046_v52, -inf  ;;  %v3768_v35 = vunpack.c.l.b16 %v3640_v37 }
 0x2f0   : > { %v3643_v36 = vpack.c.bf16 %v3531_v40, %v3531_v40  ;;  %v3143_v32 = vrot.slane %v3142_v22, 2  ;;  %v3156_v28 = vmax.f32 %v3154_v49, %v3155_v8  ;;  %v3769_v44 = vunpack.c.l.b16 %v3641_v13 }
 0x2f1   : > { %v3770_v10 = vunpack.c.l.b16 %v3642_v15  ;;  %v3150_v41 = vrot.slane %v3149_v0, 2  ;;  %v3162_v63 = vrot.slane %v3161_v20, 4  ;;  %v3832_v25 = vsel %vm3786_vm6, %v3768_v35, %v3831_v51 }
 0x2f2   : > { %v3771_v14 = vunpack.c.l.b16 %v3643_v36  ;;  %v3144_v4 = vmax.f32 %v3142_v22, %v3143_v32  ;;  %v3157_v16 = vrot.slane %v3156_v28, 2  ;;  %v3833_v3 = vsel %vm3788_vm7, %v3769_v44, %v3832_v25  ;;  %v2927_v32 = vpop.f32.mrf.mxu1 }
 0x2f3   : > { %v3151_v17 = vmax.f32 %v3149_v0, %v3150_v41  ;;  %v3163_v53 = vmax.f32 %v3161_v20, %v3162_v63  ;;  %v3056_v2 = vrot.slane %v6296_v57, 2  ;;  %v3834_v61 = vsel %vm3790_vm8, %v3770_v10, %v3833_v3 }
 0x2f4   : > { %v3145_v26 = vrot.slane %v3144_v4, 1  ;;  %v3158_v62 = vmax.f32 %v3156_v28, %v3157_v16  ;;  %v3057_v31 = vrot.slane %v6296_v57, 4  ;;  %v3835_v46 = vsel %vm3792_vm9, %v3771_v14, %v3834_v61 }
 0x2f5   : > { %v3152_v45 = vrot.slane %v3151_v17, 1  ;;  %v3164_v11 = vrot.slane %v3163_v53, 2  ;;  %v3058_v42 = vrot.slane %v6296_v57, 6  ;;  %v3849_v58 = vpack.c.b16 %v3835_v46, %v3835_v46 }
 0x2f6   : > { %v3146_v23 = vmax.f32 %v3144_v4, %v3145_v26  ;;  %v3159_v6 = vrot.slane %v3158_v62, 1  ;;  %v3252_v24 = vsel %vm2887_vm13, %v6296_v57, -inf  ;;  %v3259_v56 = vsel %vm2887_vm13, %v3056_v2, -inf }
 0x2f7   : > { %v3153_v5 = vmax.f32 %v3151_v17, %v3152_v45  ;;  %v3165_v51 = vmax.f32 %v3163_v53, %v3164_v11  ;;  %v3253_v30 = vrot.slane %v3252_v24, 4  ;;  %3865 = vst [vmem:[%s6289_s30 + $0x18] sm:$0xf] %v3849_v58  ;;  %v3260_v47 = vrot.slane %v3259_v56, 4 }
 0x2f8   : > { %v3160_v21 = vmax.f32 %v3158_v62, %v3159_v6  ;;  %v3266_v43 = vsel %vm2887_vm13, %v3057_v31, -inf  ;;  %v2983_v29 = vmax.f32 %v6299_v9, 0.0  ;;  %v2981_v34 = vmax.f32 %v6284_v19, 0.0 }
 0x2f9   : > { %v3166_v60 = vrot.slane %v3165_v51, 1  ;;  %v3589_v18 = vpack.c.bf16 %v3153_v5, %v3153_v5  ;;  %v3254_v12 = vmax.f32 %v3252_v24, %v3253_v30  ;;  %v3267_v27 = vrot.slane %v3266_v43, 4 }
 0x2fa   : > { %v3261_v52 = vmax.f32 %v3259_v56, %v3260_v47  ;;  %v3273_v57 = vsel %vm2887_vm13, %v3058_v42, -inf  ;;  %v3588_v48 = vpack.c.bf16 %v3146_v23, %v3146_v23  ;;  %v3590_v54 = vpack.c.bf16 %v3160_v21, %v3160_v21 }
 0x2fb   : > { %v3255_v38 = vrot.slane %v3254_v12, 2  ;;  %v3268_v7 = vmax.f32 %v3266_v43, %v3267_v27  ;;  %v3274_v55 = vrot.slane %v3273_v57, 4  ;;  %v3013_v33 = vmax.f32 %v2981_v34, %v2983_v29 }
 0x2fc   : > { %v3262_v59 = vrot.slane %v3261_v52, 2  ;;  %v3167_v1 = vmax.f32 %v3165_v51, %v3166_v60  ;;  %v3717_v49 = vunpack.c.l.b16 %v3589_v18  ;;  %v3716_v13 = vunpack.c.l.b16 %v3588_v48 }
 0x2fd   : > { %v3256_v40 = vmax.f32 %v3254_v12, %v3255_v38  ;;  %v3269_v9 = vrot.slane %v3268_v7, 2  ;;  %v3275_v22 = vmax.f32 %v3273_v57, %v3274_v55  ;;  %v3047_v8 = vrot.slane %v3013_v33, 2 }
 0x2fe   : > { %v3263_v37 = vmax.f32 %v3261_v52, %v3262_v59  ;;  %v3048_v19 = vrot.slane %v3013_v33, 4  ;;  %v3718_v0 = vunpack.c.l.b16 %v3590_v54  ;;  %v3049_v36 = vrot.slane %v3013_v33, 6 }
 0x2ff   : > { %v3270_v15 = vmax.f32 %v3268_v7, %v3269_v9  ;;  %v3276_v20 = vrot.slane %v3275_v22, 2  ;;  %v3168_v35 = vsel %vm2887_vm13, %v3013_v33, -inf  ;;  %v3591_v28 = vpack.c.bf16 %v3167_v1, %v3167_v1 }
 0x300   : > { %v3781_v44 = vsel %vm3780_vm3, %v3717_v49, %v3716_v13  ;;  %v3257_v10 = vrot.slane %v3256_v40, 1  ;;  %v3169_v41 = vrot.slane %v3168_v35, 4  ;;  %v3264_v63 = vrot.slane %v3263_v37, 1 }
 0x301   : > { %v3271_v14 = vrot.slane %v3270_v15, 1  ;;  %v3175_v25 = vsel %vm2887_vm13, %v3047_v8, -inf  ;;  %v3182_v4 = vsel %vm2887_vm13, %v3048_v19, -inf  ;;  %v2923_v16 = vadd.f32 %v6167_v50, %v6255_v39 }
 0x302   : > { %v3170_v3 = vmax.f32 %v3168_v35, %v3169_v41  ;;  %v3176_v17 = vrot.slane %v3175_v25, 4  ;;  %v2928_v53 = vadd.f32 %v6167_v50, %v2927_v32  ;;  %v3783_v2 = vsel %vm3782_vm4, %v3718_v0, %v3781_v44 }
 0x303   : > { %v3277_v61 = vmax.f32 %v3275_v22, %v3276_v20  ;;  %v3183_v26 = vrot.slane %v3182_v4, 4  ;;  %v3189_v62 = vsel %vm2887_vm13, %v3049_v36, -inf  ;;  %v3719_v31 = vunpack.c.l.b16 %v3591_v28 }
 0x304   : > { %v6329_v46 = vmax.f32 %v3256_v40, %v3257_v10  ;;  %v3171_v45 = vrot.slane %v3170_v3, 2  ;;  %v3177_v11 = vmax.f32 %v3175_v25, %v3176_v17  ;;  %v3265_v42 = vmax.f32 %v3263_v37, %v3264_v63 }
 0x305   : > { %v3272_v58 = vmax.f32 %v3270_v15, %v3271_v14  ;;  %v3184_v23 = vmax.f32 %v3182_v4, %v3183_v26  ;;  %v3190_v6 = vrot.slane %v3189_v62, 4  ;;  %v2989_v39 = vmax.f32 %v2923_v16, 0.0 }
 0x306   : > { %v3172_v24 = vmax.f32 %v3170_v3, %v3171_v45  ;;  %v3178_v5 = vrot.slane %v3177_v11, 2  ;;  %v2991_v51 = vmax.f32 %v2928_v53, 0.0  ;;  %v3785_v30 = vsel %vm3784_vm5, %v3719_v31, %v3783_v2 }
 0x307   : > { %v3278_v56 = vrot.slane %v3277_v61, 1  ;;  %v3185_v21 = vrot.slane %v3184_v23, 2  ;;  %v3191_v47 = vmax.f32 %v3189_v62, %v3190_v6  ;;  %v3604_v43 = vpack.c.bf16 %v6329_v46, %v6329_v46 }
 0x308   : > { %v3173_v29 = vrot.slane %v3172_v24, 1  ;;  %v3179_v60 = vmax.f32 %v3177_v11, %v3178_v5  ;;  %v3017_v18 = vmax.f32 %v2989_v39, %v2991_v51  ;;  %v3605_v12 = vpack.c.bf16 %v3265_v42, %v3265_v42 }
 0x309   : > { %v3606_v27 = vpack.c.bf16 %v3272_v58, %v3272_v58  ;;  %v3186_v34 = vmax.f32 %v3184_v23, %v3185_v21  ;;  %v3192_v52 = vrot.slane %v3191_v47, 2  ;;  %v3279_v54 = vmax.f32 %v3277_v61, %v3278_v56 }
 0x30a   : > { %v3174_v57 = vmax.f32 %v3172_v24, %v3173_v29  ;;  %v3180_v48 = vrot.slane %v3179_v60, 1  ;;  %v3059_v38 = vrot.slane %v3017_v18, 2  ;;  %v3060_v7 = vrot.slane %v3017_v18, 4 }
 0x30b   : > { %v3187_v59 = vrot.slane %v3186_v34, 1  ;;  %v3193_v55 = vmax.f32 %v3191_v47, %v3192_v52  ;;  %v3061_v33 = vrot.slane %v3017_v18, 6  ;;  %v3280_v40 = vsel %vm2887_vm13, %v3017_v18, -inf }
 0x30c   : > { %v3181_v1 = vmax.f32 %v3179_v60, %v3180_v48  ;;  %v3592_v49 = vpack.c.bf16 %v3174_v57, %v3174_v57  ;;  %v3287_v9 = vsel %vm2887_vm13, %v3059_v38, -inf  ;;  %v3281_v8 = vrot.slane %v3280_v40, 4 }
 0x30d   : > { %v3188_v37 = vmax.f32 %v3186_v34, %v3187_v59  ;;  %v3194_v22 = vrot.slane %v3193_v55, 1  ;;  %v3288_v13 = vrot.slane %v3287_v9, 4  ;;  %v3294_v0 = vsel %vm2887_vm13, %v3060_v7, -inf }
 0x30e   : > { %v3593_v15 = vpack.c.bf16 %v3181_v1, %v3181_v1  ;;  %v3720_v19 = vunpack.c.l.b16 %v3592_v49  ;;  %v3301_v20 = vsel %vm2887_vm13, %v3061_v33, -inf  ;;  %v3282_v32 = vmax.f32 %v3280_v40, %v3281_v8  ;;  %v2970_v1 = vpop.f32.mrf.mxu3 }
 0x30f   : > { %v3195_v36 = vmax.f32 %v3193_v55, %v3194_v22  ;;  %v3594_v35 = vpack.c.bf16 %v3188_v37, %v3188_v37  ;;  %v3289_v28 = vmax.f32 %v3287_v9, %v3288_v13  ;;  %v3295_v41 = vrot.slane %v3294_v0, 4 }
 0x310   : > { %v3721_v44 = vunpack.c.l.b16 %v3593_v15  ;;  %v3787_v10 = vsel %vm3786_vm6, %v3720_v19, %v3785_v30  ;;  %v3302_v63 = vrot.slane %v3301_v20, 4  ;;  %v3283_v4 = vrot.slane %v3282_v32, 2 }
 0x311   : > { %v3595_v14 = vpack.c.bf16 %v3195_v36, %v3195_v36  ;;  %v3722_v25 = vunpack.c.l.b16 %v3594_v35  ;;  %v3290_v16 = vrot.slane %v3289_v28, 2  ;;  %v3733_v3 = vunpack.c.l.b16 %v3605_v12  ;;  %v2950_v12 = vpop.f32.mrf.mxu2 }
 0x312   : > { %v3789_v17 = vsel %vm3788_vm7, %v3721_v44, %v3787_v10  ;;  %v3296_v53 = vmax.f32 %v3294_v0, %v3295_v41  ;;  %v3303_v2 = vmax.f32 %v3301_v20, %v3302_v63  ;;  %v3284_v62 = vmax.f32 %v3282_v32, %v3283_v4 }
 0x313   : > { %v3723_v61 = vunpack.c.l.b16 %v3595_v14  ;;  %v3791_v26 = vsel %vm3790_vm8, %v3722_v25, %v3789_v17  ;;  %v3291_v31 = vmax.f32 %v3289_v28, %v3290_v16  ;;  %v3732_v46 = vunpack.c.l.b16 %v3604_v43 }
 0x314   : > { %v3734_v45 = vunpack.c.l.b16 %v3606_v27  ;;  %v3297_v11 = vrot.slane %v3296_v53, 2  ;;  %v3304_v42 = vrot.slane %v3303_v2, 2  ;;  %v3607_v58 = vpack.c.bf16 %v3279_v54, %v3279_v54 }
 0x315   : > { %v3793_v23 = vsel %vm3792_vm9, %v3723_v61, %v3791_v26  ;;  %v3285_v6 = vrot.slane %v3284_v62, 1  ;;  %v3292_v39 = vrot.slane %v3291_v31, 1  ;;  %v3801_v24 = vsel %vm3780_vm3, %v3733_v3, %v3732_v46 }
 0x316   : > { %v3843_v5 = vpack.c.b16 %v3793_v23, %v3793_v23  ;;  %v3298_v51 = vmax.f32 %v3296_v53, %v3297_v11  ;;  %v3305_v30 = vmax.f32 %v3303_v2, %v3304_v42  ;;  %v3802_v43 = vsel %vm3782_vm4, %v3734_v45, %v3801_v24  ;;  %v6351_v8 = vpop.f32.mrf.mxu3 }
 0x317   : > { %v3286_v56 = vmax.f32 %v3284_v62, %v3285_v6  ;;  %v3293_v21 = vmax.f32 %v3291_v31, %v3292_v39  ;;  %v3735_v27 = vunpack.c.l.b16 %v3607_v58  ;;  %v2951_v13 = vadd.f32 %v6167_v50, %v2950_v12 }
 0x318   : > { %3859 = vst [vmem:[%s6289_s30] sm:$0xf] %v3843_v5  ;;  %v3299_v47 = vrot.slane %v3298_v51, 1  ;;  %v3306_v29 = vrot.slane %v3305_v30, 1  ;;  %v2971_v36 = vadd.f32 %v6167_v50, %v2970_v1 }
 0x319   : > { %v3608_v60 = vpack.c.bf16 %v3286_v56, %v3286_v56  ;;  %v3609_v18 = vpack.c.bf16 %v3293_v21, %v3293_v21  ;;  %v3803_v38 = vsel %vm3784_vm5, %v3735_v27, %v3802_v43  ;;  %v2952_v22 = vpop.f32.mrf.mxu2  ;;  %v3000_v0 = vmax.f32 %v2951_v13, 0.0 }
 0x31a   : > { %v3300_v34 = vmax.f32 %v3298_v51, %v3299_v47  ;;  %v3307_v52 = vmax.f32 %v3305_v30, %v3306_v29  ;;  %v3008_v16 = vmax.f32 %v2971_v36, 0.0  ;;  %v2953_v31 = vadd.f32 %v6167_v50, %v2952_v22 }
 0x31b   : > { %v3736_v57 = vunpack.c.l.b16 %v3608_v60  ;;  %v3737_v48 = vunpack.c.l.b16 %v3609_v18 }
 0x31c   : > { %v3610_v7 = vpack.c.bf16 %v3300_v34, %v3300_v34  ;;  %v3611_v54 = vpack.c.bf16 %v3307_v52, %v3307_v52 }
 0x31d   : > { %v3804_v59 = vsel %vm3786_vm6, %v3736_v57, %v3803_v38 }
 0x31e   : > { %v3738_v55 = vunpack.c.l.b16 %v3610_v7  ;;  %v3805_v33 = vsel %vm3788_vm7, %v3737_v48, %v3804_v59  ;;  %v3739_v49 = vunpack.c.l.b16 %v3611_v54 }
 0x320   : > { %v3806_v40 = vsel %vm3790_vm8, %v3738_v55, %v3805_v33 }
 0x321   : > { %v3807_v9 = vsel %vm3792_vm9, %v3739_v49, %v3806_v40 }
 0x322   : > { %v3845_v37 = vpack.c.b16 %v3807_v9, %v3807_v9 }
 0x324   : > { %3861 = vst [vmem:[%s6289_s30 + $0x8] sm:$0xf] %v3845_v37 }
 0x32c   : > { %v2955_v15 = vpop.f32.mrf.mxu2 }
 0x32d   : > { %v2956_v19 = vadd.f32 %v6167_v50, %v2955_v15 }
 0x32f   : > { %v3002_v20 = vmax.f32 %v2956_v19, 0.0  ;;  %v3001_v19 = vmax.f32 %v2953_v31, 0.0 }
 0x331   : > { %v3022_v35 = vmax.f32 %v3000_v0, %v3002_v20  ;;  %v2975_v32 = vpop.f32.mrf.mxu3 }
 0x332   : > { %v2976_v28 = vadd.f32 %v6167_v50, %v2975_v32 }
 0x333   : > { %v3074_v44 = vrot.slane %v3022_v35, 2  ;;  %v3075_v10 = vrot.slane %v3022_v35, 4  ;;  %v3076_v41 = vrot.slane %v3022_v35, 6  ;;  %v3420_v63 = vsel %vm2887_vm13, %v3022_v35, -inf }
 0x334   : > { %v3421_v14 = vrot.slane %v3420_v63, 4  ;;  %v3010_v25 = vmax.f32 %v2976_v28, 0.0  ;;  %v2957_v4 = vpop.f32.mrf.mxu2 }
 0x335   : > { %v3427_v3 = vsel %vm2887_vm13, %v3074_v44, -inf  ;;  %v3434_v17 = vsel %vm2887_vm13, %v3075_v10, -inf  ;;  %v3441_v53 = vsel %vm2887_vm13, %v3076_v41, -inf  ;;  %v2958_v45 = vadd.f32 %v6167_v50, %v2957_v4 }
 0x336   : > { %v3422_v2 = vmax.f32 %v3420_v63, %v3421_v14  ;;  %v3428_v61 = vrot.slane %v3427_v3, 4  ;;  %v3435_v26 = vrot.slane %v3434_v17, 4  ;;  %v3442_v62 = vrot.slane %v3441_v53, 4 }
 0x337   : > { %v3026_v46 = vmax.f32 %v3008_v16, %v3010_v25  ;;  %v3003_v37 = vmax.f32 %v2958_v45, 0.0 }
 0x338   : > { %v3423_v11 = vrot.slane %v3422_v2, 2  ;;  %v3429_v42 = vmax.f32 %v3427_v3, %v3428_v61  ;;  %v3436_v58 = vmax.f32 %v3434_v17, %v3435_v26  ;;  %v3443_v23 = vmax.f32 %v3441_v53, %v3442_v62  ;;  %v6370_v3 = vld [vmem:[%s6499_s2] ss:$0 sm:$0xff] }
 0x339   : > { %v3086_v6 = vrot.slane %v3026_v46, 2  ;;  %v3087_v39 = vrot.slane %v3026_v46, 4  ;;  %v3088_v24 = vrot.slane %v3026_v46, 6  ;;  %v3532_v5 = vsel %vm2887_vm13, %v3026_v46, -inf }
 0x33a   : > { %v3424_v51 = vmax.f32 %v3422_v2, %v3423_v11  ;;  %v3430_v30 = vrot.slane %v3429_v42, 2  ;;  %v3437_v56 = vrot.slane %v3436_v58, 2  ;;  %v3444_v21 = vrot.slane %v3443_v23, 2 }
 0x33b   : > { %v3533_v47 = vrot.slane %v3532_v5, 4  ;;  %v3539_v29 = vsel %vm2887_vm13, %v3086_v6, -inf  ;;  %v3546_v43 = vsel %vm2887_vm13, %v3087_v39, -inf  ;;  %v3553_v50 = vsel %vm2887_vm13, %v3088_v24, -inf }
 0x33c   : > { %v3425_v60 = vrot.slane %v3424_v51, 1  ;;  %v3431_v18 = vmax.f32 %v3429_v42, %v3430_v30  ;;  %v3438_v12 = vmax.f32 %v3436_v58, %v3437_v56  ;;  %v3445_v27 = vmax.f32 %v3443_v23, %v3444_v21  ;;  %v2977_v58 = vpop.f32.mrf.mxu3  ;;  %v2910_v23 = vpop.f32.mrf.mxu0 }
 0x33d   : > { %v3534_v34 = vmax.f32 %v3532_v5, %v3533_v47  ;;  %v3540_v52 = vrot.slane %v3539_v29, 4  ;;  %v3547_v57 = vrot.slane %v3546_v43, 4  ;;  %v3554_v48 = vrot.slane %v3553_v50, 4 }
 0x33e   : > { %v3426_v38 = vmax.f32 %v3424_v51, %v3425_v60  ;;  %v3432_v7 = vrot.slane %v3431_v18, 1  ;;  %v3439_v54 = vrot.slane %v3438_v12, 1  ;;  %v3446_v59 = vrot.slane %v3445_v27, 1 }
 0x33f   : > { %v3535_v55 = vrot.slane %v3534_v34, 2  ;;  %v3541_v33 = vmax.f32 %v3539_v29, %v3540_v52  ;;  %v3548_v1 = vmax.f32 %v3546_v43, %v3547_v57  ;;  %v3555_v49 = vmax.f32 %v3553_v50, %v3554_v48 }
 0x340   : > { %v3433_v40 = vmax.f32 %v3431_v18, %v3432_v7  ;;  %v3440_v9 = vmax.f32 %v3438_v12, %v3439_v54  ;;  %v3447_v20 = vmax.f32 %v3445_v27, %v3446_v59  ;;  %v3628_v36 = vpack.c.bf16 %v3426_v38, %v3426_v38  ;;  %v6384_v38 = vpop.f32.mrf.mxu1 }
 0x341   : > { %v3536_v22 = vmax.f32 %v3534_v34, %v3535_v55  ;;  %v3542_v13 = vrot.slane %v3541_v33, 2  ;;  %v3549_v15 = vrot.slane %v3548_v1, 2  ;;  %v3556_v32 = vrot.slane %v3555_v49, 2 }
 0x342   : > { %v3629_v0 = vpack.c.bf16 %v3433_v40, %v3433_v40  ;;  %v3630_v28 = vpack.c.bf16 %v3440_v9, %v3440_v9  ;;  %v3023_v44 = vmax.f32 %v3001_v19, %v3003_v37  ;;  %v2973_v17 = vadd.f32 %v6370_v3, %v6351_v8 }
 0x343   : > { %v3543_v35 = vmax.f32 %v3541_v33, %v3542_v13  ;;  %v3537_v41 = vrot.slane %v3536_v22, 1  ;;  %v3550_v63 = vmax.f32 %v3548_v1, %v3549_v15  ;;  %v3631_v53 = vpack.c.bf16 %v3447_v20, %v3447_v20 }
 0x344   : > { %v3757_v10 = vunpack.c.l.b16 %v3629_v0  ;;  %v3077_v25 = vrot.slane %v3023_v44, 2  ;;  %v3078_v4 = vrot.slane %v3023_v44, 4  ;;  %v3079_v16 = vrot.slane %v3023_v44, 6 }
 0x345   : > { %v3544_v14 = vrot.slane %v3543_v35, 1  ;;  %v3756_v2 = vunpack.c.l.b16 %v3628_v36  ;;  %v3557_v61 = vmax.f32 %v3555_v49, %v3556_v32  ;;  %v3758_v26 = vunpack.c.l.b16 %v3630_v28  ;;  %v2912_v28 = vpop.f32.mrf.mxu0 }
 0x346   : > { %v3448_v62 = vsel %vm2887_vm13, %v3023_v44, -inf  ;;  %v3455_v31 = vsel %vm2887_vm13, %v3077_v25, -inf  ;;  %v3538_v45 = vmax.f32 %v3536_v22, %v3537_v41  ;;  %v3551_v11 = vrot.slane %v3550_v63, 1 }
 0x347   : > { %v3822_v46 = vsel %vm3780_vm3, %v3757_v10, %v3756_v2  ;;  %v3449_v42 = vrot.slane %v3448_v62, 4  ;;  %v3545_v6 = vmax.f32 %v3543_v35, %v3544_v14  ;;  %v3456_v39 = vrot.slane %v3455_v31, 4 }
 0x348   : > { %v3462_v24 = vsel %vm2887_vm13, %v3078_v4, -inf  ;;  %v3469_v8 = vsel %vm2887_vm13, %v3079_v16, -inf  ;;  %v3009_v5 = vmax.f32 %v2973_v17, 0.0  ;;  %v3759_v51 = vunpack.c.l.b16 %v3631_v53 }
 0x349   : > { %v3558_v30 = vrot.slane %v3557_v61, 1  ;;  %v3450_v56 = vmax.f32 %v3448_v62, %v3449_v42  ;;  %v3457_v21 = vmax.f32 %v3455_v31, %v3456_v39  ;;  %v3463_v47 = vrot.slane %v3462_v24, 4 }
 0x34a   : > { %v3470_v29 = vrot.slane %v3469_v8, 4  ;;  %v2978_v43 = vadd.f32 %v6370_v3, %v2977_v58  ;;  %v3823_v50 = vsel %vm3782_vm4, %v3758_v26, %v3822_v46  ;;  %v3552_v60 = vmax.f32 %v3550_v63, %v3551_v11 }
 0x34b   : > { %v3644_v18 = vpack.c.bf16 %v3538_v45, %v3538_v45  ;;  %v3451_v12 = vrot.slane %v3450_v56, 2  ;;  %v3645_v27 = vpack.c.bf16 %v3545_v6, %v3545_v6  ;;  %v3458_v34 = vrot.slane %v3457_v21, 2 }
 0x34c   : > { %v3464_v52 = vmax.f32 %v3462_v24, %v3463_v47  ;;  %v3471_v57 = vmax.f32 %v3469_v8, %v3470_v29  ;;  %v6382_v48 = vadd.f32 %v6370_v3, %v2910_v23  ;;  %v6386_v7 = vmax.f32 %v3557_v61, %v3558_v30  ;;  %v6393_v23 = vpop.f32.mrf.mxu1 }
 0x34d   : > { %v3452_v54 = vmax.f32 %v3450_v56, %v3451_v12  ;;  %v3011_v59 = vmax.f32 %v2978_v43, 0.0  ;;  %v3824_v55 = vsel %vm3784_vm5, %v3759_v51, %v3823_v50  ;;  %v3459_v33 = vmax.f32 %v3457_v21, %v3458_v34 }
 0x34e   : > { %v3465_v1 = vrot.slane %v3464_v52, 2  ;;  %v3472_v49 = vrot.slane %v3471_v57, 2  ;;  %v3646_v40 = vpack.c.bf16 %v3552_v60, %v3552_v60  ;;  %v3772_v9 = vunpack.c.l.b16 %v3644_v18 }
 0x34f   : > { %v3453_v37 = vrot.slane %v3452_v54, 1  ;;  %v3027_v22 = vmax.f32 %v3009_v5, %v3011_v59  ;;  %v3773_v13 = vunpack.c.l.b16 %v3645_v27  ;;  %v3460_v15 = vrot.slane %v3459_v33, 1 }
 0x350   : > { %v3466_v19 = vmax.f32 %v3464_v52, %v3465_v1  ;;  %v3473_v0 = vmax.f32 %v3471_v57, %v3472_v49  ;;  %v3774_v5 = vunpack.c.l.b16 %v3646_v40  ;;  %v3647_v50 = vpack.c.bf16 %v6386_v7, %v6386_v7 }
 0x351   : > { %v3454_v20 = vmax.f32 %v3452_v54, %v3453_v37  ;;  %v3089_v36 = vrot.slane %v3027_v22, 2  ;;  %v3090_v35 = vrot.slane %v3027_v22, 4  ;;  %v3091_v32 = vrot.slane %v3027_v22, 6 }
 0x352   : > { %v3461_v44 = vmax.f32 %v3459_v33, %v3460_v15  ;;  %v3467_v10 = vrot.slane %v3466_v19, 1  ;;  %v3474_v41 = vrot.slane %v3473_v0, 1  ;;  %v3560_v63 = vsel %vm2887_vm13, %v3027_v22, -inf }
 0x353   : > { %v3632_v14 = vpack.c.bf16 %v3454_v20, %v3454_v20  ;;  %v3561_v25 = vrot.slane %v3560_v63, 4  ;;  %v3567_v4 = vsel %vm2887_vm13, %v3089_v36, -inf  ;;  %v3574_v16 = vsel %vm2887_vm13, %v3090_v35, -inf }
 0x354   : > { %v3468_v17 = vmax.f32 %v3466_v19, %v3467_v10  ;;  %v3475_v53 = vmax.f32 %v3473_v0, %v3474_v41  ;;  %v3633_v2 = vpack.c.bf16 %v3461_v44, %v3461_v44  ;;  %v3568_v61 = vrot.slane %v3567_v4, 4 }
 0x355   : > { %v3760_v26 = vunpack.c.l.b16 %v3632_v14  ;;  %v3562_v62 = vmax.f32 %v3560_v63, %v3561_v25  ;;  %v3575_v31 = vrot.slane %v3574_v16, 4  ;;  %v3581_v46 = vsel %vm2887_vm13, %v3091_v32, -inf }
 0x356   : > { %v3634_v45 = vpack.c.bf16 %v3468_v17, %v3468_v17  ;;  %v3635_v11 = vpack.c.bf16 %v3475_v53, %v3475_v53  ;;  %v3761_v42 = vunpack.c.l.b16 %v3633_v2  ;;  %v3569_v58 = vmax.f32 %v3567_v4, %v3568_v61 }
 0x357   : > { %v3825_v6 = vsel %vm3786_vm6, %v3760_v26, %v3824_v55  ;;  %v3563_v39 = vrot.slane %v3562_v62, 2  ;;  %v3576_v24 = vmax.f32 %v3574_v16, %v3575_v31  ;;  %v3582_v8 = vrot.slane %v3581_v46, 4 }
 0x358   : > { %v3762_v51 = vunpack.c.l.b16 %v3634_v45  ;;  %v3826_v30 = vsel %vm3788_vm7, %v3761_v42, %v3825_v6  ;;  %v3570_v56 = vrot.slane %v3569_v58, 2  ;;  %v3763_v21 = vunpack.c.l.b16 %v3635_v11 }
 0x359   : > { %v3564_v47 = vmax.f32 %v3562_v62, %v3563_v39  ;;  %v3577_v29 = vrot.slane %v3576_v24, 2  ;;  %v3583_v43 = vmax.f32 %v3581_v46, %v3582_v8  ;;  %v3836_v60 = vsel %vm3780_vm3, %v3773_v13, %v3772_v9 }
 0x35a   : > { %v3827_v18 = vsel %vm3790_vm8, %v3762_v51, %v3826_v30  ;;  %v3571_v12 = vmax.f32 %v3569_v58, %v3570_v56  ;;  %v2931_v59 = vadd.f32 %v6370_v3, %v6384_v38  ;;  %v3837_v7 = vsel %vm3782_vm4, %v3774_v5, %v3836_v60 }
 0x35b   : > { %v2915_v27 = vpop.f32.mrf.mxu0  ;;  %v3828_v34 = vsel %vm3792_vm9, %v3763_v21, %v3827_v18  ;;  %v3565_v52 = vrot.slane %v3564_v47, 1  ;;  %v3578_v57 = vmax.f32 %v3576_v24, %v3577_v29  ;;  %v3584_v54 = vrot.slane %v3583_v43, 2 }
 0x35c   : > { %v3848_v55 = vpack.c.b16 %v3828_v34, %v3828_v34  ;;  %v3572_v33 = vrot.slane %v3571_v12, 1  ;;  %v2916_v1 = vadd.f32 %v6370_v3, %v2915_v27  ;;  %v2984_v37 = vmax.f32 %v6382_v48, 0.0 }
 0x35d   : > { %v3566_v49 = vmax.f32 %v3564_v47, %v3565_v52  ;;  %v3579_v40 = vrot.slane %v3578_v57, 1  ;;  %v3585_v9 = vmax.f32 %v3583_v43, %v3584_v54  ;;  %v3775_v22 = vunpack.c.l.b16 %v3647_v50 }
 0x35e   : > { %3864 = vst [vmem:[%s6289_s30 + $0x14] sm:$0xf] %v3848_v55  ;;  %v3573_v13 = vmax.f32 %v3571_v12, %v3572_v33  ;;  %v2986_v15 = vmax.f32 %v2916_v1, 0.0  ;;  %v6409_v19 = vadd.f32 %v6370_v3, %v2912_v28  ;;  %v2992_v35 = vmax.f32 %v2931_v59, 0.0 }
 0x35f   : > { %v3580_v0 = vmax.f32 %v3578_v57, %v3579_v40  ;;  %v3586_v38 = vrot.slane %v3585_v9, 1  ;;  %v3648_v20 = vpack.c.bf16 %v3566_v49, %v3566_v49  ;;  %v3838_v32 = vsel %vm3784_vm5, %v3775_v22, %v3837_v7 }
 0x360   : > { %v3649_v44 = vpack.c.bf16 %v3573_v13, %v3573_v13  ;;  %v3014_v10 = vmax.f32 %v2984_v37, %v2986_v15  ;;  %v2985_v47 = vmax.f32 %v6409_v19, 0.0 }
 0x361   : > { %v2935_v36 = vpop.f32.mrf.mxu1  ;;  %v3587_v41 = vmax.f32 %v3585_v9, %v3586_v38  ;;  %v3650_v63 = vpack.c.bf16 %v3580_v0, %v3580_v0  ;;  %v3776_v14 = vunpack.c.l.b16 %v3648_v20 }
 0x362   : > { %v2936_v48 = vadd.f32 %v6370_v3, %v2935_v36  ;;  %v3777_v25 = vunpack.c.l.b16 %v3649_v44  ;;  %v3050_v4 = vrot.slane %v3014_v10, 2  ;;  %v3051_v16 = vrot.slane %v3014_v10, 4 }
 0x363   : > { %v3052_v17 = vrot.slane %v3014_v10, 6  ;;  %v3651_v28 = vpack.c.bf16 %v3587_v41, %v3587_v41  ;;  %v3778_v53 = vunpack.c.l.b16 %v3650_v63  ;;  %v3839_v2 = vsel %vm3786_vm6, %v3776_v14, %v3838_v32  ;;  %v2917_v26 = vpop.f32.mrf.mxu0 }
 0x364   : > { %v3196_v61 = vsel %vm2887_vm13, %v3014_v10, -inf  ;;  %v3840_v62 = vsel %vm3788_vm7, %v3777_v25, %v3839_v2  ;;  %v3203_v46 = vsel %vm2887_vm13, %v3050_v4, -inf  ;;  %v3210_v45 = vsel %vm2887_vm13, %v3051_v16, -inf }
 0x365   : > { %v3197_v31 = vrot.slane %v3196_v61, 4  ;;  %v3779_v11 = vunpack.c.l.b16 %v3651_v28  ;;  %v3841_v42 = vsel %vm3790_vm8, %v3778_v53, %v3840_v62  ;;  %v3204_v58 = vrot.slane %v3203_v46, 4 }
 0x366   : > { %v3211_v6 = vrot.slane %v3210_v45, 4  ;;  %v3217_v24 = vsel %vm2887_vm13, %v3052_v17, -inf  ;;  %v2994_v8 = vmax.f32 %v2936_v48, 0.0  ;;  %v2918_v5 = vadd.f32 %v6370_v3, %v2917_v26 }
 0x367   : > { %v3198_v39 = vmax.f32 %v3196_v61, %v3197_v31  ;;  %v3842_v51 = vsel %vm3792_vm9, %v3779_v11, %v3841_v42  ;;  %v3205_v30 = vmax.f32 %v3203_v46, %v3204_v58  ;;  %v3218_v21 = vrot.slane %v3217_v24, 4 }
 0x368   : > { %v3212_v56 = vmax.f32 %v3210_v45, %v3211_v6  ;;  %v3850_v29 = vpack.c.b16 %v3842_v51, %v3842_v51  ;;  %v3018_v50 = vmax.f32 %v2992_v35, %v2994_v8  ;;  %v2987_v27 = vmax.f32 %v2918_v5, 0.0 }
 0x369   : > { %v3199_v43 = vrot.slane %v3198_v39, 2  ;;  %v3206_v60 = vrot.slane %v3205_v30, 2  ;;  %v3219_v12 = vmax.f32 %v3217_v24, %v3218_v21  ;;  %v2937_v36 = vpop.f32.mrf.mxu1  ;;  %v2933_v6 = vadd.f32 %v6370_v3, %v6393_v23 }
 0x36a   : > { %v3213_v18 = vrot.slane %v3212_v56, 2  ;;  %3866 = vst [vmem:[%s6289_s30 + $0x1c] sm:$0xf] %v3850_v29  ;;  %v3062_v52 = vrot.slane %v3018_v50, 2  ;;  %v3063_v57 = vrot.slane %v3018_v50, 4  ;;  %v3064_v54 = vrot.slane %v3018_v50, 6 }
 0x36b   : > { %v3200_v34 = vmax.f32 %v3198_v39, %v3199_v43  ;;  %v3207_v59 = vmax.f32 %v3205_v30, %v3206_v60  ;;  %v3220_v33 = vrot.slane %v3219_v12, 2  ;;  %v3308_v1 = vsel %vm2887_vm13, %v3018_v50, -inf }
 0x36c   : > { %v3214_v55 = vmax.f32 %v3212_v56, %v3213_v18  ;;  %v3309_v49 = vrot.slane %v3308_v1, 4  ;;  %v3315_v40 = vsel %vm2887_vm13, %v3062_v52, -inf  ;;  %v3322_v9 = vsel %vm2887_vm13, %v3063_v57, -inf }
 0x36d   : > { %v3201_v7 = vrot.slane %v3200_v34, 1  ;;  %v3208_v37 = vrot.slane %v3207_v59, 1  ;;  %v3221_v13 = vmax.f32 %v3219_v12, %v3220_v33  ;;  %v3316_v15 = vrot.slane %v3315_v40, 4 }
 0x36e   : > { %v3215_v22 = vrot.slane %v3214_v55, 1  ;;  %v3310_v0 = vmax.f32 %v3308_v1, %v3309_v49  ;;  %v3323_v38 = vrot.slane %v3322_v9, 4  ;;  %v3329_v20 = vsel %vm2887_vm13, %v3064_v54, -inf }
 0x36f   : > { %v3202_v19 = vmax.f32 %v3200_v34, %v3201_v7  ;;  %v3209_v35 = vmax.f32 %v3207_v59, %v3208_v37  ;;  %v3222_v44 = vrot.slane %v3221_v13, 1  ;;  %v3317_v10 = vmax.f32 %v3315_v40, %v3316_v15 }
 0x370   : > { %v3216_v32 = vmax.f32 %v3214_v55, %v3215_v22  ;;  %v3311_v63 = vrot.slane %v3310_v0, 2  ;;  %v3324_v14 = vmax.f32 %v3322_v9, %v3323_v38  ;;  %v3330_v48 = vrot.slane %v3329_v20, 4 }
 0x371   : > { %v3596_v41 = vpack.c.bf16 %v3202_v19, %v3202_v19  ;;  %v3597_v25 = vpack.c.bf16 %v3209_v35, %v3209_v35  ;;  %v3318_v16 = vrot.slane %v3317_v10, 2  ;;  %v2938_v17 = vadd.f32 %v6370_v3, %v2937_v36 }
 0x372   : > { %v3598_v4 = vpack.c.bf16 %v3216_v32, %v3216_v32  ;;  %v3223_v28 = vmax.f32 %v3221_v13, %v3222_v44  ;;  %v3312_v53 = vmax.f32 %v3310_v0, %v3311_v63  ;;  %v3325_v2 = vrot.slane %v3324_v14, 2 }
 0x373   : > { %v3331_v61 = vmax.f32 %v3329_v20, %v3330_v48  ;;  %v3724_v26 = vunpack.c.l.b16 %v3596_v41  ;;  %v3725_v62 = vunpack.c.l.b16 %v3597_v25  ;;  %v3319_v46 = vmax.f32 %v3317_v10, %v3318_v16 }
 0x374   : > { %v3726_v31 = vunpack.c.l.b16 %v3598_v4  ;;  %v3313_v45 = vrot.slane %v3312_v53, 1  ;;  %v3326_v11 = vmax.f32 %v3324_v14, %v3325_v2  ;;  %v3015_v58 = vmax.f32 %v2985_v47, %v2987_v27 }
 0x375   : > { %v3332_v42 = vrot.slane %v3331_v61, 2  ;;  %v3794_v39 = vsel %vm3780_vm3, %v3725_v62, %v3724_v26  ;;  %v3320_v24 = vrot.slane %v3319_v46, 1  ;;  %v3599_v8 = vpack.c.bf16 %v3223_v28, %v3223_v28 }
 0x376   : > { %v3314_v5 = vmax.f32 %v3312_v53, %v3313_v45  ;;  %v3327_v51 = vrot.slane %v3326_v11, 1  ;;  %v3053_v21 = vrot.slane %v3015_v58, 2  ;;  %v3054_v29 = vrot.slane %v3015_v58, 4 }
 0x377   : > { %v3333_v30 = vmax.f32 %v3331_v61, %v3332_v42  ;;  %v3321_v56 = vmax.f32 %v3319_v46, %v3320_v24  ;;  %v2995_v43 = vmax.f32 %v2938_v17, 0.0  ;;  %v3795_v50 = vsel %vm3782_vm4, %v3726_v31, %v3794_v39 }
 0x378   : > { %v3328_v60 = vmax.f32 %v3326_v11, %v3327_v51  ;;  %v3055_v12 = vrot.slane %v3015_v58, 6  ;;  %v3612_v47 = vpack.c.bf16 %v3314_v5, %v3314_v5  ;;  %v3224_v27 = vsel %vm2887_vm13, %v3015_v58, -inf }
 0x379   : > { %v3334_v18 = vrot.slane %v3333_v30, 1  ;;  %v3231_v3 = vsel %vm2887_vm13, %v3053_v21, -inf  ;;  %v3238_v23 = vsel %vm2887_vm13, %v3054_v29, -inf  ;;  %v3727_v34 = vunpack.c.l.b16 %v3599_v8 }
 0x37a   : > { %v3613_v57 = vpack.c.bf16 %v3321_v56, %v3321_v56  ;;  %v3225_v54 = vrot.slane %v3224_v27, 4  ;;  %v2993_v59 = vmax.f32 %v2933_v6, 0.0  ;;  %v3232_v55 = vrot.slane %v3231_v3, 4 }
 0x37b   : > { %v6436_v52 = vmax.f32 %v3333_v30, %v3334_v18  ;;  %v3239_v33 = vrot.slane %v3238_v23, 4  ;;  %v3245_v1 = vsel %vm2887_vm13, %v3055_v12, -inf  ;;  %v3796_v7 = vsel %vm3784_vm5, %v3727_v34, %v3795_v50 }
 0x37c   : > { %v3614_v49 = vpack.c.bf16 %v3328_v60, %v3328_v60  ;;  %v3226_v40 = vmax.f32 %v3224_v27, %v3225_v54  ;;  %v3246_v9 = vrot.slane %v3245_v1, 4  ;;  %v3740_v37 = vunpack.c.l.b16 %v3612_v47 }
 0x37d   : > { %v3233_v22 = vmax.f32 %v3231_v3, %v3232_v55  ;;  %v3240_v13 = vmax.f32 %v3238_v23, %v3239_v33  ;;  %v3019_v15 = vmax.f32 %v2993_v59, %v2995_v43  ;;  %v3615_v19 = vpack.c.bf16 %v6436_v52, %v6436_v52 }
 0x37e   : > { %v3741_v0 = vunpack.c.l.b16 %v3613_v57  ;;  %v3227_v38 = vrot.slane %v3226_v40, 2  ;;  %v3247_v20 = vmax.f32 %v3245_v1, %v3246_v9  ;;  %v3742_v10 = vunpack.c.l.b16 %v3614_v49 }
 0x37f   : > { %v3234_v36 = vrot.slane %v3233_v22, 2  ;;  %v3241_v35 = vrot.slane %v3240_v13, 2  ;;  %v3065_v32 = vrot.slane %v3019_v15, 2  ;;  %v3066_v44 = vrot.slane %v3019_v15, 4 }
 0x380   : > { %v3228_v41 = vmax.f32 %v3226_v40, %v3227_v38  ;;  %v3248_v63 = vrot.slane %v3247_v20, 2  ;;  %v3067_v14 = vrot.slane %v3019_v15, 6  ;;  %v3336_v4 = vsel %vm2887_vm13, %v3019_v15, -inf }
 0x381   : > { %v3235_v48 = vmax.f32 %v3233_v22, %v3234_v36  ;;  %v3242_v25 = vmax.f32 %v3240_v13, %v3241_v35  ;;  %v3343_v16 = vsel %vm2887_vm13, %v3065_v32, -inf  ;;  %v3337_v53 = vrot.slane %v3336_v4, 4 }
 0x382   : > { %v3229_v17 = vrot.slane %v3228_v41, 1  ;;  %v3249_v28 = vmax.f32 %v3247_v20, %v3248_v63  ;;  %v3344_v2 = vrot.slane %v3343_v16, 4  ;;  %v3350_v62 = vsel %vm2887_vm13, %v3066_v44, -inf }
 0x383   : > { %v3236_v61 = vrot.slane %v3235_v48, 1  ;;  %v3243_v26 = vrot.slane %v3242_v25, 1  ;;  %v3357_v31 = vsel %vm2887_vm13, %v3067_v14, -inf  ;;  %v3338_v11 = vmax.f32 %v3336_v4, %v3337_v53 }
 0x384   : > { %v3230_v46 = vmax.f32 %v3228_v41, %v3229_v17  ;;  %v3250_v45 = vrot.slane %v3249_v28, 1  ;;  %v3345_v42 = vmax.f32 %v3343_v16, %v3344_v2  ;;  %v3351_v39 = vrot.slane %v3350_v62, 4 }
 0x385   : > { %v3237_v58 = vmax.f32 %v3235_v48, %v3236_v61  ;;  %v3244_v6 = vmax.f32 %v3242_v25, %v3243_v26  ;;  %v3358_v24 = vrot.slane %v3357_v31, 4  ;;  %v3339_v51 = vrot.slane %v3338_v11, 2 }
 0x386   : > { %v3251_v8 = vmax.f32 %v3249_v28, %v3250_v45  ;;  %v3600_v5 = vpack.c.bf16 %v3230_v46, %v3230_v46  ;;  %v3346_v30 = vrot.slane %v3345_v42, 2  ;;  %v3352_v29 = vmax.f32 %v3350_v62, %v3351_v39 }
 0x387   : > { %v3601_v56 = vpack.c.bf16 %v3237_v58, %v3237_v58  ;;  %v3602_v21 = vpack.c.bf16 %v3244_v6, %v3244_v6  ;;  %v3359_v43 = vmax.f32 %v3357_v31, %v3358_v24  ;;  %v3340_v18 = vmax.f32 %v3338_v11, %v3339_v51 }
 0x388   : > { %v3603_v50 = vpack.c.bf16 %v3251_v8, %v3251_v8  ;;  %v3728_v60 = vunpack.c.l.b16 %v3600_v5  ;;  %v3347_v12 = vmax.f32 %v3345_v42, %v3346_v30  ;;  %v3353_v3 = vrot.slane %v3352_v29, 2 }
 0x389   : > { %v3729_v47 = vunpack.c.l.b16 %v3601_v56  ;;  %v3730_v27 = vunpack.c.l.b16 %v3602_v21  ;;  %v3360_v23 = vrot.slane %v3359_v43, 2  ;;  %v3808_v34 = vsel %vm3780_vm3, %v3741_v0, %v3740_v37 }
 0x38a   : > { %v3797_v57 = vsel %vm3786_vm6, %v3728_v60, %v3796_v7  ;;  %v3341_v54 = vrot.slane %v3340_v18, 1  ;;  %v3348_v59 = vrot.slane %v3347_v12, 1  ;;  %v3731_v55 = vunpack.c.l.b16 %v3603_v50 }
 0x38b   : > { %v3798_v33 = vsel %vm3788_vm7, %v3729_v47, %v3797_v57  ;;  %v3354_v1 = vmax.f32 %v3352_v29, %v3353_v3  ;;  %v3361_v49 = vmax.f32 %v3359_v43, %v3360_v23  ;;  %v3809_v37 = vsel %vm3782_vm4, %v3742_v10, %v3808_v34 }
 0x38c   : > { %v3799_v40 = vsel %vm3790_vm8, %v3730_v27, %v3798_v33  ;;  %v3342_v9 = vmax.f32 %v3340_v18, %v3341_v54  ;;  %v3349_v22 = vmax.f32 %v3347_v12, %v3348_v59  ;;  %v3743_v36 = vunpack.c.l.b16 %v3615_v19 }
 0x38d   : > { %v3800_v13 = vsel %vm3792_vm9, %v3731_v55, %v3799_v40  ;;  %v3355_v15 = vrot.slane %v3354_v1, 1  ;;  %v3362_v38 = vrot.slane %v3361_v49, 1 }
 0x38e   : > { %v3844_v7 = vpack.c.b16 %v3800_v13, %v3800_v13  ;;  %v3616_v0 = vpack.c.bf16 %v3342_v9, %v3342_v9  ;;  %v3617_v20 = vpack.c.bf16 %v3349_v22, %v3349_v22  ;;  %v3810_v63 = vsel %vm3784_vm5, %v3743_v36, %v3809_v37 }
 0x38f   : > { %v3356_v35 = vmax.f32 %v3354_v1, %v3355_v15  ;;  %v3363_v32 = vmax.f32 %v3361_v49, %v3362_v38 }
 0x390   : > { %3860 = vst [vmem:[%s6289_s30 + $0x4] sm:$0xf] %v3844_v7  ;;  %v3744_v44 = vunpack.c.l.b16 %v3616_v0  ;;  %v3745_v41 = vunpack.c.l.b16 %v3617_v20 }
 0x391   : > { %v3618_v14 = vpack.c.bf16 %v3356_v35, %v3356_v35  ;;  %v3619_v10 = vpack.c.bf16 %v3363_v32, %v3363_v32 }
 0x392   : > { %v3811_v48 = vsel %vm3786_vm6, %v3744_v44, %v3810_v63 }
 0x393   : > { %v3746_v25 = vunpack.c.l.b16 %v3618_v14  ;;  %v3812_v52 = vsel %vm3788_vm7, %v3745_v41, %v3811_v48  ;;  %v3747_v19 = vunpack.c.l.b16 %v3619_v10 }
 0x395   : > { %v3813_v4 = vsel %vm3790_vm8, %v3746_v25, %v3812_v52 }
 0x396   : > { %v3814_v16 = vsel %vm3792_vm9, %v3747_v19, %v3813_v4 }
 0x397   : > { %v3846_v17 = vpack.c.b16 %v3814_v16, %v3814_v16 }
 0x399   : > { %3862 = vst [vmem:[%s6289_s30 + $0xc] sm:$0xf] %v3846_v17 }
 0x39a   : > { %4570 = shalt.err (!%p4567_p3)
}
 0x39b   : > { %s4616_s27 = smov 64  }
 0x39c   : > { %4474 = dma.vmem_to_hbm [thread:$0]  (%p4675_p5), %s3881_s16, 512, %s3883_s10, %s3868_s11, %s4616_s27, %s4616_s27, %s4608_s29  }
 0x39d PF: > { %p4480_p4 = scmp.ge.s32.totalorder %s4605_s15, 2  ;;  %s3897_s30 = sand.u32 1, %s4593_s12  }
 0x39e   : > { %s3898_s4 = scalar_lea.sflag [#allocation4], %s3897_s30 }
 0x39f   : > { %p4477_p7 = pnand %p4480_p4, %p4679_p6 }
 0x3a1   : > { %p4478_p8 = pneg %p4477_p7 }
 0x3a3   : > { %4588 = dma.done.wait (%p4478_p8), %s3898_s4, 512  }
 0x3a4   : > { %4590 = vsyncadd (%p4478_p8), %s3898_s4, 4294966784  ;;  %p13_p9 = scmp.ge.s32.totalorder %s4662_s18, 4   ;;  %s6608_s12 = smov %s4597_s13 }
 0x3a5   : > { %s6609_s13 = smov %s4601_s14  ;;  %s6610_s14 = smov %s4673_s21 }
 0x3a6   : > { %s6611_s15 = smov %s4662_s18  ;;  %15 = sbr.rel (!%p13_p9) target bundleno = 3 (0x3), region = 70 }
 0x3ab   :  { %3904 = vsyncpa [#allocation4], 1 }
 0x3ac   :  { %3906 = vsyncpa [#allocation4 + $0x1], 1 }

</bundles_post_ra>
